<compile_context>
chip_gen: v6e
topology: v6e:2x2x1
jax: 0.10.0
libtpu: 0.0.40
codegen_flags: <defaults>
</compile_context>

<pallas_src>
import functools

import jax
import jax.numpy as jnp
from jax.experimental import pallas as pl
from jax.experimental.pallas import tpu as pltpu

N_EMBD = 32
N_HEAD = 4
HEAD_SIZE = N_EMBD // N_HEAD
LN_EPS = 1e-5
NEG_INF = -1e30          # large finite negative: avoids (-inf)-(-inf) -> NaN


def _layernorm(x, gamma, beta):
    # x: (M, C); gamma/beta: (1, C). Biased variance, eps=1e-5 (PyTorch default).
    mu = jnp.mean(x, axis=-1, keepdims=True)
    xc = x - mu
    var = jnp.mean(xc * xc, axis=-1, keepdims=True)
    return xc * jax.lax.rsqrt(var + LN_EPS) * gamma + beta


def block_kernel(x_ref, mask_ref,
                 ln1_g_ref, ln1_b_ref,
                 wqkv_ref, wproj_ref, bproj_ref,
                 ln2_g_ref, ln2_b_ref,
                 w1_ref, b1_ref, w2_ref, b2_ref,
                 out_ref,
                 *, n_head, head_size, n_embd):
    x = x_ref[...]                                    # (M, C), M = BB*T
    C = n_embd
    hs = head_size

    # ---- LN1 ----
    xn = _layernorm(x, ln1_g_ref[...], ln1_b_ref[...])

    # ---- fused QKV: one MXU pass with a lane-dense 3C-wide output ----
    qkv = jnp.dot(xn, wqkv_ref[...], preferred_element_type=jnp.float32)   # (M, 3C)

    mask = mask_ref[...]                              # (M, M) additive 0 / -1e30

    # ---- multi-head causal self-attention (NO 1/sqrt(d) scaling, as in ref) ----
    # Each head's scores are computed over the whole (BB*T) row slab; the
    # block-diagonal causal mask zeroes cross-batch / future positions.  The
    # head output is folded straight into the output projection via
    # p @ (v_h @ Wproj_h)  ==  (p @ v_h) @ Wproj_h, so no lane-axis concat of
    # 8-wide head slabs is ever materialized.
    acc = jnp.zeros((x.shape[0], C), jnp.float32)
    for h in range(n_head):                           # static unroll (n_head small)
        qh = qkv[:, h * hs:(h + 1) * hs]                        # (M, hs)
        kh = qkv[:, C + h * hs:C + (h + 1) * hs]                # (M, hs)
        vh = qkv[:, 2 * C + h * hs:2 * C + (h + 1) * hs]        # (M, hs)

        wei = jnp.dot(qh, kh.T, preferred_element_type=jnp.float32) + mask  # (M, M)
        wei = wei - jnp.max(wei, axis=-1, keepdims=True)
        p = jnp.exp(wei)
        # divide -> EUP approximate reciprocal (frees the VPU slot)
        p = p * pl.reciprocal(jnp.sum(p, axis=-1, keepdims=True), approx=True)

        vproj = jnp.dot(vh, wproj_ref[h * hs:(h + 1) * hs, :],
                        preferred_element_type=jnp.float32)                 # (M, C)
        acc = acc + jnp.dot(p, vproj, preferred_element_type=jnp.float32)   # (M, C)

    x1 = x + acc + bproj_ref[...]

    # ---- LN2 + feed-forward ----
    x1n = _layernorm(x1, ln2_g_ref[...], ln2_b_ref[...])
    hdn = jnp.dot(x1n, w1_ref[...], preferred_element_type=jnp.float32) + b1_ref[...]
    hdn = jnp.maximum(hdn, 0.0)                       # ReLU
    ff = jnp.dot(hdn, w2_ref[...], preferred_element_type=jnp.float32) + b2_ref[...]

    out_ref[...] = x1 + ff


def _choose_block_batch(B, T, target_rows=256):
    """Largest divisor of B whose row-slab BB*T fits the target, preferring
    >= 2 grid steps so both v7x TensorCores get work."""
    divisors = [d for d in range(1, B + 1) if B % d == 0]
    cands = [d for d in divisors if d * T <= target_rows and B // d >= 2]
    if not cands:
        cands = [d for d in divisors if d * T <= target_rows]
    if not cands:
        cands = [1]
    return max(cands)


def block_forward(x, params, *, n_head=N_HEAD):
    (ln1_g, ln1_b, wq, wk, wv, wproj, bproj,
     ln2_g, ln2_b, w1, b1, w2, b2) = params
    B, T, C = x.shape
    head_size = C // n_head

    bb = _choose_block_batch(B, T)
    m_blk = bb * T
    grid = (B // bb,)

    # Fuse q/k/v projections into one (C, 3C) weight (single matmul in-kernel).
    wqkv = jnp.concatenate([wq, wk, wv], axis=1)

    # Block-diagonal (per batch element) causal additive mask; identical for
    # every grid step, so it uses a constant index_map.
    r = jnp.arange(m_blk)
    same_batch = (r[:, None] // T) == (r[None, :] // T)
    causal = r[None, :] <= r[:, None]
    mask = jnp.where(same_batch & causal, 0.0, NEG_INF).astype(jnp.float32)

    # Present activations as a 2-D (B*T, C) slab: the leading-dim merge is free
    # and the per-step block (bb*T, C) feeds the matmul M dimension directly.
    x2 = x.reshape(B * T, C)

    kernel = functools.partial(block_kernel, n_head=n_head,
                               head_size=head_size, n_embd=C)

    def const(shape):
        return pl.BlockSpec(shape, lambda i: (0,) * len(shape))

    # advisory cost estimate for XLA scheduling
    flops = grid[0] * (
        2 * m_blk * C * 3 * C                                    # qkv
        + n_head * (2 * m_blk * m_blk * head_size                # q @ k^T
                    + 2 * m_blk * head_size * C                  # v_h @ Wproj_h
                    + 2 * m_blk * m_blk * C)                     # p @ vproj
        + 2 * m_blk * C * 4 * C                                  # W1
        + 2 * m_blk * 4 * C * C)                                 # W2
    transcendentals = grid[0] * (n_head * m_blk * m_blk + 2 * m_blk)
    bytes_accessed = 4 * (2 * B * T * C + grid[0] * (
        mask.size + wqkv.size + wproj.size + w1.size + w2.size + 8 * C))

    out2 = pl.pallas_call(
        kernel,
        out_shape=jax.ShapeDtypeStruct((B * T, C), x.dtype),
        grid_spec=pltpu.PrefetchScalarGridSpec(
            num_scalar_prefetch=0,
            grid=grid,
            in_specs=[
                pl.BlockSpec((m_blk, C), lambda i: (i, 0)),      # x slab
                const((m_blk, m_blk)),                           # additive mask
                const((1, C)), const((1, C)),                    # ln1 gamma/beta
                const((C, 3 * C)),                               # Wqkv (fused)
                const((C, C)), const((1, C)),                    # Wproj, bproj
                const((1, C)), const((1, C)),                    # ln2 gamma/beta
                const((C, 4 * C)), const((1, 4 * C)),            # W1, b1
                const((4 * C, C)), const((1, C)),                # W2, b2
            ],
            out_specs=pl.BlockSpec((m_blk, C), lambda i: (i, 0)),
        ),
        compiler_params=pltpu.CompilerParams(dimension_semantics=("parallel",)),
        cost_estimate=pl.CostEstimate(flops=flops,
                                      transcendentals=transcendentals,
                                      bytes_accessed=bytes_accessed),
    )(x2, mask, ln1_g, ln1_b, wqkv, wproj, bproj,
      ln2_g, ln2_b, w1, b1, w2, b2)

    return out2.reshape(B, T, C)


def make_params(key, n_embd=N_EMBD):
    ks = jax.random.split(key, 8)
    scale = 0.02
    return (
        jnp.ones((1, n_embd), jnp.float32),                                   # ln1 gamma
        jnp.zeros((1, n_embd), jnp.float32),                                  # ln1 beta
        scale * jax.random.normal(ks[0], (n_embd, n_embd), jnp.float32),      # Wq (in, out)
        scale * jax.random.normal(ks[1], (n_embd, n_embd), jnp.float32),      # Wk
        scale * jax.random.normal(ks[2], (n_embd, n_embd), jnp.float32),      # Wv
        scale * jax.random.normal(ks[3], (n_embd, n_embd), jnp.float32),      # Wproj
        scale * jax.random.normal(ks[4], (1, n_embd), jnp.float32),           # bproj
        jnp.ones((1, n_embd), jnp.float32),                                   # ln2 gamma
        jnp.zeros((1, n_embd), jnp.float32),                                  # ln2 beta
        scale * jax.random.normal(ks[5], (n_embd, 4 * n_embd), jnp.float32),  # W1
        scale * jax.random.normal(ks[6], (1, 4 * n_embd), jnp.float32),       # b1
        scale * jax.random.normal(ks[7], (4 * n_embd, n_embd), jnp.float32),  # W2
        jnp.zeros((1, n_embd), jnp.float32),                                  # b2
    )


def reference_forward(x, params, *, n_head=N_HEAD):
    (ln1_g, ln1_b, wq, wk, wv, wproj, bproj,
     ln2_g, ln2_b, w1, b1, w2, b2) = params
    B, T, C = x.shape
    hs = C // n_head

    def ln(z, g, b):
        mu = jnp.mean(z, -1, keepdims=True)
        var = jnp.mean((z - mu) ** 2, -1, keepdims=True)
        return (z - mu) / jnp.sqrt(var + LN_EPS) * g + b

    xn = ln(x, ln1_g, ln1_b)
    q = (xn @ wq).reshape(B, T, n_head, hs).transpose(0, 2, 1, 3)
    k = (xn @ wk).reshape(B, T, n_head, hs).transpose(0, 2, 1, 3)
    v = (xn @ wv).reshape(B, T, n_head, hs).transpose(0, 2, 1, 3)
    wei = jnp.einsum("bhtd,bhsd->bhts", q, k)                 # no 1/sqrt(d), as in module
    tril = jnp.tril(jnp.ones((T, T), bool))
    wei = jnp.where(tril, wei, -jnp.inf)
    wei = jax.nn.softmax(wei, axis=-1)
    attn = jnp.einsum("bhts,bhsd->bhtd", wei, v).transpose(0, 2, 1, 3).reshape(B, T, C)
    x = x + attn @ wproj + bproj
    x2 = ln(x, ln2_g, ln2_b)
    ff = jnp.maximum(x2 @ w1 + b1, 0.0) @ w2 + b2
    return x + ff


if __name__ == "__main__":
    key = jax.random.PRNGKey(0)
    kx, kp = jax.random.split(key)

    B, T, C = 32, 8, N_EMBD          # 32 batch elems -> 2 grid steps of (128, 32) row slabs
    x = jax.random.normal(kx, (B, T, C), jnp.float32)
    params = make_params(kp)

    out = block_forward(x, params)
    out = jax.block_until_ready(out)

    ref = reference_forward(x, params)
    assert out.shape == (B, T, C)
    assert jnp.allclose(out, ref, atol=2e-3, rtol=2e-3), \
        f"max abs err {jnp.max(jnp.abs(out - ref))}"

    print("KERNEL_OK")
</pallas_src>

<mosaic_0001>
module attributes {stable_mosaic.version = 11 : i64} {
  func.func @block_kernel(%arg0: i32, %arg1: memref<128x32xf32, #tpu.memory_space<vmem>>, %arg2: memref<128x128xf32, #tpu.memory_space<vmem>>, %arg3: memref<1x32xf32, #tpu.memory_space<vmem>>, %arg4: memref<1x32xf32, #tpu.memory_space<vmem>>, %arg5: memref<32x96xf32, #tpu.memory_space<vmem>>, %arg6: memref<32x32xf32, #tpu.memory_space<vmem>>, %arg7: memref<1x32xf32, #tpu.memory_space<vmem>>, %arg8: memref<1x32xf32, #tpu.memory_space<vmem>>, %arg9: memref<1x32xf32, #tpu.memory_space<vmem>>, %arg10: memref<32x128xf32, #tpu.memory_space<vmem>>, %arg11: memref<1x128xf32, #tpu.memory_space<vmem>>, %arg12: memref<128x32xf32, #tpu.memory_space<vmem>>, %arg13: memref<1x32xf32, #tpu.memory_space<vmem>>, %arg14: memref<128x32xf32, #tpu.memory_space<vmem>>) attributes {dimension_semantics = [#tpu.dimension_semantics<parallel>], iteration_bounds = array<i64: 2>, scalar_prefetch = 0 : i64, scratch_operands = 0 : i64, tpu.core_type = #tpu.core_type<tc>, window_params = [{transform_indices = @transform_0, window_bounds = array<i64: 128, 32>}, {pipeline_mode = #tpu.pipeline_mode<synchronous>, transform_indices = @transform_1, window_bounds = array<i64: 128, 128>}, {pipeline_mode = #tpu.pipeline_mode<synchronous>, transform_indices = @transform_2, window_bounds = array<i64: 1, 32>}, {pipeline_mode = #tpu.pipeline_mode<synchronous>, transform_indices = @transform_3, window_bounds = array<i64: 1, 32>}, {pipeline_mode = #tpu.pipeline_mode<synchronous>, transform_indices = @transform_4, window_bounds = array<i64: 32, 96>}, {pipeline_mode = #tpu.pipeline_mode<synchronous>, transform_indices = @transform_5, window_bounds = array<i64: 32, 32>}, {pipeline_mode = #tpu.pipeline_mode<synchronous>, transform_indices = @transform_6, window_bounds = array<i64: 1, 32>}, {pipeline_mode = #tpu.pipeline_mode<synchronous>, transform_indices = @transform_7, window_bounds = array<i64: 1, 32>}, {pipeline_mode = #tpu.pipeline_mode<synchronous>, transform_indices = @transform_8, window_bounds = array<i64: 1, 32>}, {pipeline_mode = #tpu.pipeline_mode<synchronous>, transform_indices = @transform_9, window_bounds = array<i64: 32, 128>}, {pipeline_mode = #tpu.pipeline_mode<synchronous>, transform_indices = @transform_10, window_bounds = array<i64: 1, 128>}, {pipeline_mode = #tpu.pipeline_mode<synchronous>, transform_indices = @transform_11, window_bounds = array<i64: 128, 32>}, {pipeline_mode = #tpu.pipeline_mode<synchronous>, transform_indices = @transform_12, window_bounds = array<i64: 1, 32>}, {transform_indices = @transform_13, window_bounds = array<i64: 128, 32>}]} {
    %c0 = arith.constant 0 : index
    %c0_0 = arith.constant 0 : index
    %0 = vector.load %arg1[%c0, %c0_0] : memref<128x32xf32, #tpu.memory_space<vmem>>, vector<128x32xf32>
    %c0_1 = arith.constant 0 : index
    %c0_2 = arith.constant 0 : index
    %1 = vector.load %arg3[%c0_1, %c0_2] : memref<1x32xf32, #tpu.memory_space<vmem>>, vector<1x32xf32>
    %c0_3 = arith.constant 0 : index
    %c0_4 = arith.constant 0 : index
    %2 = vector.load %arg4[%c0_3, %c0_4] : memref<1x32xf32, #tpu.memory_space<vmem>>, vector<1x32xf32>
    %cst = arith.constant dense<0.000000e+00> : vector<128xf32>
    %3 = vector.multi_reduction <add>, %0, %cst [1] : vector<128x32xf32> to vector<128xf32>
    %4 = vector.shape_cast %3 : vector<128xf32> to vector<128x1xf32>
    %cst_5 = arith.constant 3.200000e+01 : f32
    %5 = vector.broadcast %cst_5 : f32 to vector<128x1xf32>
    %6 = arith.divf %4, %5 : vector<128x1xf32>
    %7 = vector.broadcast %6 : vector<128x1xf32> to vector<128x32xf32>
    %8 = arith.subf %0, %7 : vector<128x32xf32>
    %9 = arith.mulf %8, %8 : vector<128x32xf32>
    %cst_6 = arith.constant dense<0.000000e+00> : vector<128xf32>
    %10 = vector.multi_reduction <add>, %9, %cst_6 [1] : vector<128x32xf32> to vector<128xf32>
    %11 = vector.shape_cast %10 : vector<128xf32> to vector<128x1xf32>
    %cst_7 = arith.constant 3.200000e+01 : f32
    %12 = vector.broadcast %cst_7 : f32 to vector<128x1xf32>
    %13 = arith.divf %11, %12 : vector<128x1xf32>
    %cst_8 = arith.constant 9.99999974E-6 : f32
    %14 = vector.broadcast %cst_8 : f32 to vector<128x1xf32>
    %15 = arith.addf %13, %14 : vector<128x1xf32>
    %16 = math.rsqrt %15 : vector<128x1xf32>
    %17 = vector.broadcast %16 : vector<128x1xf32> to vector<128x32xf32>
    %18 = arith.mulf %8, %17 : vector<128x32xf32>
    %19 = vector.broadcast %1 : vector<1x32xf32> to vector<128x32xf32>
    %20 = arith.mulf %18, %19 : vector<128x32xf32>
    %21 = vector.broadcast %2 : vector<1x32xf32> to vector<128x32xf32>
    %22 = arith.addf %20, %21 : vector<128x32xf32>
    %c0_9 = arith.constant 0 : index
    %c0_10 = arith.constant 0 : index
    %23 = vector.load %arg5[%c0_9, %c0_10] : memref<32x96xf32, #tpu.memory_space<vmem>>, vector<32x96xf32>
    %cst_11 = arith.constant dense<0.000000e+00> : vector<128x96xf32>
    %24 = tpu.matmul %22, %23, %cst_11 {dimension_numbers = #tpu.dot_dimension_numbers<[1], [0], [0], [1], [0, 0, 1, 1], [], []>} : vector<128x32xf32>, vector<32x96xf32>, vector<128x96xf32> -> vector<128x96xf32>
    %c0_12 = arith.constant 0 : index
    %c0_13 = arith.constant 0 : index
    %25 = vector.load %arg2[%c0_12, %c0_13] : memref<128x128xf32, #tpu.memory_space<vmem>>, vector<128x128xf32>
    %cst_14 = arith.constant 0.000000e+00 : f32
    %26 = vector.broadcast %cst_14 : f32 to vector<128x32xf32>
    %27 = vector.extract_strided_slice %24 {offsets = [0, 0], sizes = [128, 8], strides = [1, 1]} : vector<128x96xf32> to vector<128x8xf32>
    %28 = vector.extract_strided_slice %24 {offsets = [0, 32], sizes = [128, 8], strides = [1, 1]} : vector<128x96xf32> to vector<128x8xf32>
    %29 = vector.extract_strided_slice %24 {offsets = [0, 64], sizes = [128, 8], strides = [1, 1]} : vector<128x96xf32> to vector<128x8xf32>
    %30 = tpu.transpose %28, [1, 0] : vector<128x8xf32> -> vector<8x128xf32>
    %cst_15 = arith.constant dense<0.000000e+00> : vector<128x128xf32>
    %31 = tpu.matmul %27, %30, %cst_15 {dimension_numbers = #tpu.dot_dimension_numbers<[1], [0], [0], [1], [0, 0, 1, 1], [], []>} : vector<128x8xf32>, vector<8x128xf32>, vector<128x128xf32> -> vector<128x128xf32>
    %32 = arith.addf %31, %25 : vector<128x128xf32>
    %cst_16 = arith.constant dense<0xFF800000> : vector<128xf32>
    %33 = vector.multi_reduction <maximumf>, %32, %cst_16 [1] : vector<128x128xf32> to vector<128xf32>
    %34 = vector.shape_cast %33 : vector<128xf32> to vector<128x1xf32>
    %35 = vector.broadcast %34 : vector<128x1xf32> to vector<128x128xf32>
    %36 = arith.subf %32, %35 : vector<128x128xf32>
    %37 = math.exp %36 : vector<128x128xf32>
    %cst_17 = arith.constant dense<0.000000e+00> : vector<128xf32>
    %38 = vector.multi_reduction <add>, %37, %cst_17 [1] : vector<128x128xf32> to vector<128xf32>
    %39 = vector.shape_cast %38 : vector<128xf32> to vector<128x1xf32>
    %40 = tpu.reciprocal %39 {approx = true} : vector<128x1xf32> -> vector<128x1xf32>
    %41 = vector.broadcast %40 : vector<128x1xf32> to vector<128x128xf32>
    %42 = arith.mulf %37, %41 : vector<128x128xf32>
    %c0_18 = arith.constant 0 : index
    %c0_19 = arith.constant 0 : index
    %43 = vector.load %arg6[%c0_18, %c0_19] : memref<32x32xf32, #tpu.memory_space<vmem>>, vector<8x32xf32>
    %cst_20 = arith.constant dense<0.000000e+00> : vector<128x32xf32>
    %44 = tpu.matmul %29, %43, %cst_20 {dimension_numbers = #tpu.dot_dimension_numbers<[1], [0], [0], [1], [0, 0, 1, 1], [], []>} : vector<128x8xf32>, vector<8x32xf32>, vector<128x32xf32> -> vector<128x32xf32>
    %cst_21 = arith.constant dense<0.000000e+00> : vector<128x32xf32>
    %45 = tpu.matmul %42, %44, %cst_21 {dimension_numbers = #tpu.dot_dimension_numbers<[1], [0], [0], [1], [0, 0, 1, 1], [], []>} : vector<128x128xf32>, vector<128x32xf32>, vector<128x32xf32> -> vector<128x32xf32>
    %46 = arith.addf %26, %45 : vector<128x32xf32>
    %47 = vector.extract_strided_slice %24 {offsets = [0, 8], sizes = [128, 8], strides = [1, 1]} : vector<128x96xf32> to vector<128x8xf32>
    %48 = vector.extract_strided_slice %24 {offsets = [0, 40], sizes = [128, 8], strides = [1, 1]} : vector<128x96xf32> to vector<128x8xf32>
    %49 = vector.extract_strided_slice %24 {offsets = [0, 72], sizes = [128, 8], strides = [1, 1]} : vector<128x96xf32> to vector<128x8xf32>
    %50 = tpu.transpose %48, [1, 0] : vector<128x8xf32> -> vector<8x128xf32>
    %cst_22 = arith.constant dense<0.000000e+00> : vector<128x128xf32>
    %51 = tpu.matmul %47, %50, %cst_22 {dimension_numbers = #tpu.dot_dimension_numbers<[1], [0], [0], [1], [0, 0, 1, 1], [], []>} : vector<128x8xf32>, vector<8x128xf32>, vector<128x128xf32> -> vector<128x128xf32>
    %52 = arith.addf %51, %25 : vector<128x128xf32>
    %cst_23 = arith.constant dense<0xFF800000> : vector<128xf32>
    %53 = vector.multi_reduction <maximumf>, %52, %cst_23 [1] : vector<128x128xf32> to vector<128xf32>
    %54 = vector.shape_cast %53 : vector<128xf32> to vector<128x1xf32>
    %55 = vector.broadcast %54 : vector<128x1xf32> to vector<128x128xf32>
    %56 = arith.subf %52, %55 : vector<128x128xf32>
    %57 = math.exp %56 : vector<128x128xf32>
    %cst_24 = arith.constant dense<0.000000e+00> : vector<128xf32>
    %58 = vector.multi_reduction <add>, %57, %cst_24 [1] : vector<128x128xf32> to vector<128xf32>
    %59 = vector.shape_cast %58 : vector<128xf32> to vector<128x1xf32>
    %60 = tpu.reciprocal %59 {approx = true} : vector<128x1xf32> -> vector<128x1xf32>
    %61 = vector.broadcast %60 : vector<128x1xf32> to vector<128x128xf32>
    %62 = arith.mulf %57, %61 : vector<128x128xf32>
    %c8 = arith.constant 8 : index
    %c0_25 = arith.constant 0 : index
    %63 = vector.load %arg6[%c8, %c0_25] : memref<32x32xf32, #tpu.memory_space<vmem>>, vector<8x32xf32>
    %cst_26 = arith.constant dense<0.000000e+00> : vector<128x32xf32>
    %64 = tpu.matmul %49, %63, %cst_26 {dimension_numbers = #tpu.dot_dimension_numbers<[1], [0], [0], [1], [0, 0, 1, 1], [], []>} : vector<128x8xf32>, vector<8x32xf32>, vector<128x32xf32> -> vector<128x32xf32>
    %cst_27 = arith.constant dense<0.000000e+00> : vector<128x32xf32>
    %65 = tpu.matmul %62, %64, %cst_27 {dimension_numbers = #tpu.dot_dimension_numbers<[1], [0], [0], [1], [0, 0, 1, 1], [], []>} : vector<128x128xf32>, vector<128x32xf32>, vector<128x32xf32> -> vector<128x32xf32>
    %66 = arith.addf %46, %65 : vector<128x32xf32>
    %67 = vector.extract_strided_slice %24 {offsets = [0, 16], sizes = [128, 8], strides = [1, 1]} : vector<128x96xf32> to vector<128x8xf32>
    %68 = vector.extract_strided_slice %24 {offsets = [0, 48], sizes = [128, 8], strides = [1, 1]} : vector<128x96xf32> to vector<128x8xf32>
    %69 = vector.extract_strided_slice %24 {offsets = [0, 80], sizes = [128, 8], strides = [1, 1]} : vector<128x96xf32> to vector<128x8xf32>
    %70 = tpu.transpose %68, [1, 0] : vector<128x8xf32> -> vector<8x128xf32>
    %cst_28 = arith.constant dense<0.000000e+00> : vector<128x128xf32>
    %71 = tpu.matmul %67, %70, %cst_28 {dimension_numbers = #tpu.dot_dimension_numbers<[1], [0], [0], [1], [0, 0, 1, 1], [], []>} : vector<128x8xf32>, vector<8x128xf32>, vector<128x128xf32> -> vector<128x128xf32>
    %72 = arith.addf %71, %25 : vector<128x128xf32>
    %cst_29 = arith.constant dense<0xFF800000> : vector<128xf32>
    %73 = vector.multi_reduction <maximumf>, %72, %cst_29 [1] : vector<128x128xf32> to vector<128xf32>
    %74 = vector.shape_cast %73 : vector<128xf32> to vector<128x1xf32>
    %75 = vector.broadcast %74 : vector<128x1xf32> to vector<128x128xf32>
    %76 = arith.subf %72, %75 : vector<128x128xf32>
    %77 = math.exp %76 : vector<128x128xf32>
    %cst_30 = arith.constant dense<0.000000e+00> : vector<128xf32>
    %78 = vector.multi_reduction <add>, %77, %cst_30 [1] : vector<128x128xf32> to vector<128xf32>
    %79 = vector.shape_cast %78 : vector<128xf32> to vector<128x1xf32>
    %80 = tpu.reciprocal %79 {approx = true} : vector<128x1xf32> -> vector<128x1xf32>
    %81 = vector.broadcast %80 : vector<128x1xf32> to vector<128x128xf32>
    %82 = arith.mulf %77, %81 : vector<128x128xf32>
    %c16 = arith.constant 16 : index
    %c0_31 = arith.constant 0 : index
    %83 = vector.load %arg6[%c16, %c0_31] : memref<32x32xf32, #tpu.memory_space<vmem>>, vector<8x32xf32>
    %cst_32 = arith.constant dense<0.000000e+00> : vector<128x32xf32>
    %84 = tpu.matmul %69, %83, %cst_32 {dimension_numbers = #tpu.dot_dimension_numbers<[1], [0], [0], [1], [0, 0, 1, 1], [], []>} : vector<128x8xf32>, vector<8x32xf32>, vector<128x32xf32> -> vector<128x32xf32>
    %cst_33 = arith.constant dense<0.000000e+00> : vector<128x32xf32>
    %85 = tpu.matmul %82, %84, %cst_33 {dimension_numbers = #tpu.dot_dimension_numbers<[1], [0], [0], [1], [0, 0, 1, 1], [], []>} : vector<128x128xf32>, vector<128x32xf32>, vector<128x32xf32> -> vector<128x32xf32>
    %86 = arith.addf %66, %85 : vector<128x32xf32>
    %87 = vector.extract_strided_slice %24 {offsets = [0, 24], sizes = [128, 8], strides = [1, 1]} : vector<128x96xf32> to vector<128x8xf32>
    %88 = vector.extract_strided_slice %24 {offsets = [0, 56], sizes = [128, 8], strides = [1, 1]} : vector<128x96xf32> to vector<128x8xf32>
    %89 = vector.extract_strided_slice %24 {offsets = [0, 88], sizes = [128, 8], strides = [1, 1]} : vector<128x96xf32> to vector<128x8xf32>
    %90 = tpu.transpose %88, [1, 0] : vector<128x8xf32> -> vector<8x128xf32>
    %cst_34 = arith.constant dense<0.000000e+00> : vector<128x128xf32>
    %91 = tpu.matmul %87, %90, %cst_34 {dimension_numbers = #tpu.dot_dimension_numbers<[1], [0], [0], [1], [0, 0, 1, 1], [], []>} : vector<128x8xf32>, vector<8x128xf32>, vector<128x128xf32> -> vector<128x128xf32>
    %92 = arith.addf %91, %25 : vector<128x128xf32>
    %cst_35 = arith.constant dense<0xFF800000> : vector<128xf32>
    %93 = vector.multi_reduction <maximumf>, %92, %cst_35 [1] : vector<128x128xf32> to vector<128xf32>
    %94 = vector.shape_cast %93 : vector<128xf32> to vector<128x1xf32>
    %95 = vector.broadcast %94 : vector<128x1xf32> to vector<128x128xf32>
    %96 = arith.subf %92, %95 : vector<128x128xf32>
    %97 = math.exp %96 : vector<128x128xf32>
    %cst_36 = arith.constant dense<0.000000e+00> : vector<128xf32>
    %98 = vector.multi_reduction <add>, %97, %cst_36 [1] : vector<128x128xf32> to vector<128xf32>
    %99 = vector.shape_cast %98 : vector<128xf32> to vector<128x1xf32>
    %100 = tpu.reciprocal %99 {approx = true} : vector<128x1xf32> -> vector<128x1xf32>
    %101 = vector.broadcast %100 : vector<128x1xf32> to vector<128x128xf32>
    %102 = arith.mulf %97, %101 : vector<128x128xf32>
    %c24 = arith.constant 24 : index
    %c0_37 = arith.constant 0 : index
    %103 = vector.load %arg6[%c24, %c0_37] : memref<32x32xf32, #tpu.memory_space<vmem>>, vector<8x32xf32>
    %cst_38 = arith.constant dense<0.000000e+00> : vector<128x32xf32>
    %104 = tpu.matmul %89, %103, %cst_38 {dimension_numbers = #tpu.dot_dimension_numbers<[1], [0], [0], [1], [0, 0, 1, 1], [], []>} : vector<128x8xf32>, vector<8x32xf32>, vector<128x32xf32> -> vector<128x32xf32>
    %cst_39 = arith.constant dense<0.000000e+00> : vector<128x32xf32>
    %105 = tpu.matmul %102, %104, %cst_39 {dimension_numbers = #tpu.dot_dimension_numbers<[1], [0], [0], [1], [0, 0, 1, 1], [], []>} : vector<128x128xf32>, vector<128x32xf32>, vector<128x32xf32> -> vector<128x32xf32>
    %106 = arith.addf %86, %105 : vector<128x32xf32>
    %107 = arith.addf %0, %106 : vector<128x32xf32>
    %c0_40 = arith.constant 0 : index
    %c0_41 = arith.constant 0 : index
    %108 = vector.load %arg7[%c0_40, %c0_41] : memref<1x32xf32, #tpu.memory_space<vmem>>, vector<1x32xf32>
    %109 = vector.broadcast %108 : vector<1x32xf32> to vector<128x32xf32>
    %110 = arith.addf %107, %109 : vector<128x32xf32>
    %c0_42 = arith.constant 0 : index
    %c0_43 = arith.constant 0 : index
    %111 = vector.load %arg8[%c0_42, %c0_43] : memref<1x32xf32, #tpu.memory_space<vmem>>, vector<1x32xf32>
    %c0_44 = arith.constant 0 : index
    %c0_45 = arith.constant 0 : index
    %112 = vector.load %arg9[%c0_44, %c0_45] : memref<1x32xf32, #tpu.memory_space<vmem>>, vector<1x32xf32>
    %cst_46 = arith.constant dense<0.000000e+00> : vector<128xf32>
    %113 = vector.multi_reduction <add>, %110, %cst_46 [1] : vector<128x32xf32> to vector<128xf32>
    %114 = vector.shape_cast %113 : vector<128xf32> to vector<128x1xf32>
    %cst_47 = arith.constant 3.200000e+01 : f32
    %115 = vector.broadcast %cst_47 : f32 to vector<128x1xf32>
    %116 = arith.divf %114, %115 : vector<128x1xf32>
    %117 = vector.broadcast %116 : vector<128x1xf32> to vector<128x32xf32>
    %118 = arith.subf %110, %117 : vector<128x32xf32>
    %119 = arith.mulf %118, %118 : vector<128x32xf32>
    %cst_48 = arith.constant dense<0.000000e+00> : vector<128xf32>
    %120 = vector.multi_reduction <add>, %119, %cst_48 [1] : vector<128x32xf32> to vector<128xf32>
    %121 = vector.shape_cast %120 : vector<128xf32> to vector<128x1xf32>
    %cst_49 = arith.constant 3.200000e+01 : f32
    %122 = vector.broadcast %cst_49 : f32 to vector<128x1xf32>
    %123 = arith.divf %121, %122 : vector<128x1xf32>
    %cst_50 = arith.constant 9.99999974E-6 : f32
    %124 = vector.broadcast %cst_50 : f32 to vector<128x1xf32>
    %125 = arith.addf %123, %124 : vector<128x1xf32>
    %126 = math.rsqrt %125 : vector<128x1xf32>
    %127 = vector.broadcast %126 : vector<128x1xf32> to vector<128x32xf32>
    %128 = arith.mulf %118, %127 : vector<128x32xf32>
    %129 = vector.broadcast %111 : vector<1x32xf32> to vector<128x32xf32>
    %130 = arith.mulf %128, %129 : vector<128x32xf32>
    %131 = vector.broadcast %112 : vector<1x32xf32> to vector<128x32xf32>
    %132 = arith.addf %130, %131 : vector<128x32xf32>
    %c0_51 = arith.constant 0 : index
    %c0_52 = arith.constant 0 : index
    %133 = vector.load %arg10[%c0_51, %c0_52] : memref<32x128xf32, #tpu.memory_space<vmem>>, vector<32x128xf32>
    %cst_53 = arith.constant dense<0.000000e+00> : vector<128x128xf32>
    %134 = tpu.matmul %132, %133, %cst_53 {dimension_numbers = #tpu.dot_dimension_numbers<[1], [0], [0], [1], [0, 0, 1, 1], [], []>} : vector<128x32xf32>, vector<32x128xf32>, vector<128x128xf32> -> vector<128x128xf32>
    %c0_54 = arith.constant 0 : index
    %c0_55 = arith.constant 0 : index
    %135 = vector.load %arg11[%c0_54, %c0_55] : memref<1x128xf32, #tpu.memory_space<vmem>>, vector<1x128xf32>
    %136 = vector.broadcast %135 : vector<1x128xf32> to vector<128x128xf32>
    %137 = arith.addf %134, %136 : vector<128x128xf32>
    %cst_56 = arith.constant 0.000000e+00 : f32
    %138 = vector.broadcast %cst_56 : f32 to vector<128x128xf32>
    %139 = arith.maximumf %137, %138 : vector<128x128xf32>
    %c0_57 = arith.constant 0 : index
    %c0_58 = arith.constant 0 : index
    %140 = vector.load %arg12[%c0_57, %c0_58] : memref<128x32xf32, #tpu.memory_space<vmem>>, vector<128x32xf32>
    %cst_59 = arith.constant dense<0.000000e+00> : vector<128x32xf32>
    %141 = tpu.matmul %139, %140, %cst_59 {dimension_numbers = #tpu.dot_dimension_numbers<[1], [0], [0], [1], [0, 0, 1, 1], [], []>} : vector<128x128xf32>, vector<128x32xf32>, vector<128x32xf32> -> vector<128x32xf32>
    %c0_60 = arith.constant 0 : index
    %c0_61 = arith.constant 0 : index
    %142 = vector.load %arg13[%c0_60, %c0_61] : memref<1x32xf32, #tpu.memory_space<vmem>>, vector<1x32xf32>
    %143 = vector.broadcast %142 : vector<1x32xf32> to vector<128x32xf32>
    %144 = arith.addf %141, %143 : vector<128x32xf32>
    %145 = arith.addf %110, %144 : vector<128x32xf32>
    %c0_62 = arith.constant 0 : index
    %c0_63 = arith.constant 0 : index
    %146 = vector.load %arg14[%c0_62, %c0_63] : memref<128x32xf32, #tpu.memory_space<vmem>>, vector<128x32xf32>
    tpu.vector_store %arg14[%c0_62, %c0_63], %145 {strides = array<i32>} : memref<128x32xf32, #tpu.memory_space<vmem>>, vector<128x32xf32>,
    return
  }
  func.func @transform_0(%arg0: i32) -> (i32, i32) {
    %c0_i32 = arith.constant 0 : i32
    %c0_i32_0 = arith.constant 0 : i32
    return %arg0, %c0_i32 : i32, i32
  }
  func.func @transform_1(%arg0: i32) -> (i32, i32) {
    %c0_i32 = arith.constant 0 : i32
    %c0_i32_0 = arith.constant 0 : i32
    %c0_i32_1 = arith.constant 0 : i32
    return %c0_i32, %c0_i32_0 : i32, i32
  }
  func.func @transform_2(%arg0: i32) -> (i32, i32) {
    %c0_i32 = arith.constant 0 : i32
    %c0_i32_0 = arith.constant 0 : i32
    %c0_i32_1 = arith.constant 0 : i32
    return %c0_i32, %c0_i32_0 : i32, i32
  }
  func.func @transform_3(%arg0: i32) -> (i32, i32) {
    %c0_i32 = arith.constant 0 : i32
    %c0_i32_0 = arith.constant 0 : i32
    %c0_i32_1 = arith.constant 0 : i32
    return %c0_i32, %c0_i32_0 : i32, i32
  }
  func.func @transform_4(%arg0: i32) -> (i32, i32) {
    %c0_i32 = arith.constant 0 : i32
    %c0_i32_0 = arith.constant 0 : i32
    %c0_i32_1 = arith.constant 0 : i32
    return %c0_i32, %c0_i32_0 : i32, i32
  }
  func.func @transform_5(%arg0: i32) -> (i32, i32) {
    %c0_i32 = arith.constant 0 : i32
    %c0_i32_0 = arith.constant 0 : i32
    %c0_i32_1 = arith.constant 0 : i32
    return %c0_i32, %c0_i32_0 : i32, i32
  }
  func.func @transform_6(%arg0: i32) -> (i32, i32) {
    %c0_i32 = arith.constant 0 : i32
    %c0_i32_0 = arith.constant 0 : i32
    %c0_i32_1 = arith.constant 0 : i32
    return %c0_i32, %c0_i32_0 : i32, i32
  }
  func.func @transform_7(%arg0: i32) -> (i32, i32) {
    %c0_i32 = arith.constant 0 : i32
    %c0_i32_0 = arith.constant 0 : i32
    %c0_i32_1 = arith.constant 0 : i32
    return %c0_i32, %c0_i32_0 : i32, i32
  }
  func.func @transform_8(%arg0: i32) -> (i32, i32) {
    %c0_i32 = arith.constant 0 : i32
    %c0_i32_0 = arith.constant 0 : i32
    %c0_i32_1 = arith.constant 0 : i32
    return %c0_i32, %c0_i32_0 : i32, i32
  }
  func.func @transform_9(%arg0: i32) -> (i32, i32) {
    %c0_i32 = arith.constant 0 : i32
    %c0_i32_0 = arith.constant 0 : i32
    %c0_i32_1 = arith.constant 0 : i32
    return %c0_i32, %c0_i32_0 : i32, i32
  }
  func.func @transform_10(%arg0: i32) -> (i32, i32) {
    %c0_i32 = arith.constant 0 : i32
    %c0_i32_0 = arith.constant 0 : i32
    %c0_i32_1 = arith.constant 0 : i32
    return %c0_i32, %c0_i32_0 : i32, i32
  }
  func.func @transform_11(%arg0: i32) -> (i32, i32) {
    %c0_i32 = arith.constant 0 : i32
    %c0_i32_0 = arith.constant 0 : i32
    %c0_i32_1 = arith.constant 0 : i32
    return %c0_i32, %c0_i32_0 : i32, i32
  }
  func.func @transform_12(%arg0: i32) -> (i32, i32) {
    %c0_i32 = arith.constant 0 : i32
    %c0_i32_0 = arith.constant 0 : i32
    %c0_i32_1 = arith.constant 0 : i32
    return %c0_i32, %c0_i32_0 : i32, i32
  }
  func.func @transform_13(%arg0: i32) -> (i32, i32) {
    %c0_i32 = arith.constant 0 : i32
    %c0_i32_0 = arith.constant 0 : i32
    return %arg0, %c0_i32 : i32, i32
  }
}

</mosaic_0001>

<bundles_post_ra>
// kernel: tpu_custom_call.1
= control target key start
LH: loop header
LB: loop body
LE: loop exit
PB: predicated region body
PF: predicated region fallthrough
CT: control target
= control target key end

     0   :  { %s6605_s25 = smov 0   ;;  %s9024_s0 = inlined_call_operand.vmem [shape: f32[256,32], index: 0, kind: input, shape index: {}]   ;;  %s9025_s1 = inlined_call_operand.vmem [shape: f32[128,128], index: 1, kind: input, shape index: {}]   ;;  %s9026_s2 = inlined_call_operand.vmem [shape: f32[1,32], index: 2, kind: input, shape index: {}]   ;;  %s9027_s3 = inlined_call_operand.vmem [shape: f32[1,32], index: 3, kind: input, shape index: {}]   ;;  %s9028_s4 = inlined_call_operand.vmem [shape: f32[32,96], index: 4, kind: input, shape index: {}]   ;;  %s9029_s5 = inlined_call_operand.vmem [shape: f32[32,32], index: 5, kind: input, shape index: {}]   ;;  %s9030_s6 = inlined_call_operand.vmem [shape: f32[1,32], index: 6, kind: input, shape index: {}]   ;;  %s9031_s7 = inlined_call_operand.vmem [shape: f32[1,32], index: 7, kind: input, shape index: {}]   ;;  %s9032_s8 = inlined_call_operand.vmem [shape: f32[1,32], index: 8, kind: input, shape index: {}]   ;;  %s9033_s9 = inlined_call_operand.vmem [shape: f32[32,128], index: 9, kind: input, shape index: {}]   ;;  %s9034_s10 = inlined_call_operand.vmem [shape: f32[1,128], index: 10, kind: input, shape index: {}]   ;;  %s9035_s11 = inlined_call_operand.vmem [shape: f32[128,32], index: 11, kind: input, shape index: {}]   ;;  %s9036_s12 = inlined_call_operand.vmem [shape: f32[1,32], index: 12, kind: input, shape index: {}]   ;;  %s9037_s13 = inlined_call_operand.vmem [shape: f32[256,32], index: 13, kind: output, shape index: {}]  }
   0x1 LB: > { %s4803_s26 = sadd.s32 4294967295, %s6522_s25   ;;  %p4807_p0 = scmp.ge.s32.totalorder %s6522_s25, 1  ;;  %s6522_s25 = sphi %s6605_s25, %s23_s25  }
   0x2   : > { %p388_p1 = scmp.lt.s32.totalorder %s6522_s25, 3 }
   0x4   : > { %p389_p2 = pnand %p4807_p0, %p388_p1 }
   0x6   : > { %392 = sbr.rel (%p389_p2) target bundleno = 3222 (0xc96), region = 72 }
   0xb   : > { %s4808_s27 = sshll.u32 %s4803_s26, 4  ;;  %vm462_vm0 = vcmask 261120   ;;  %vm977_vm1 = vcmask 64512   ;;  %s6524_s16 = smov 64  }
   0xc   : > { %p433_p3 = scmp.lt.s32.totalorder %s4808_s27, 31  ;;  %s6525_s17 = smov 88  }
   0xd   : > { %s6526_s18 = smov 120   ;;  %s6527_s19 = smov 96  }
   0xe   : > { %s9197_s27 = smov (!%p433_p3, %s4808_s27), 31  ;;  %s6528_s20 = smov 56  }
   0xf   : > { %s4809_s28 = sshll.u32 %s9197_s27, 3  ;;  %s6529_s21 = smov 80  }
  0x10   : > { %s6621_s14 = scalar_lea.vmem %s9024_s0, %s4809_s28  ;;  %s6530_s22 = smov 112  }
  0x11   : > { %v444_v0 = vld [vmem:[%s6621_s14] sm:$0xff]  ;;  %v446_v1 = vld [vmem:[%s6621_s14 + $0x10] sm:$0xff]  ;;  %v445_v2 = vld [vmem:[%s6621_s14 + $0x8] sm:$0xff]  ;;  %s6533_s24 = smov 104  }
  0x12   : > { %v463_v3 = vsel %vm462_vm0, %v444_v0, 0.0  ;;  %v469_v4 = vsel %vm462_vm0, %v446_v1, 0.0  ;;  %v447_v5 = vld [vmem:[%s6621_s14 + $0x18] sm:$0xff]  ;;  %v466_v6 = vsel %vm462_vm0, %v445_v2, 0.0  ;;  %v448_v8 = vld [vmem:[%s6621_s14 + $0x20] sm:$0xff]  ;;  %v449_v9 = vld [vmem:[%s6621_s14 + $0x28] sm:$0xff] }
  0x13   : > { %464 = vadd.xlane.f32.xlu0 %v463_v3  ;;  %470 = vadd.xlane.f32.xlu1 %v469_v4  ;;  %v472_v7 = vsel %vm462_vm0, %v447_v5, 0.0  ;;  %v475_v10 = vsel %vm462_vm0, %v448_v8, 0.0  ;;  %v478_v11 = vsel %vm462_vm0, %v449_v9, 0.0  ;;  %v6636_v12 = vld [vmem:[%s6621_s14 + $0x30] sm:$0xff]  ;;  %v6639_v13 = vld [vmem:[%s6621_s14 + $0x38] sm:$0xff]  ;;  %v6646_v16 = vld [vmem:[%s6621_s14 + $0x40] sm:$0xff] }
  0x14   : > { %v481_v14 = vsel %vm462_vm0, %v6636_v12, 0.0  ;;  %v484_v15 = vsel %vm462_vm0, %v6639_v13, 0.0  ;;  %v6649_v17 = vld [vmem:[%s6621_s14 + $0x48] sm:$0xff]  ;;  %v487_v18 = vsel %vm462_vm0, %v6646_v16, 0.0  ;;  %v6656_v20 = vld [vmem:[%s6621_s14 + $0x50] sm:$0xff]  ;;  %v6659_v21 = vld [vmem:[%s6621_s14 + $0x58] sm:$0xff] }
  0x15   : > { %v490_v19 = vsel %vm462_vm0, %v6649_v17, 0.0  ;;  %v493_v22 = vsel %vm462_vm0, %v6656_v20, 0.0  ;;  %v496_v23 = vsel %vm462_vm0, %v6659_v21, 0.0  ;;  %v6666_v24 = vld [vmem:[%s6621_s14 + $0x60] sm:$0xff]  ;;  %v6669_v25 = vld [vmem:[%s6621_s14 + $0x68] sm:$0xff]  ;;  %v6676_v28 = vld [vmem:[%s6621_s14 + $0x70] sm:$0xff] }
  0x16   : > { %v499_v26 = vsel %vm462_vm0, %v6666_v24, 0.0  ;;  %v502_v27 = vsel %vm462_vm0, %v6669_v25, 0.0  ;;  %v6679_v29 = vld [vmem:[%s6621_s14 + $0x78] sm:$0xff]  ;;  %v505_v30 = vsel %vm462_vm0, %v6676_v28, 0.0 }
  0x17   : > { %467 = vadd.xlane.f32.xlu0 %v466_v6  ;;  %473 = vadd.xlane.f32.xlu1 %v472_v7  ;;  %v508_v31 = vsel %vm462_vm0, %v6679_v29, 0.0 }
  0x1b   : > { %476 = vadd.xlane.f32.xlu0 %v475_v10  ;;  %479 = vadd.xlane.f32.xlu1 %v478_v11 }
  0x1f   : > { %482 = vadd.xlane.f32.xlu0 %v481_v14  ;;  %485 = vadd.xlane.f32.xlu1 %v484_v15 }
  0x23   : > { %488 = vadd.xlane.f32.xlu0 %v487_v18  ;;  %491 = vadd.xlane.f32.xlu1 %v490_v19 }
  0x27   : > { %494 = vadd.xlane.f32.xlu0 %v493_v22  ;;  %497 = vadd.xlane.f32.xlu1 %v496_v23 }
  0x2b   : > { %500 = vadd.xlane.f32.xlu0 %v499_v26  ;;  %503 = vadd.xlane.f32.xlu1 %v502_v27 }
  0x2f   : > { %506 = vadd.xlane.f32.xlu0 %v505_v30  ;;  %509 = vadd.xlane.f32.xlu1 %v508_v31 }
  0x9c   : > { %v465_v32 = vpop.xlane.xlu0 %464  ;;  %v471_v33 = vpop.xlane.xlu1 %470 }
  0x9d   : > { %v512_v34 = vmul.f32 0.03125, %v465_v32  ;;  %v514_v35 = vmul.f32 0.03125, %v471_v33 }
  0x9f   : > { %v6685_v36 = vsub.f32 %v444_v0, %v512_v34  ;;  %v6687_v37 = vsub.f32 %v446_v1, %v514_v35 }
  0xa0   : > { %v468_v38 = vpop.xlane.xlu0 %467  ;;  %v474_v39 = vpop.xlane.xlu1 %473 }
  0xa1   : > { %v513_v40 = vmul.f32 0.03125, %v468_v38  ;;  %v515_v41 = vmul.f32 0.03125, %v474_v39  ;;  %v544_v42 = vmul.f32 %v6685_v36, %v6685_v36  ;;  %v546_v43 = vmul.f32 %v6687_v37, %v6687_v37 }
  0xa3   : > { %v6693_v44 = vsub.f32 %v445_v2, %v513_v40  ;;  %v6695_v45 = vsub.f32 %v447_v5, %v515_v41  ;;  %v560_v46 = vsel %vm462_vm0, %v544_v42, 0.0  ;;  %v566_v49 = vsel %vm462_vm0, %v546_v43, 0.0 }
  0xa4   : > { %561 = vadd.xlane.f32.xlu0 %v560_v46  ;;  %v477_v47 = vpop.xlane.xlu0 %476  ;;  %v480_v48 = vpop.xlane.xlu1 %479 }
  0xa5   : > { %v516_v50 = vmul.f32 0.03125, %v477_v47  ;;  %v517_v51 = vmul.f32 0.03125, %v480_v48  ;;  %v545_v52 = vmul.f32 %v6693_v44, %v6693_v44  ;;  %v547_v53 = vmul.f32 %v6695_v45, %v6695_v45 }
  0xa7   : > { %v6703_v54 = vsub.f32 %v448_v8, %v516_v50  ;;  %v6705_v55 = vsub.f32 %v449_v9, %v517_v51  ;;  %v563_v56 = vsel %vm462_vm0, %v545_v52, 0.0  ;;  %v569_v59 = vsel %vm462_vm0, %v547_v53, 0.0  ;;  %v718_v53 = vld [vmem:[%s9028_s4 + $0x10] sm:$0xff] }
  0xa8   : > { %567 = vadd.xlane.f32.xlu0 %v566_v49  ;;  %564 = vadd.xlane.f32.xlu1 %v563_v56  ;;  %v483_v57 = vpop.xlane.xlu0 %482  ;;  %v486_v58 = vpop.xlane.xlu1 %485  ;;  %v717_v56 = vld [vmem:[%s9028_s4 + $0x8] sm:$0xff] }
  0xa9   : > { %v518_v60 = vmul.f32 0.03125, %v483_v57  ;;  %v519_v61 = vmul.f32 0.03125, %v486_v58  ;;  %v548_v62 = vmul.f32 %v6703_v54, %v6703_v54  ;;  %v549_v63 = vmul.f32 %v6705_v55, %v6705_v55  ;;  %v716_v57 = vld [vmem:[%s9028_s4] sm:$0xff] }
  0xab   : > { %v6714_v0 = vsub.f32 %v6636_v12, %v518_v60  ;;  %v6717_v1 = vsub.f32 %v6639_v13, %v519_v61  ;;  %v572_v2 = vsel %vm462_vm0, %v548_v62, 0.0  ;;  %v575_v5 = vsel %vm462_vm0, %v549_v63, 0.0 }
  0xac   : > { %570 = vadd.xlane.f32.xlu1 %v569_v59  ;;  %573 = vadd.xlane.f32.xlu0 %v572_v2  ;;  %v489_v3 = vpop.xlane.xlu0 %488  ;;  %v492_v4 = vpop.xlane.xlu1 %491 }
  0xad   : > { %v520_v6 = vmul.f32 0.03125, %v489_v3  ;;  %v521_v7 = vmul.f32 0.03125, %v492_v4  ;;  %v550_v8 = vmul.f32 %v6714_v0, %v6714_v0  ;;  %v551_v9 = vmul.f32 %v6717_v1, %v6717_v1 }
  0xaf   : > { %v6726_v10 = vsub.f32 %v6646_v16, %v520_v6  ;;  %v6729_v11 = vsub.f32 %v6649_v17, %v521_v7  ;;  %v578_v12 = vsel %vm462_vm0, %v550_v8, 0.0  ;;  %v581_v15 = vsel %vm462_vm0, %v551_v9, 0.0 }
  0xb0   : > { %576 = vadd.xlane.f32.xlu1 %v575_v5  ;;  %579 = vadd.xlane.f32.xlu0 %v578_v12  ;;  %v495_v13 = vpop.xlane.xlu0 %494  ;;  %v498_v14 = vpop.xlane.xlu1 %497 }
  0xb1   : > { %v522_v18 = vmul.f32 0.03125, %v495_v13  ;;  %v523_v19 = vmul.f32 0.03125, %v498_v14  ;;  %v552_v22 = vmul.f32 %v6726_v10, %v6726_v10  ;;  %v553_v16 = vmul.f32 %v6729_v11, %v6729_v11 }
  0xb3   : > { %v6738_v23 = vsub.f32 %v6656_v20, %v522_v18  ;;  %v6741_v17 = vsub.f32 %v6659_v21, %v523_v19  ;;  %v584_v26 = vsel %vm462_vm0, %v552_v22, 0.0  ;;  %v587_v31 = vsel %vm462_vm0, %v553_v16, 0.0 }
  0xb4   : > { %582 = vadd.xlane.f32.xlu1 %v581_v15  ;;  %585 = vadd.xlane.f32.xlu0 %v584_v26  ;;  %v501_v27 = vpop.xlane.xlu0 %500  ;;  %v504_v30 = vpop.xlane.xlu1 %503 }
  0xb5   : > { %v524_v32 = vmul.f32 0.03125, %v501_v27  ;;  %v525_v33 = vmul.f32 0.03125, %v504_v30  ;;  %v554_v34 = vmul.f32 %v6738_v23, %v6738_v23  ;;  %v555_v20 = vmul.f32 %v6741_v17, %v6741_v17 }
  0xb7   : > { %v6750_v35 = vsub.f32 %v6666_v24, %v524_v32  ;;  %v6753_v21 = vsub.f32 %v6669_v25, %v525_v33  ;;  %v590_v38 = vsel %vm462_vm0, %v554_v34, 0.0  ;;  %v593_v41 = vsel %vm462_vm0, %v555_v20, 0.0  ;;  %v6790_v32 = vld [vmem:[%s9026_s2] ss:$0 sm:$0xff] }
  0xb8   : > { %588 = vadd.xlane.f32.xlu1 %v587_v31  ;;  %591 = vadd.xlane.f32.xlu0 %v590_v38  ;;  %v507_v39 = vpop.xlane.xlu0 %506  ;;  %v510_v40 = vpop.xlane.xlu1 %509 }
  0xb9   : > { %v526_v42 = vmul.f32 0.03125, %v507_v39  ;;  %v527_v43 = vmul.f32 0.03125, %v510_v40  ;;  %v556_v46 = vmul.f32 %v6750_v35, %v6750_v35  ;;  %v557_v24 = vmul.f32 %v6753_v21, %v6753_v21  ;;  %v6796_v40 = vld [vmem:[%s9027_s3] ss:$0 sm:$0xff] }
  0xbb   : > { %v6762_v47 = vsub.f32 %v6676_v28, %v526_v42  ;;  %v6765_v25 = vsub.f32 %v6679_v29, %v527_v43  ;;  %v596_v48 = vsel %vm462_vm0, %v556_v46, 0.0  ;;  %v599_v49 = vsel %vm462_vm0, %v557_v24, 0.0  ;;  %v719_v29 = vld [vmem:[%s9028_s4 + $0x18] sm:$0xff] }
  0xbc   : > { %594 = vadd.xlane.f32.xlu1 %v593_v41  ;;  %597 = vadd.xlane.f32.xlu0 %v596_v48 }
  0xbd   : > { %v558_v50 = vmul.f32 %v6762_v47, %v6762_v47  ;;  %v559_v51 = vmul.f32 %v6765_v25, %v6765_v25  ;;  %5441 = vmatprep.subr.mxu0 %v719_v29 }
  0xbe   : > { %5442 = vmatpush3.msra.mxu0 %v719_v29 }
  0xbf   : > { %v602_v52 = vsel %vm462_vm0, %v558_v50, 0.0  ;;  %v605_v28 = vsel %vm462_vm0, %v559_v51, 0.0  ;;  %5443 = vmatprep.subr.mxu0 %v718_v53 }
  0xc0   : > { %600 = vadd.xlane.f32.xlu1 %v599_v49  ;;  %603 = vadd.xlane.f32.xlu0 %v602_v52 }
  0xc1   : > { %5444 = vmatpush3.msra.mxu0 %v718_v53 }
  0xc2   : > { %5445 = vmatprep.subr.mxu0 %v717_v56 }
  0xc3   : > { %5446 = vmatpush3.msra.mxu0 %v717_v56 }
  0xc4   : > { %606 = vadd.xlane.f32.xlu1 %v605_v28  ;;  %5447 = vmatprep.subr.mxu0 %v716_v57 }
  0xc5   : > { %5448 = vmatpush3.msra.mxu0 %v716_v57 }
 0x12d   : > { %v562_v58 = vpop.xlane.xlu0 %561 }
 0x12e   : > { %v608_v59 = vmul.f32 0.03125, %v562_v58 }
 0x130   : > { %v624_v60 = vadd.f32 1e-05, %v608_v59 }
 0x131   : > { %v565_v61 = vpop.xlane.xlu1 %564  ;;  %v568_v62 = vpop.xlane.xlu0 %567 }
 0x132   : > { %6164 = vrsqrt.f32 %v624_v60  ;;  %v609_v63 = vmul.f32 0.03125, %v565_v61  ;;  %v610_v2 = vmul.f32 0.03125, %v568_v62 }
 0x134   : > { %v625_v3 = vadd.f32 1e-05, %v609_v63  ;;  %v626_v4 = vadd.f32 1e-05, %v610_v2 }
 0x135   : > { %v571_v5 = vpop.xlane.xlu1 %570  ;;  %v574_v6 = vpop.xlane.xlu0 %573 }
 0x136   : > { %6166 = vrsqrt.f32 %v625_v3  ;;  %v611_v7 = vmul.f32 0.03125, %v571_v5  ;;  %v612_v8 = vmul.f32 0.03125, %v574_v6 }
 0x137   : > { %6168 = vrsqrt.f32 %v626_v4 }
 0x138   : > { %v627_v9 = vadd.f32 1e-05, %v611_v7  ;;  %v628_v12 = vadd.f32 1e-05, %v612_v8 }
 0x139   : > { %v577_v13 = vpop.xlane.xlu1 %576  ;;  %v580_v14 = vpop.xlane.xlu0 %579 }
 0x13a   : > { %6170 = vrsqrt.f32 %v627_v9  ;;  %v613_v15 = vmul.f32 0.03125, %v577_v13  ;;  %v614_v18 = vmul.f32 0.03125, %v580_v14 }
 0x13b   : > { %6172 = vrsqrt.f32 %v628_v12 }
 0x13c   : > { %v629_v19 = vadd.f32 1e-05, %v613_v15  ;;  %v630_v22 = vadd.f32 1e-05, %v614_v18 }
 0x13d   : > { %v583_v16 = vpop.xlane.xlu1 %582  ;;  %v586_v26 = vpop.xlane.xlu0 %585 }
 0x13e   : > { %6174 = vrsqrt.f32 %v629_v19  ;;  %v615_v27 = vmul.f32 0.03125, %v583_v16  ;;  %v616_v30 = vmul.f32 0.03125, %v586_v26 }
 0x13f   : > { %v6165_v31 = vpop.eup %6164  ;;  %6176 = vrsqrt.f32 %v630_v22 }
 0x140   : > { %v631_v33 = vadd.f32 1e-05, %v615_v27  ;;  %v632_v34 = vadd.f32 1e-05, %v616_v30  ;;  %v656_v20 = vmul.f32 %v6165_v31, %v6685_v36 }
 0x141   : > { %v589_v38 = vpop.xlane.xlu1 %588  ;;  %v592_v39 = vpop.xlane.xlu0 %591 }
 0x142   : > { %6178 = vrsqrt.f32 %v631_v33  ;;  %v617_v41 = vmul.f32 0.03125, %v589_v38  ;;  %v618_v42 = vmul.f32 0.03125, %v592_v39  ;;  %v678_v43 = vmul.f32 %v6790_v32, %v656_v20 }
 0x143   : > { %v6167_v46 = vpop.eup %6166  ;;  %6180 = vrsqrt.f32 %v632_v34 }
 0x144   : > { %v6169_v24 = vpop.eup %6168  ;;  %v633_v48 = vadd.f32 1e-05, %v617_v41  ;;  %v634_v49 = vadd.f32 1e-05, %v618_v42  ;;  %v700_v50 = vadd.f32 %v6796_v40, %v678_v43  ;;  %v657_v36 = vmul.f32 %v6167_v46, %v6693_v44 }
 0x145   : > { %v595_v51 = vpop.xlane.xlu1 %594  ;;  %v598_v52 = vpop.xlane.xlu0 %597  ;;  %v658_v28 = vmul.f32 %v6169_v24, %v6687_v37 }
 0x146   : > { %6182 = vrsqrt.f32 %v633_v48  ;;  %v619_v29 = vmul.f32 0.03125, %v595_v51  ;;  %v620_v53 = vmul.f32 0.03125, %v598_v52  ;;  %5449 = vmatprep.mubr.msk.f32.mxu0 %vm462_vm0, %v700_v50  ;;  %v679_v56 = vmul.f32 %v6790_v32, %v657_v36 }
 0x147   : > { %v6171_v57 = vpop.eup %6170  ;;  %6184 = vrsqrt.f32 %v634_v49  ;;  %v680_v58 = vmul.f32 %v6790_v32, %v658_v28 }
 0x148   : > { %v6173_v59 = vpop.eup %6172  ;;  %v635_v60 = vadd.f32 1e-05, %v619_v29  ;;  %v636_v61 = vadd.f32 1e-05, %v620_v53  ;;  %v701_v44 = vadd.f32 %v6796_v40, %v679_v56  ;;  %v659_v62 = vmul.f32 %v6171_v57, %v6695_v45 }
 0x149   : > { %v601_v63 = vpop.xlane.xlu1 %600  ;;  %v604_v37 = vpop.xlane.xlu0 %603  ;;  %v702_v2 = vadd.f32 %v6796_v40, %v680_v58  ;;  %v660_v3 = vmul.f32 %v6173_v59, %v6703_v54 }
 0x14a   : > { %6186 = vrsqrt.f32 %v635_v60  ;;  %v621_v4 = vmul.f32 0.03125, %v601_v63  ;;  %v622_v5 = vmul.f32 0.03125, %v604_v37  ;;  %5450 = vmatmul.mubr.msk.f32.vlgmr.msra.gmra.mxu0 %vm462_vm0, %v701_v44  ;;  %v681_v6 = vmul.f32 %v6790_v32, %v659_v62  ;;  %v1331_v44 = vld [vmem:[%s9029_s5] sm:$0xff] }
 0x14b   : > { %v6175_v7 = vpop.eup %6174  ;;  %6188 = vrsqrt.f32 %v636_v61  ;;  %5452 = vmatprep.mubr.msk.f32.mxu0 %vm462_vm0, %v702_v2  ;;  %v682_v8 = vmul.f32 %v6790_v32, %v660_v3  ;;  %5529 = vmatprep.subr.mxu0 %v1331_v44 }
 0x14c   : > { %v6177_v45 = vpop.eup %6176  ;;  %v637_v9 = vadd.f32 1e-05, %v621_v4  ;;  %v638_v12 = vadd.f32 1e-05, %v622_v5  ;;  %v703_v13 = vadd.f32 %v6796_v40, %v681_v6  ;;  %v661_v54 = vmul.f32 %v6175_v7, %v6705_v55  ;;  %5530 = vmatpush3.msra.mxu0 %v1331_v44 }
 0x14d   : > { %v607_v14 = vpop.xlane.xlu1 %606  ;;  %v704_v15 = vadd.f32 %v6796_v40, %v682_v8  ;;  %v662_v18 = vmul.f32 %v6177_v45, %v6714_v0 }
 0x14e   : > { %6190 = vrsqrt.f32 %v637_v9  ;;  %v623_v19 = vmul.f32 0.03125, %v607_v14  ;;  %5453 = vmatmul.mubr.msk.f32.gmra.mxu0 %vm462_vm0, %v703_v13  ;;  %v683_v22 = vmul.f32 %v6790_v32, %v661_v54 }
 0x14f   : > { %v6179_v16 = vpop.eup %6178  ;;  %6192 = vrsqrt.f32 %v638_v12  ;;  %5455 = vmatprep.mubr.msk.f32.mxu0 %vm462_vm0, %v704_v15  ;;  %v684_v26 = vmul.f32 %v6790_v32, %v662_v18 }
 0x150   : > { %v6181_v27 = vpop.eup %6180  ;;  %v639_v30 = vadd.f32 1e-05, %v623_v19  ;;  %v705_v55 = vadd.f32 %v6796_v40, %v683_v22  ;;  %v663_v31 = vmul.f32 %v6179_v16, %v6717_v1 }
 0x151   : > { %v706_v0 = vadd.f32 %v6796_v40, %v684_v26  ;;  %v664_v33 = vmul.f32 %v6181_v27, %v6726_v10 }
 0x152   : > { %6194 = vrsqrt.f32 %v639_v30  ;;  %5456 = vmatmul.mubr.msk.f32.gmra.mxu0 %vm462_vm0, %v705_v55  ;;  %v685_v34 = vmul.f32 %v6790_v32, %v663_v31 }
 0x153   : > { %v6183_v20 = vpop.eup %6182  ;;  %5458 = vmatprep.mubr.msk.f32.mxu0 %vm462_vm0, %v706_v0  ;;  %v686_v38 = vmul.f32 %v6790_v32, %v664_v33 }
 0x154   : > { %v6185_v39 = vpop.eup %6184  ;;  %v707_v41 = vadd.f32 %v6796_v40, %v685_v34  ;;  %v665_v42 = vmul.f32 %v6183_v20, %v6729_v11 }
 0x155   : > { %v708_v1 = vadd.f32 %v6796_v40, %v686_v38  ;;  %v666_v43 = vmul.f32 %v6185_v39, %v6738_v23 }
 0x156   : > { %5459 = vmatmul.mubr.msk.f32.gmra.mxu0 %vm462_vm0, %v707_v41  ;;  %v687_v10 = vmul.f32 %v6790_v32, %v665_v42 }
 0x157   : > { %v6187_v46 = vpop.eup %6186  ;;  %5461 = vmatprep.mubr.msk.f32.mxu0 %vm462_vm0, %v708_v1  ;;  %v688_v24 = vmul.f32 %v6790_v32, %v666_v43 }
 0x158   : > { %v6189_v48 = vpop.eup %6188  ;;  %v709_v49 = vadd.f32 %v6796_v40, %v687_v10  ;;  %v667_v50 = vmul.f32 %v6187_v46, %v6741_v17 }
 0x159   : > { %v710_v11 = vadd.f32 %v6796_v40, %v688_v24  ;;  %v668_v36 = vmul.f32 %v6189_v48, %v6750_v35 }
 0x15a   : > { %5462 = vmatmul.mubr.msk.f32.gmra.mxu0 %vm462_vm0, %v709_v49  ;;  %v689_v23 = vmul.f32 %v6790_v32, %v667_v50 }
 0x15b   : > { %v6191_v51 = vpop.eup %6190  ;;  %5464 = vmatprep.mubr.msk.f32.mxu0 %vm462_vm0, %v710_v11  ;;  %v690_v52 = vmul.f32 %v6790_v32, %v668_v36 }
 0x15c   : > { %v6193_v28 = vpop.eup %6192  ;;  %v711_v29 = vadd.f32 %v6796_v40, %v689_v23  ;;  %v669_v53 = vmul.f32 %v6191_v51, %v6753_v21 }
 0x15d   : > { %v712_v17 = vadd.f32 %v6796_v40, %v690_v52  ;;  %v670_v56 = vmul.f32 %v6193_v28, %v6762_v47 }
 0x15e   : > { %5465 = vmatmul.mubr.msk.f32.gmra.mxu0 %vm462_vm0, %v711_v29  ;;  %v691_v35 = vmul.f32 %v6790_v32, %v669_v53 }
 0x15f   : > { %v6195_v57 = vpop.eup %6194  ;;  %5467 = vmatprep.mubr.msk.f32.mxu0 %vm462_vm0, %v712_v17  ;;  %v692_v58 = vmul.f32 %v6790_v32, %v670_v56 }
 0x160   : > { %v713_v59 = vadd.f32 %v6796_v40, %v691_v35  ;;  %v671_v60 = vmul.f32 %v6195_v57, %v6765_v25 }
 0x161   : > { %v714_v61 = vadd.f32 %v6796_v40, %v692_v58 }
 0x162   : > { %5468 = vmatmul.mubr.msk.f32.gmra.mxu0 %vm462_vm0, %v713_v59  ;;  %v693_v21 = vmul.f32 %v6790_v32, %v671_v60 }
 0x163   : > { %5470 = vmatprep.mubr.msk.f32.mxu0 %vm462_vm0, %v714_v61 }
 0x164   : > { %v715_v47 = vadd.f32 %v6796_v40, %v693_v21 }
 0x166   : > { %5471 = vmatmul.mubr.msk.f32.gmra.mxu0 %vm462_vm0, %v715_v47 }
 0x20a   : > { %v6864_v62 = vpop.f32.mrf.mxu0 }
 0x20b   : > { %9070 = vst [vmem:[#allocation2_spill] sm:$0xff] %v6864_v62  ;;  %1334 = vrot.lane.b32.xlu1 %v6864_v62, %s6524_s16 }
 0x20c   : > { %v6868_v25 = vpop.f32.mrf.mxu0 }
 0x20d   : > { %9071 = vst [vmem:[#allocation3_spill] sm:$0xff] %v6868_v25  ;;  %1332 = vrot.lane.b32.xlu0 %v6868_v25, %s6524_s16  ;;  %5505 = vmatprep.mubr.msk.f32.mxu1 %vm977_vm1, %v6868_v25 }
 0x20e   : > { %v6874_v32 = vpop.f32.mrf.mxu0 }
 0x20f   : > { %9072 = vst [vmem:[#allocation4_spill] sm:$0xff] %v6874_v32 }
 0x210   : > { %v6876_v40 = vpop.f32.mrf.mxu0 }
 0x211   : > { %9073 = vst [vmem:[#allocation5_spill] sm:$0xff] %v6876_v40 }
 0x212   : > { %v6878_v63 = vpop.f32.mrf.mxu0 }
 0x213   : > { %9074 = vst [vmem:[#allocation6_spill] sm:$0xff] %v6878_v63 }
 0x214   : > { %v6880_v37 = vpop.f32.mrf.mxu0 }
 0x216   : > { %v6882_v2 = vpop.f32.mrf.mxu0 }
 0x218   : > { %v6884_v3 = vpop.f32.mrf.mxu0 }
 0x21a   : > { %v6886_v4 = vpop.f32.mrf.mxu0 }
 0x21c   : > { %v6888_v5 = vpop.f32.mrf.mxu0 }
 0x21e   : > { %v6890_v6 = vpop.f32.mrf.mxu0 }
 0x220   : > { %v6892_v7 = vpop.f32.mrf.mxu0 }
 0x222   : > { %v6894_v8 = vpop.f32.mrf.mxu0 }
 0x223   : > { %1599 = vrot.lane.b32.xlu0 %v6894_v8, %s6525_s17 }
 0x224   : > { %v6898_v45 = vpop.f32.mrf.mxu0 }
 0x226   : > { %v6900_v9 = vpop.f32.mrf.mxu0 }
 0x227   : > { %1595 = vrot.lane.b32.xlu0 %v6890_v6, %s6525_s17  ;;  %1603 = vrot.lane.b32.xlu1 %v6900_v9, %s6525_s17 }
 0x228   : > { %v6906_v12 = vpop.f32.mrf.mxu0 }
 0x22b   : > { %1591 = vrot.lane.b32.xlu0 %v6886_v4, %s6525_s17  ;;  %1601 = vrot.lane.b32.xlu1 %v6906_v12, %s6525_s17 }
 0x22f   : > { %1587 = vrot.lane.b32.xlu0 %v6882_v2, %s6525_s17  ;;  %1597 = vrot.lane.b32.xlu1 %v6898_v45, %s6525_s17 }
 0x233   : > { %1338 = vrot.lane.b32.xlu0 %v6874_v32, %s6524_s16  ;;  %1593 = vrot.lane.b32.xlu1 %v6892_v7, %s6525_s17 }
 0x237   : > { %1340 = vrot.lane.b32.xlu0 %v6880_v37, %s6524_s16  ;;  %1589 = vrot.lane.b32.xlu1 %v6888_v5, %s6525_s17 }
 0x23b   : > { %1583 = vrot.lane.b32.xlu0 %v6878_v63, %s6525_s17  ;;  %1336 = vrot.lane.b32.xlu1 %v6876_v40, %s6524_s16 }
 0x23f   : > { %1346 = vrot.lane.b32.xlu0 %v6882_v2, %s6524_s16  ;;  %1585 = vrot.lane.b32.xlu1 %v6884_v3, %s6525_s17 }
 0x243   : > { %1348 = vrot.lane.b32.xlu0 %v6888_v5, %s6524_s16  ;;  %1342 = vrot.lane.b32.xlu1 %v6878_v63, %s6524_s16 }
 0x247   : > { %1579 = vrot.lane.b32.xlu0 %v6874_v32, %s6525_s17  ;;  %1344 = vrot.lane.b32.xlu1 %v6884_v3, %s6524_s16 }
 0x24b   : > { %1354 = vrot.lane.b32.xlu0 %v6890_v6, %s6524_s16  ;;  %1581 = vrot.lane.b32.xlu1 %v6880_v37, %s6525_s17 }
 0x24f   : > { %1356 = vrot.lane.b32.xlu0 %v6898_v45, %s6524_s16  ;;  %1350 = vrot.lane.b32.xlu1 %v6886_v4, %s6524_s16 }
 0x253   : > { %1575 = vrot.lane.b32.xlu0 %v6864_v62, %s6525_s17  ;;  %1352 = vrot.lane.b32.xlu1 %v6892_v7, %s6524_s16 }
 0x257   : > { %1362 = vrot.lane.b32.xlu0 %v6900_v9, %s6524_s16  ;;  %1577 = vrot.lane.b32.xlu1 %v6876_v40, %s6525_s17 }
 0x25b   : > { %1541 = vrot.lane.b32.xlu0 %v6868_v25, %s6526_s18  ;;  %1358 = vrot.lane.b32.xlu1 %v6894_v8, %s6524_s16 }
 0x25f   : > { %975 = vrot.lane.b32.xlu0 %v6900_v9, %s6527_s19  ;;  %1360 = vrot.lane.b32.xlu1 %v6906_v12, %s6524_s16 }
 0x263   : > { %971 = vrot.lane.b32.xlu0 %v6894_v8, %s6527_s19  ;;  %1573 = vrot.lane.b32.xlu1 %v6868_v25, %s6525_s17 }
 0x267   : > { %1545 = vrot.lane.b32.xlu0 %v6876_v40, %s6526_s18  ;;  %1543 = vrot.lane.b32.xlu1 %v6864_v62, %s6526_s18 }
 0x26b   : > { %967 = vrot.lane.b32.xlu0 %v6890_v6, %s6527_s19  ;;  %969 = vrot.lane.b32.xlu1 %v6898_v45, %s6527_s19 }
 0x26f   : > { %1551 = vrot.lane.b32.xlu0 %v6878_v63, %s6526_s18  ;;  %1547 = vrot.lane.b32.xlu1 %v6874_v32, %s6526_s18 }
 0x273   : > { %1553 = vrot.lane.b32.xlu0 %v6884_v3, %s6526_s18  ;;  %973 = vrot.lane.b32.xlu1 %v6906_v12, %s6527_s19 }
 0x277   : > { %963 = vrot.lane.b32.xlu0 %v6886_v4, %s6527_s19  ;;  %1549 = vrot.lane.b32.xlu1 %v6880_v37, %s6526_s18 }
 0x27b   : > { %1559 = vrot.lane.b32.xlu0 %v6886_v4, %s6526_s18  ;;  %965 = vrot.lane.b32.xlu1 %v6892_v7, %s6527_s19 }
 0x27d   : > { %v1335_v54 = vpop.permute.xlu1 %1334 }
 0x27f   : > { %1561 = vrot.lane.b32.xlu0 %v6892_v7, %s6526_s18  ;;  %1555 = vrot.lane.b32.xlu1 %v6882_v2, %s6526_s18  ;;  %v1333_v13 = vpop.permute.xlu0 %1332 }
 0x280   : > { %5531 = vmatprep.mubr.msk.f32.mxu0 %vm977_vm1, %v1333_v13 }
 0x281   : > { %5532 = vmatmul.mubr.msk.f32.vlgmr.msra.gmra.mxu0 %vm977_vm1, %v1335_v54 }
 0x283   : > { %959 = vrot.lane.b32.xlu0 %v6882_v2, %s6527_s19  ;;  %1557 = vrot.lane.b32.xlu1 %v6888_v5, %s6526_s18 }
 0x287   : > { %1567 = vrot.lane.b32.xlu0 %v6894_v8, %s6526_s18  ;;  %961 = vrot.lane.b32.xlu1 %v6888_v5, %s6527_s19 }
 0x28b   : > { %1569 = vrot.lane.b32.xlu0 %v6906_v12, %s6526_s18  ;;  %1563 = vrot.lane.b32.xlu1 %v6890_v6, %s6526_s18 }
 0x28f   : > { %955 = vrot.lane.b32.xlu0 %v6878_v63, %s6527_s19  ;;  %1565 = vrot.lane.b32.xlu1 %v6898_v45, %s6526_s18 }
 0x293   : > { %951 = vrot.lane.b32.xlu0 %v6874_v32, %s6527_s19  ;;  %957 = vrot.lane.b32.xlu1 %v6884_v3, %s6527_s19 }
 0x295   : > { %v1600_v14 = vpop.permute.xlu0 %1599 }
 0x297   : > { %947 = vrot.lane.b32.xlu0 %v6864_v62, %s6527_s19  ;;  %1571 = vrot.lane.b32.xlu1 %v6900_v9, %s6526_s18 }
 0x299   : > { %v1604_v15 = vpop.permute.xlu1 %1603  ;;  %v1596_v18 = vpop.permute.xlu0 %1595 }
 0x29a   : > { %5555 = vmatprep.subr.msk.mxu0 %vm977_vm1, %v1604_v15 }
 0x29b   : > { %1959 = vrot.lane.b32.xlu0 %v6868_v25, %s6528_s20  ;;  %953 = vrot.lane.b32.xlu1 %v6880_v37, %s6527_s19 }
 0x29c   : > { %5556 = vmatpush3.xpose.msk.msra.mxu0 %vm977_vm1, %v1604_v15 }
 0x29d   : > { %v1602_v19 = vpop.permute.xlu1 %1601  ;;  %v1592_v22 = vpop.permute.xlu0 %1591 }
 0x29e   : > { %5557 = vmatprep.subr.msk.mxu0 %vm977_vm1, %v1602_v19 }
 0x29f   : > { %1963 = vrot.lane.b32.xlu0 %v6876_v40, %s6528_s20  ;;  %949 = vrot.lane.b32.xlu1 %v6876_v40, %s6527_s19 }
 0x2a0   : > { %5558 = vmatpush3.xpose.msk.msra.mxu0 %vm977_vm1, %v1602_v19 }
 0x2a1   : > { %5559 = vmatprep.subr.msk.mxu0 %vm977_vm1, %v1600_v14  ;;  %v1598_v16 = vpop.permute.xlu1 %1597  ;;  %v1588_v26 = vpop.permute.xlu0 %1587 }
 0x2a3   : > { %1967 = vrot.lane.b32.xlu0 %v6880_v37, %s6528_s20  ;;  %945 = vrot.lane.b32.xlu1 %v6868_v25, %s6527_s19  ;;  %s8971_s19 = scalar_lea.vmem %s9037_s13, %s4809_s28 }
 0x2a4   : > { %5560 = vmatpush3.xpose.msk.msra.mxu0 %vm977_vm1, %v1600_v14 }
 0x2a5   : > { %5561 = vmatprep.subr.msk.mxu0 %vm977_vm1, %v1598_v16  ;;  %v1594_v27 = vpop.permute.xlu1 %1593  ;;  %v1339_v30 = vpop.permute.xlu0 %1338 }
 0x2a7   : > { %1971 = vrot.lane.b32.xlu0 %v6884_v3, %s6528_s20  ;;  %1961 = vrot.lane.b32.xlu1 %v6864_v62, %s6528_s20 }
 0x2a8   : > { %5562 = vmatpush3.xpose.msk.msra.mxu0 %vm977_vm1, %v1598_v16 }
 0x2a9   : > { %5563 = vmatprep.subr.msk.mxu0 %vm977_vm1, %v1596_v18  ;;  %v1590_v55 = vpop.permute.xlu1 %1589  ;;  %v1341_v31 = vpop.permute.xlu0 %1340 }
 0x2ab   : > { %1975 = vrot.lane.b32.xlu0 %v6888_v5, %s6528_s20  ;;  %1965 = vrot.lane.b32.xlu1 %v6874_v32, %s6528_s20 }
 0x2ac   : > { %5564 = vmatpush3.xpose.msk.msra.mxu0 %vm977_vm1, %v1596_v18 }
 0x2ad   : > { %5565 = vmatprep.subr.msk.mxu0 %vm977_vm1, %v1594_v27  ;;  %v1337_v0 = vpop.permute.xlu1 %1336  ;;  %v1584_v33 = vpop.permute.xlu0 %1583 }
 0x2ae   : > { %5534 = vmatprep.mubr.msk.f32.mxu0 %vm977_vm1, %v1337_v0 }
 0x2af   : > { %1979 = vrot.lane.b32.xlu0 %v6892_v7, %s6528_s20  ;;  %1969 = vrot.lane.b32.xlu1 %v6878_v63, %s6528_s20 }
 0x2b0   : > { %5535 = vmatmul.mubr.msk.f32.gmra.mxu0 %vm977_vm1, %v1339_v30 }
 0x2b1   : > { %5566 = vmatpush3.xpose.msk.msra.mxu0 %vm977_vm1, %v1594_v27  ;;  %5537 = vmatprep.mubr.msk.f32.mxu0 %vm977_vm1, %v1341_v31  ;;  %v1586_v34 = vpop.permute.xlu1 %1585  ;;  %v1347_v20 = vpop.permute.xlu0 %1346 }
 0x2b2   : > { %5567 = vmatprep.subr.msk.mxu0 %vm977_vm1, %v1592_v22 }
 0x2b3   : > { %1983 = vrot.lane.b32.xlu0 %v6898_v45, %s6528_s20  ;;  %1973 = vrot.lane.b32.xlu1 %v6882_v2, %s6528_s20 }
 0x2b5   : > { %5568 = vmatpush3.xpose.msk.msra.mxu0 %vm977_vm1, %v1592_v22  ;;  %v1343_v38 = vpop.permute.xlu1 %1342  ;;  %v1349_v39 = vpop.permute.xlu0 %1348 }
 0x2b6   : > { %5569 = vmatprep.subr.msk.mxu0 %vm977_vm1, %v1590_v55  ;;  %5538 = vmatmul.mubr.msk.f32.gmra.mxu0 %vm977_vm1, %v1343_v38 }
 0x2b7   : > { %1987 = vrot.lane.b32.xlu0 %v6906_v12, %s6528_s20  ;;  %1977 = vrot.lane.b32.xlu1 %v6886_v4, %s6528_s20 }
 0x2b9   : > { %5570 = vmatpush3.xpose.msk.msra.mxu0 %vm977_vm1, %v1590_v55  ;;  %v1345_v41 = vpop.permute.xlu1 %1344  ;;  %v1580_v42 = vpop.permute.xlu0 %1579 }
 0x2ba   : > { %5571 = vmatprep.subr.msk.mxu0 %vm977_vm1, %v1588_v26  ;;  %5540 = vmatprep.mubr.msk.f32.mxu0 %vm977_vm1, %v1345_v41 }
 0x2bb   : > { %2520 = vrot.lane.b32.xlu0 %v6900_v9, %s6529_s21  ;;  %1981 = vrot.lane.b32.xlu1 %v6890_v6, %s6528_s20 }
 0x2bc   : > { %5541 = vmatmul.mubr.msk.f32.gmra.mxu0 %vm977_vm1, %v1347_v20  ;;  %v1958_v20 = vld [vmem:[%s9029_s5 + $0x8] sm:$0xff] }
 0x2bd   : > { %5572 = vmatpush3.xpose.msk.msra.mxu0 %vm977_vm1, %v1588_v26  ;;  %5543 = vmatprep.mubr.msk.f32.mxu0 %vm977_vm1, %v1349_v39  ;;  %v1582_v1 = vpop.permute.xlu1 %1581  ;;  %v1355_v43 = vpop.permute.xlu0 %1354 }
 0x2be   : > { %5573 = vmatprep.subr.msk.mxu0 %vm977_vm1, %v1586_v34 }
 0x2bf   : > { %2516 = vrot.lane.b32.xlu0 %v6894_v8, %s6529_s21  ;;  %1985 = vrot.lane.b32.xlu1 %v6894_v8, %s6528_s20 }
 0x2c1   : > { %5574 = vmatpush3.xpose.msk.msra.mxu0 %vm977_vm1, %v1586_v34  ;;  %v1351_v10 = vpop.permute.xlu1 %1350  ;;  %v1357_v46 = vpop.permute.xlu0 %1356 }
 0x2c2   : > { %5575 = vmatprep.subr.msk.mxu0 %vm977_vm1, %v1584_v33  ;;  %5544 = vmatmul.mubr.msk.f32.gmra.mxu0 %vm977_vm1, %v1351_v10 }
 0x2c3   : > { %2512 = vrot.lane.b32.xlu0 %v6890_v6, %s6529_s21  ;;  %1989 = vrot.lane.b32.xlu1 %v6900_v9, %s6528_s20  ;;  %s6532_s20 = smov 72  }
 0x2c5   : > { %5576 = vmatpush3.xpose.msk.msra.mxu0 %vm977_vm1, %v1584_v33  ;;  %v1353_v24 = vpop.permute.xlu1 %1352  ;;  %v1576_v48 = vpop.permute.xlu0 %1575 }
 0x2c6   : > { %5577 = vmatprep.subr.msk.mxu0 %vm977_vm1, %v1582_v1  ;;  %5546 = vmatprep.mubr.msk.f32.mxu0 %vm977_vm1, %v1353_v24 }
 0x2c7   : > { %2508 = vrot.lane.b32.xlu0 %v6886_v4, %s6529_s21  ;;  %2514 = vrot.lane.b32.xlu1 %v6898_v45, %s6529_s21 }
 0x2c8   : > { %5547 = vmatmul.mubr.msk.f32.gmra.mxu0 %vm977_vm1, %v1355_v43 }
 0x2c9   : > { %5578 = vmatpush3.xpose.msk.msra.mxu0 %vm977_vm1, %v1582_v1  ;;  %5549 = vmatprep.mubr.msk.f32.mxu0 %vm977_vm1, %v1357_v46  ;;  %v1578_v49 = vpop.permute.xlu1 %1577  ;;  %v1363_v50 = vpop.permute.xlu0 %1362 }
 0x2ca   : > { %5579 = vmatprep.subr.msk.mxu0 %vm977_vm1, %v1580_v42 }
 0x2cb   : > { %2506 = vrot.lane.b32.xlu0 %v6888_v5, %s6529_s21  ;;  %2510 = vrot.lane.b32.xlu1 %v6892_v7, %s6529_s21 }
 0x2cd   : > { %5580 = vmatpush3.xpose.msk.msra.mxu0 %vm977_vm1, %v1580_v42  ;;  %v1359_v11 = vpop.permute.xlu1 %1358  ;;  %v1542_v36 = vpop.permute.xlu0 %1541 }
 0x2ce   : > { %5581 = vmatprep.subr.msk.mxu0 %vm977_vm1, %v1578_v49  ;;  %5550 = vmatmul.mubr.msk.f32.gmra.mxu0 %vm977_vm1, %v1359_v11 }
 0x2cf   : > { %2502 = vrot.lane.b32.xlu0 %v6884_v3, %s6529_s21  ;;  %2504 = vrot.lane.b32.xlu1 %v6882_v2, %s6529_s21 }
 0x2d1   : > { %5582 = vmatpush3.xpose.msk.msra.mxu0 %vm977_vm1, %v1578_v49  ;;  %v1361_v23 = vpop.permute.xlu1 %1360  ;;  %v976_v51 = vpop.permute.xlu0 %975 }
 0x2d2   : > { %5583 = vmatprep.subr.msk.mxu0 %vm977_vm1, %v1576_v48  ;;  %5473 = vmatprep.subr.msk.mxu1 %vm977_vm1, %v976_v51 }
 0x2d3   : > { %5552 = vmatprep.mubr.msk.f32.mxu0 %vm977_vm1, %v1361_v23  ;;  %2498 = vrot.lane.b32.xlu0 %v6880_v37, %s6529_s21 }
 0x2d4   : > { %2500 = vrot.lane.b32.xlu1 %v6878_v63, %s6529_s21  ;;  %5474 = vmatpush3.xpose.msk.msra.mxu1 %vm977_vm1, %v976_v51 }
 0x2d5   : > { %5553 = vmatmul.mubr.msk.f32.gmra.mxu0 %vm977_vm1, %v1363_v50  ;;  %v1574_v52 = vpop.permute.xlu1 %1573  ;;  %v972_v28 = vpop.permute.xlu0 %971 }
 0x2d6   : > { %5584 = vmatpush3.xpose.msk.msra.mxu0 %vm977_vm1, %v1576_v48  ;;  %5587 = vmatprep.mubr.msk.f32.mxu0 %vm977_vm1, %v1542_v36 }
 0x2d7   : > { %5585 = vmatprep.subr.msk.mxu0 %vm977_vm1, %v1574_v52  ;;  %2494 = vrot.lane.b32.xlu0 %v6876_v40, %s6529_s21 }
 0x2d8   : > { %2496 = vrot.lane.b32.xlu1 %v6874_v32, %s6529_s21 }
 0x2d9   : > { %v1544_v29 = vpop.permute.xlu1 %1543  ;;  %v1546_v53 = vpop.permute.xlu0 %1545 }
 0x2da   : > { %5586 = vmatpush3.xpose.msk.msra.mxu0 %vm977_vm1, %v1574_v52 }
 0x2db   : > { %2490 = vrot.lane.b32.xlu0 %v6868_v25, %s6529_s21 }
 0x2dc   : > { %2492 = vrot.lane.b32.xlu1 %v6864_v62, %s6529_s21 }
 0x2dd   : > { %5588 = vmatmul.mubr.msk.f32.vlgmr.msra.gmra.mxu0 %vm977_vm1, %v1544_v29  ;;  %v970_v17 = vpop.permute.xlu1 %969  ;;  %v968_v56 = vpop.permute.xlu0 %967 }
 0x2de   : > { %5590 = vmatprep.mubr.msk.f32.mxu0 %vm977_vm1, %v1546_v53 }
 0x2e0   : > { %2458 = vrot.lane.b32.xlu1 %v6868_v25, %s6530_s22  ;;  %v927_v25 = vld [vmem:[%s9025_s1 + $0x70] sm:$0xff] }
 0x2e1   : > { %v1548_v35 = vpop.permute.xlu1 %1547  ;;  %v1552_v57 = vpop.permute.xlu0 %1551 }
 0x2e2   : > { %5591 = vmatmul.mubr.msk.f32.gmra.mxu0 %vm977_vm1, %v1548_v35 }
 0x2e4   : > { %2460 = vrot.lane.b32.xlu1 %v6864_v62, %s6530_s22 }
 0x2e5   : > { %v974_v58 = vpop.permute.xlu1 %973  ;;  %v1554_v59 = vpop.permute.xlu0 %1553 }
 0x2e6   : > { %5475 = vmatprep.subr.msk.mxu1 %vm977_vm1, %v974_v58 }
 0x2e7   : > { %5476 = vmatpush3.xpose.msk.msra.mxu1 %vm977_vm1, %v974_v58 }
 0x2e8   : > { %2462 = vrot.lane.b32.xlu1 %v6876_v40, %s6530_s22  ;;  %5477 = vmatprep.subr.msk.mxu1 %vm977_vm1, %v972_v28 }
 0x2e9   : > { %v1550_v60 = vpop.permute.xlu1 %1549  ;;  %v964_v61 = vpop.permute.xlu0 %963 }
 0x2ea   : > { %5593 = vmatprep.mubr.msk.f32.mxu0 %vm977_vm1, %v1550_v60 }
 0x2eb   : > { %5478 = vmatpush3.xpose.msk.msra.mxu1 %vm977_vm1, %v972_v28  ;;  %5594 = vmatmul.mubr.msk.f32.gmra.mxu0 %vm977_vm1, %v1552_v57 }
 0x2ec   : > { %2464 = vrot.lane.b32.xlu1 %v6874_v32, %s6530_s22  ;;  %5479 = vmatprep.subr.msk.mxu1 %vm977_vm1, %v970_v17 }
 0x2ed   : > { %5596 = vmatprep.mubr.msk.f32.mxu0 %vm977_vm1, %v1554_v59  ;;  %v966_v21 = vpop.permute.xlu1 %965  ;;  %v1560_v47 = vpop.permute.xlu0 %1559 }
 0x2ef   : > { %5480 = vmatpush3.xpose.msk.msra.mxu1 %vm977_vm1, %v970_v17 }
 0x2f0   : > { %2518 = vrot.lane.b32.xlu1 %v6906_v12, %s6529_s21  ;;  %5481 = vmatprep.subr.msk.mxu1 %vm977_vm1, %v968_v56 }
 0x2f1   : > { %v1556_v44 = vpop.permute.xlu1 %1555  ;;  %v1562_v13 = vpop.permute.xlu0 %1561 }
 0x2f2   : > { %5597 = vmatmul.mubr.msk.f32.gmra.mxu0 %vm977_vm1, %v1556_v44 }
 0x2f3   : > { %5482 = vmatpush3.xpose.msk.msra.mxu1 %vm977_vm1, %v968_v56 }
 0x2f4   : > { %5483 = vmatprep.subr.msk.mxu1 %vm977_vm1, %v966_v21 }
 0x2f5   : > { %v1558_v54 = vpop.permute.xlu1 %1557  ;;  %v960_v14 = vpop.permute.xlu0 %959 }
 0x2f6   : > { %5599 = vmatprep.mubr.msk.f32.mxu0 %vm977_vm1, %v1558_v54  ;;  %v914_v54 = vld [vmem:[%s9025_s1 + $0x8] sm:$0xff] }
 0x2f7   : > { %5484 = vmatpush3.xpose.msk.msra.mxu1 %vm977_vm1, %v966_v21  ;;  %5600 = vmatmul.mubr.msk.f32.gmra.mxu0 %vm977_vm1, %v1560_v47 }
 0x2f8   : > { %5485 = vmatprep.subr.msk.mxu1 %vm977_vm1, %v964_v61  ;;  %5602 = vmatprep.mubr.msk.f32.mxu0 %vm977_vm1, %v1562_v13 }
 0x2f9   : > { %v962_v15 = vpop.permute.xlu1 %961  ;;  %v1568_v18 = vpop.permute.xlu0 %1567 }
 0x2fb   : > { %5486 = vmatpush3.xpose.msk.msra.mxu1 %vm977_vm1, %v964_v61 }
 0x2fc   : > { %5487 = vmatprep.subr.msk.mxu1 %vm977_vm1, %v962_v15 }
 0x2fd   : > { %v1564_v19 = vpop.permute.xlu1 %1563  ;;  %v1570_v22 = vpop.permute.xlu0 %1569 }
 0x2fe   : > { %5603 = vmatmul.mubr.msk.f32.gmra.mxu0 %vm977_vm1, %v1564_v19 }
 0x2ff   : > { %5488 = vmatpush3.xpose.msk.msra.mxu1 %vm977_vm1, %v962_v15 }
 0x300   : > { %5489 = vmatprep.subr.msk.mxu1 %vm977_vm1, %v960_v14 }
 0x301   : > { %v1566_v16 = vpop.permute.xlu1 %1565  ;;  %v956_v27 = vpop.permute.xlu0 %955 }
 0x302   : > { %5605 = vmatprep.mubr.msk.f32.mxu0 %vm977_vm1, %v1566_v16  ;;  %v913_v16 = vld [vmem:[%s9025_s1] sm:$0xff] }
 0x303   : > { %5490 = vmatpush3.xpose.msk.msra.mxu1 %vm977_vm1, %v960_v14  ;;  %5606 = vmatmul.mubr.msk.f32.gmra.mxu0 %vm977_vm1, %v1568_v18 }
 0x304   : > { %5608 = vmatprep.mubr.msk.f32.mxu0 %vm977_vm1, %v1570_v22 }
 0x305   : > { %v958_v26 = vpop.permute.xlu1 %957  ;;  %v952_v31 = vpop.permute.xlu0 %951 }
 0x306   : > { %5491 = vmatprep.subr.msk.mxu1 %vm977_vm1, %v958_v26 }
 0x307   : > { %5492 = vmatpush3.xpose.msk.msra.mxu1 %vm977_vm1, %v958_v26 }
 0x308   : > { %5493 = vmatprep.subr.msk.mxu1 %vm977_vm1, %v956_v27 }
 0x309   : > { %v1572_v30 = vpop.permute.xlu1 %1571  ;;  %v948_v33 = vpop.permute.xlu0 %947 }
 0x30a   : > { %5609 = vmatmul.mubr.msk.f32.gmra.mxu0 %vm977_vm1, %v1572_v30 }
 0x30b   : > { %5494 = vmatpush3.xpose.msk.msra.mxu1 %vm977_vm1, %v956_v27 }
 0x30d   : > { %v954_v55 = vpop.permute.xlu1 %953  ;;  %v1960_v38 = vpop.permute.xlu0 %1959 }
 0x30e   : > { %5495 = vmatprep.subr.msk.mxu1 %vm977_vm1, %v954_v55 }
 0x30f   : > { %5496 = vmatpush3.xpose.msk.msra.mxu1 %vm977_vm1, %v954_v55 }
 0x310   : > { %5497 = vmatprep.subr.msk.mxu1 %vm977_vm1, %v952_v31 }
 0x311   : > { %v950_v0 = vpop.permute.xlu1 %949  ;;  %v1964_v41 = vpop.permute.xlu0 %1963 }
 0x313   : > { %5498 = vmatpush3.xpose.msk.msra.mxu1 %vm977_vm1, %v952_v31 }
 0x314   : > { %5499 = vmatprep.subr.msk.mxu1 %vm977_vm1, %v950_v0 }
 0x315   : > { %v946_v34 = vpop.permute.xlu1 %945  ;;  %v1968_v1 = vpop.permute.xlu0 %1967 }
 0x317   : > { %5500 = vmatpush3.xpose.msk.msra.mxu1 %vm977_vm1, %v950_v0  ;;  %v916_v0 = vld [vmem:[%s9025_s1 + $0x18] sm:$0xff] }
 0x318   : > { %5501 = vmatprep.subr.msk.mxu1 %vm977_vm1, %v948_v33 }
 0x319   : > { %v1962_v39 = vpop.permute.xlu1 %1961  ;;  %v1972_v10 = vpop.permute.xlu0 %1971 }
 0x31b   : > { %5502 = vmatpush3.xpose.msk.msra.mxu1 %vm977_vm1, %v948_v33  ;;  %v915_v33 = vld [vmem:[%s9025_s1 + $0x10] sm:$0xff] }
 0x31c   : > { %5503 = vmatprep.subr.msk.mxu1 %vm977_vm1, %v946_v34 }
 0x31d   : > { %v1966_v42 = vpop.permute.xlu1 %1965  ;;  %v1976_v24 = vpop.permute.xlu0 %1975 }
 0x31f   : > { %5504 = vmatpush3.xpose.msk.msra.mxu1 %vm977_vm1, %v946_v34 }
 0x320   : > { %5611 = vmatprep.subr.mxu1 %v1958_v20 }
 0x321   : > { %v1970_v43 = vpop.permute.xlu1 %1969  ;;  %v1980_v49 = vpop.permute.xlu0 %1979 }
 0x322   : > { %5506 = vmatmul.mubr.msk.f32.vlgmr.msra.gmra.mxu1 %vm977_vm1, %v6864_v62 }
 0x323   : > { %5508 = vmatprep.mubr.msk.f32.mxu1 %vm977_vm1, %v6876_v40  ;;  %5612 = vmatpush3.msra.mxu1 %v1958_v20 }
 0x325   : > { %v1974_v46 = vpop.permute.xlu1 %1973  ;;  %v1984_v11 = vpop.permute.xlu0 %1983 }
 0x326   : > { %5509 = vmatmul.mubr.msk.f32.gmra.mxu1 %vm977_vm1, %v6874_v32 }
 0x327   : > { %5511 = vmatprep.mubr.msk.f32.mxu1 %vm977_vm1, %v6880_v37 }
 0x329   : > { %v1978_v48 = vpop.permute.xlu1 %1977  ;;  %v1988_v23 = vpop.permute.xlu0 %1987 }
 0x32a   : > { %5512 = vmatmul.mubr.msk.f32.gmra.mxu1 %vm977_vm1, %v6878_v63 }
 0x32b   : > { %5514 = vmatprep.mubr.msk.f32.mxu1 %vm977_vm1, %v6884_v3 }
 0x32d   : > { %v1982_v50 = vpop.permute.xlu1 %1981 }
 0x32e   : > { %5515 = vmatmul.mubr.msk.f32.gmra.mxu1 %vm977_vm1, %v6882_v2 }
 0x32f   : > { %5517 = vmatprep.mubr.msk.f32.mxu1 %vm977_vm1, %v6888_v5 }
 0x331   : > { %v1986_v36 = vpop.permute.xlu1 %1985 }
 0x332   : > { %5518 = vmatmul.mubr.msk.f32.gmra.mxu1 %vm977_vm1, %v6886_v4 }
 0x333   : > { %5520 = vmatprep.mubr.msk.f32.mxu1 %vm977_vm1, %v6892_v7 }
 0x335   : > { %v1990_v51 = vpop.permute.xlu1 %1989 }
 0x336   : > { %5521 = vmatmul.mubr.msk.f32.gmra.mxu1 %vm977_vm1, %v6890_v6 }
 0x337   : > { %5523 = vmatprep.mubr.msk.f32.mxu1 %vm977_vm1, %v6898_v45 }
 0x33a   : > { %5524 = vmatmul.mubr.msk.f32.gmra.mxu1 %vm977_vm1, %v6894_v8 }
 0x33b   : > { %5526 = vmatprep.mubr.msk.f32.mxu1 %vm977_vm1, %v6906_v12 }
 0x33e   : > { %5527 = vmatmul.mubr.msk.f32.gmra.mxu1 %vm977_vm1, %v6900_v9 }
 0x33f   : > { %5613 = vmatprep.mubr.msk.f32.mxu1 %vm977_vm1, %v1960_v38  ;;  %v7266_v38 = vpop.permute.xlu1 %2514 }
 0x340   : > { %9075 = vst [vmem:[#allocation7_spill] sm:$0xff] %v7266_v38 }
 0x341   : > { %v5533_v52 = vpop.f32.mrf.mxu0 }
 0x342   : > { %5614 = vmatmul.mubr.msk.f32.vlgmr.msra.gmra.mxu1 %vm977_vm1, %v1962_v39 }
 0x343   : > { %5616 = vmatprep.mubr.msk.f32.mxu1 %vm977_vm1, %v1964_v41  ;;  %v1462_v28 = vpop.f32.mrf.mxu0  ;;  %v918_v41 = vld [vmem:[%s9025_s1 + $0x28] sm:$0xff] }
 0x346   : > { %5617 = vmatmul.mubr.msk.f32.gmra.mxu1 %vm977_vm1, %v1966_v42 }
 0x347   : > { %5619 = vmatprep.mubr.msk.f32.mxu1 %vm977_vm1, %v1968_v1 }
 0x34a   : > { %5620 = vmatmul.mubr.msk.f32.gmra.mxu1 %vm977_vm1, %v1970_v43 }
 0x34b   : > { %5622 = vmatprep.mubr.msk.f32.mxu1 %vm977_vm1, %v1972_v10 }
 0x34e   : > { %5623 = vmatmul.mubr.msk.f32.gmra.mxu1 %vm977_vm1, %v1974_v46 }
 0x34f   : > { %5625 = vmatprep.mubr.msk.f32.mxu1 %vm977_vm1, %v1976_v24 }
 0x352   : > { %5626 = vmatmul.mubr.msk.f32.gmra.mxu1 %vm977_vm1, %v1978_v48  ;;  %v7280_v48 = vpop.permute.xlu1 %2510 }
 0x353   : > { %5628 = vmatprep.mubr.msk.f32.mxu1 %vm977_vm1, %v1980_v49  ;;  %9076 = vst [vmem:[#allocation8_spill] sm:$0xff] %v7280_v48 }
 0x356   : > { %5629 = vmatmul.mubr.msk.f32.gmra.mxu1 %vm977_vm1, %v1982_v50  ;;  %v917_v50 = vld [vmem:[%s9025_s1 + $0x20] sm:$0xff] }
 0x357   : > { %5631 = vmatprep.mubr.msk.f32.mxu1 %vm977_vm1, %v1984_v11 }
 0x35a   : > { %5632 = vmatmul.mubr.msk.f32.gmra.mxu1 %vm977_vm1, %v1986_v36 }
 0x35b   : > { %5634 = vmatprep.mubr.msk.f32.mxu1 %vm977_vm1, %v1988_v23 }
 0x35e   : > { %5635 = vmatmul.mubr.msk.f32.gmra.mxu1 %vm977_vm1, %v1990_v51  ;;  %v920_v51 = vld [vmem:[%s9025_s1 + $0x38] sm:$0xff] }
 0x370   : > { %v5536_v29 = vpop.f32.mrf.mxu0 }
 0x372   : > { %v1472_v53 = vpop.f32.mrf.mxu0 }
 0x376   : > { %v5539_v17 = vpop.f32.mrf.mxu0 }
 0x378   : > { %v1482_v56 = vpop.f32.mrf.mxu0 }
 0x37c   : > { %v5542_v35 = vpop.f32.mrf.mxu0 }
 0x37e   : > { %v1492_v57 = vpop.f32.mrf.mxu0 }
 0x382   : > { %v5545_v58 = vpop.f32.mrf.mxu0 }
 0x384   : > { %v1502_v59 = vpop.f32.mrf.mxu0 }
 0x388   : > { %v5548_v60 = vpop.f32.mrf.mxu0 }
 0x38a   : > { %v1512_v61 = vpop.f32.mrf.mxu0 }
 0x38e   : > { %v5551_v21 = vpop.f32.mrf.mxu0 }
 0x390   : > { %v1522_v47 = vpop.f32.mrf.mxu0 }
 0x395   : > { %v5554_v44 = vpop.f32.mrf.mxu0 }
 0x396   : > { %5693 = vmatprep.subr.mxu0 %v5554_v44 }
 0x397   : > { %v1532_v13 = vpop.f32.mrf.mxu0  ;;  %5694 = vmatpush3.msra.mxu0 %v5554_v44 }
 0x398   : > { %5695 = vmatprep.subr.mxu0 %v1532_v13 }
 0x399   : > { %5696 = vmatpush3.msra.mxu0 %v1532_v13 }
 0x39a   : > { %5697 = vmatprep.subr.mxu0 %v5551_v21 }
 0x39b   : > { %5698 = vmatpush3.msra.mxu0 %v5551_v21  ;;  %v922_v21 = vld [vmem:[%s9025_s1 + $0x48] sm:$0xff] }
 0x39c   : > { %5699 = vmatprep.subr.mxu0 %v1522_v47 }
 0x39d   : > { %v5589_v14 = vpop.f32.mrf.mxu0  ;;  %5700 = vmatpush3.msra.mxu0 %v1522_v47 }
 0x39e   : > { %v7246_v15 = vadd.f32 %v5589_v14, %v914_v54  ;;  %5701 = vmatprep.subr.mxu0 %v5548_v60 }
 0x39f   : > { %5702 = vmatpush3.msra.mxu0 %v5548_v60  ;;  %v1735_v18 = vpop.f32.mrf.mxu0 }
 0x3a0   : > { %1816 = vmax.xlane.f32.xlu1 %v7246_v15  ;;  %5703 = vmatprep.subr.mxu0 %v1512_v61  ;;  %v7257_v31 = vadd.f32 %v1735_v18, %v913_v16 }
 0x3a1   : > { %5704 = vmatpush3.msra.mxu0 %v1512_v61 }
 0x3a2   : > { %5705 = vmatprep.subr.mxu0 %v5545_v58  ;;  %v5592_v26 = vpop.f32.mrf.mxu0 }
 0x3a3   : > { %5706 = vmatpush3.msra.mxu0 %v5545_v58  ;;  %v7274_v43 = vadd.f32 %v5592_v26, %v916_v0  ;;  %v921_v26 = vld [vmem:[%s9025_s1 + $0x40] sm:$0xff] }
 0x3a4   : > { %5707 = vmatprep.subr.mxu0 %v1502_v59  ;;  %v1745_v34 = vpop.f32.mrf.mxu0 }
 0x3a5   : > { %5708 = vmatpush3.msra.mxu0 %v1502_v59  ;;  %v919_v59 = vld [vmem:[%s9025_s1 + $0x30] sm:$0xff] }
 0x3a6   : > { %5709 = vmatprep.subr.mxu0 %v5542_v35 }
 0x3a7   : > { %5710 = vmatpush3.msra.mxu0 %v5542_v35 }
 0x3a8   : > { %5711 = vmatprep.subr.mxu0 %v1492_v57 }
 0x3a9   : > { %5712 = vmatpush3.msra.mxu0 %v1492_v57 }
 0x3aa   : > { %5713 = vmatprep.subr.mxu0 %v5539_v17 }
 0x3ab   : > { %5714 = vmatpush3.msra.mxu0 %v5539_v17  ;;  %v5595_v42 = vpop.f32.mrf.mxu0  ;;  %v7297_v17 = vpop.permute.xlu1 %2504 }
 0x3ac   : > { %5715 = vmatprep.subr.mxu0 %v1482_v56  ;;  %v7277_v46 = vadd.f32 %v5595_v42, %v918_v41  ;;  %9077 = vst [vmem:[#allocation9_spill] sm:$0xff] %v7297_v17 }
 0x3ad   : > { %5716 = vmatpush3.msra.mxu0 %v1482_v56  ;;  %v1755_v11 = vpop.f32.mrf.mxu0 }
 0x3ae   : > { %5717 = vmatprep.subr.mxu0 %v5536_v29 }
 0x3af   : > { %5718 = vmatpush3.msra.mxu0 %v5536_v29  ;;  %v7294_v29 = vadd.f32 %v1745_v34, %v915_v33  ;;  %v7314_v13 = vpop.permute.xlu1 %2500  ;;  %v924_v34 = vld [vmem:[%s9025_s1 + $0x58] sm:$0xff] }
 0x3b0   : > { %5719 = vmatprep.subr.mxu0 %v1472_v53  ;;  %9078 = vst [vmem:[#allocation10_spill] sm:$0xff] %v7314_v13 }
 0x3b1   : > { %5720 = vmatpush3.msra.mxu0 %v1472_v53 }
 0x3b2   : > { %5721 = vmatprep.subr.mxu0 %v5533_v52 }
 0x3b3   : > { %5722 = vmatpush3.msra.mxu0 %v5533_v52  ;;  %v5598_v52 = vpop.f32.mrf.mxu0 }
 0x3b4   : > { %5723 = vmatprep.subr.mxu0 %v1462_v28  ;;  %v7299_v56 = vadd.f32 %v5598_v52, %v920_v51 }
 0x3b5   : > { %5724 = vmatpush3.msra.mxu0 %v1462_v28  ;;  %v1765_v35 = vpop.f32.mrf.mxu0 }
 0x3b6   : > { %v7340_v42 = vadd.f32 %v1765_v35, %v919_v59  ;;  %v926_v35 = vld [vmem:[%s9025_s1 + $0x68] sm:$0xff] }
 0x3b7   : > { %v5601_v47 = vpop.f32.mrf.mxu0 }
 0x3b8   : > { %v7319_v18 = vadd.f32 %v5601_v47, %v922_v21 }
 0x3e2   : > { %v5507_v19 = vpop.f32.mrf.mxu1 }
 0x3e3   : > { %v7249_v22 = vadd.f32 %v5507_v19, %v914_v54  ;;  %v7316_v54 = vadd.f32 %v1755_v11, %v917_v50 }
 0x3e4   : > { %v1108_v27 = vpop.f32.mrf.mxu1 }
 0x3e5   : > { %v7254_v30 = vadd.f32 %v1108_v27, %v913_v16  ;;  %1189 = vmax.xlane.f32.xlu0 %v7249_v22  ;;  %v1775_v27 = vpop.f32.mrf.mxu0 }
 0x3e6   : > { %v5510_v55 = vpop.f32.mrf.mxu1 }
 0x3e7   : > { %1187 = vmax.xlane.f32.xlu1 %v7254_v30  ;;  %v7282_v49 = vadd.f32 %v5510_v55, %v916_v0  ;;  %v7330_v0 = vpop.permute.xlu1 %2496 }
 0x3e8   : > { %v1118_v20 = vpop.f32.mrf.mxu1  ;;  %9079 = vst [vmem:[#allocation11_spill] sm:$0xff] %v7330_v0 }
 0x3e9   : > { %v7268_v39 = vadd.f32 %v1118_v20, %v915_v33  ;;  %1814 = vmax.xlane.f32.xlu0 %v7257_v31  ;;  %v5604_v20 = vpop.f32.mrf.mxu0 }
 0x3ea   : > { %v5513_v1 = vpop.f32.mrf.mxu1 }
 0x3eb   : > { %1191 = vmax.xlane.f32.xlu1 %v7268_v39  ;;  %v7302_v58 = vadd.f32 %v5513_v1, %v918_v41  ;;  %v7350_v11 = vpop.permute.xlu1 %2492 }
 0x3ec   : > { %v1128_v10 = vpop.f32.mrf.mxu1  ;;  %9080 = vst [vmem:[#allocation12_spill] sm:$0xff] %v7350_v11 }
 0x3ed   : > { %1820 = vmax.xlane.f32.xlu0 %v7274_v43  ;;  %v7288_v23 = vadd.f32 %v1128_v10, %v917_v50  ;;  %v7345_v10 = vadd.f32 %v5604_v20, %v924_v34 }
 0x3ee   : > { %v5516_v24 = vpop.f32.mrf.mxu1 }
 0x3ef   : > { %1824 = vmax.xlane.f32.xlu1 %v7277_v46  ;;  %v7324_v16 = vadd.f32 %v5516_v24, %v920_v51  ;;  %v1785_v24 = vpop.f32.mrf.mxu0  ;;  %v923_v51 = vld [vmem:[%s9025_s1 + $0x50] sm:$0xff]  ;;  %v7373_v20 = vpop.permute.xlu1 %2458 }
 0x3f0   : > { %v1138_v36 = vpop.f32.mrf.mxu1  ;;  %9082 = vst [vmem:[#allocation14_spill] sm:$0xff] %v7373_v20 }
 0x3f1   : > { %1193 = vmax.xlane.f32.xlu0 %v7282_v49  ;;  %v7308_v61 = vadd.f32 %v1138_v36, %v919_v59  ;;  %v5607_v59 = vpop.f32.mrf.mxu0 }
 0x3f2   : > { %v5519_v28 = vpop.f32.mrf.mxu1  ;;  %v7375_v11 = vadd.f32 %v5607_v59, %v926_v35  ;;  %v928_v59 = vld [vmem:[%s9025_s1 + $0x78] sm:$0xff] }
 0x3f3   : > { %1195 = vmax.xlane.f32.xlu1 %v7288_v23  ;;  %v7352_v36 = vadd.f32 %v5519_v28, %v922_v21  ;;  %v7368_v28 = vadd.f32 %v1775_v27, %v921_v26  ;;  %v1795_v27 = vpop.f32.mrf.mxu0 }
 0x3f4   : > { %v1148_v53 = vpop.f32.mrf.mxu1 }
 0x3f5   : > { %1818 = vmax.xlane.f32.xlu0 %v7294_v29  ;;  %v7332_v33 = vadd.f32 %v1148_v53, %v921_v26  ;;  %9081 = vst [vmem:[#allocation13_spill] sm:$0xff] %v7352_v36  ;;  %v925_v26 = vld [vmem:[%s9025_s1 + $0x60] sm:$0xff]  ;;  %v5610_v20 = vpop.f32.mrf.mxu0 }
 0x3f6   : > { %v5522_v57 = vpop.f32.mrf.mxu1  ;;  %v7395_v32 = vadd.f32 %v5610_v20, %v928_v59  ;;  %v7409_v20 = vadd.f32 %v1795_v27, %v925_v26 }
 0x3f7   : > { %1828 = vmax.xlane.f32.xlu1 %v7299_v56  ;;  %v7378_v0 = vadd.f32 %v5522_v57, %v924_v34  ;;  %v7390_v57 = vpop.permute.xlu1 %2460  ;;  %v7392_v34 = vadd.f32 %v1785_v24, %v923_v51 }
 0x3f8   : > { %v1158_v60 = vpop.f32.mrf.mxu1  ;;  %9084 = vst [vmem:[#allocation16_spill] sm:$0xff] %v7390_v57 }
 0x3f9   : > { %1197 = vmax.xlane.f32.xlu0 %v7302_v58  ;;  %v7360_v53 = vadd.f32 %v1158_v60, %v923_v51  ;;  %9083 = vst [vmem:[#allocation15_spill] sm:$0xff] %v7378_v0 }
 0x3fa   : > { %v5525_v44 = vpop.f32.mrf.mxu1 }
 0x3fb   : > { %1199 = vmax.xlane.f32.xlu1 %v7308_v61  ;;  %v7398_v48 = vadd.f32 %v5525_v44, %v926_v35  ;;  %v7404_v57 = vpop.permute.xlu1 %2462 }
 0x3fc   : > { %v1168_v14 = vpop.f32.mrf.mxu1  ;;  %9085 = vst [vmem:[#allocation17_spill] sm:$0xff] %v7404_v57  ;;  %v1805_v57 = vpop.f32.mrf.mxu0 }
 0x3fd   : > { %1822 = vmax.xlane.f32.xlu0 %v7316_v54  ;;  %v7384_v40 = vadd.f32 %v1168_v14, %v925_v26  ;;  %v7419_v26 = vadd.f32 %v1805_v57, %v927_v25 }
 0x3fe   : > { %v7322_v19 = vpop.f32.mrf.mxu1 }
 0x3ff   : > { %1832 = vmax.xlane.f32.xlu1 %v7319_v18 }
 0x400   : > { %v1178_v55 = vpop.f32.mrf.mxu1 }
 0x401   : > { %1201 = vmax.xlane.f32.xlu0 %v7324_v16  ;;  %v7406_v24 = vadd.f32 %v1178_v55, %v927_v25  ;;  %v7432_v25 = vpop.permute.xlu0 %2520 }
 0x402   : > { %v7338_v41 = vpop.f32.mrf.mxu1 }
 0x403   : > { %1203 = vmax.xlane.f32.xlu1 %v7332_v33  ;;  %9086 = vst [vmem:[#allocation18_spill] sm:$0xff] %v7406_v24 }
 0x404   : > { %v7343_v1 = vpop.f32.mrf.mxu1 }
 0x405   : > { %1826 = vmax.xlane.f32.xlu0 %v7340_v42 }
 0x406   : > { %v7348_v50 = vpop.f32.mrf.mxu1 }
 0x407   : > { %1836 = vmax.xlane.f32.xlu1 %v7345_v10 }
 0x408   : > { %v7358_v52 = vpop.f32.mrf.mxu1 }
 0x409   : > { %1205 = vmax.xlane.f32.xlu0 %v7352_v36  ;;  %v7416_v36 = vadd.f32 %v7322_v19, %v928_v59 }
 0x40a   : > { %v7366_v47 = vpop.f32.mrf.mxu1 }
 0x40b   : > { %1207 = vmax.xlane.f32.xlu1 %v7360_v53 }
 0x40c   : > { %v7371_v21 = vpop.f32.mrf.mxu1 }
 0x40d   : > { %1830 = vmax.xlane.f32.xlu0 %v7368_v28 }
 0x40e   : > { %v5624_v60 = vpop.f32.mrf.mxu1 }
 0x40f   : > { %1840 = vmax.xlane.f32.xlu1 %v7375_v11 }
 0x410   : > { %v2119_v13 = vpop.f32.mrf.mxu1 }
 0x411   : > { %1209 = vmax.xlane.f32.xlu0 %v7378_v0  ;;  %v7413_v0 = vpop.permute.xlu1 %2464 }
 0x412   : > { %v5627_v17 = vpop.f32.mrf.mxu1  ;;  %9087 = vst [vmem:[#allocation19_spill] sm:$0xff] %v7413_v0 }
 0x413   : > { %1211 = vmax.xlane.f32.xlu1 %v7384_v40 }
 0x414   : > { %v2129_v62 = vpop.f32.mrf.mxu1 }
 0x415   : > { %1834 = vmax.xlane.f32.xlu0 %v7392_v34  ;;  %v7421_v27 = vpop.permute.xlu1 %2518 }
 0x416   : > { %v5630_v14 = vpop.f32.mrf.mxu1 }
 0x417   : > { %1844 = vmax.xlane.f32.xlu1 %v7395_v32 }
 0x418   : > { %v2139_v38 = vpop.f32.mrf.mxu1 }
 0x419   : > { %1213 = vmax.xlane.f32.xlu0 %v7398_v48 }
 0x41a   : > { %v5633_v51 = vpop.f32.mrf.mxu1 }
 0x41b   : > { %1215 = vmax.xlane.f32.xlu1 %v7406_v24 }
 0x41c   : > { %v2149_v44 = vpop.f32.mrf.mxu1 }
 0x41d   : > { %1838 = vmax.xlane.f32.xlu0 %v7409_v20 }
 0x41e   : > { %v5636_v35 = vpop.f32.mrf.mxu1 }
 0x41f   : > { %5637 = vmatprep.subr.mxu1 %v5636_v35 }
 0x420   : > { %v2159_v55 = vpop.f32.mrf.mxu1  ;;  %5638 = vmatpush3.msra.mxu1 %v5636_v35 }
 0x421   : > { %1217 = vmax.xlane.f32.xlu0 %v7416_v36  ;;  %5639 = vmatprep.subr.mxu1 %v2159_v55 }
 0x422   : > { %5640 = vmatpush3.msra.mxu1 %v2159_v55 }
 0x423   : > { %5641 = vmatprep.subr.mxu1 %v5633_v51 }
 0x424   : > { %5642 = vmatpush3.msra.mxu1 %v5633_v51 }
 0x425   : > { %1842 = vmax.xlane.f32.xlu0 %v7419_v26  ;;  %5643 = vmatprep.subr.mxu1 %v2149_v44 }
 0x426   : > { %5644 = vmatpush3.msra.mxu1 %v2149_v44 }
 0x427   : > { %5645 = vmatprep.subr.mxu1 %v5630_v14 }
 0x428   : > { %5646 = vmatpush3.msra.mxu1 %v5630_v14 }
 0x429   : > { %v1817_v19 = vpop.xlane.xlu1 %1816  ;;  %5647 = vmatprep.subr.mxu1 %v2139_v38 }
 0x42a   : > { %v1847_v59 = vsub.f32 %v7246_v15, %v1817_v19  ;;  %5648 = vmatpush3.msra.mxu1 %v2139_v38  ;;  %v7444_v15 = vpop.permute.xlu0 %2516 }
 0x42b   : > { %5649 = vmatprep.subr.mxu1 %v5627_v17 }
 0x42c   : > { %v1864_v35 = vmul.f32 1.442695, %v1847_v59  ;;  %5650 = vmatpush3.msra.mxu1 %v5627_v17 }
 0x42d   : > { %5651 = vmatprep.subr.mxu1 %v2129_v62 }
 0x42e   : > { %6196 = vpow2.f32 %v1864_v35  ;;  %5652 = vmatpush3.msra.mxu1 %v2129_v62  ;;  %v7446_v38 = vpop.permute.xlu0 %2512 }
 0x42f   : > { %5653 = vmatprep.subr.mxu1 %v5624_v60 }
 0x430   : > { %5654 = vmatpush3.msra.mxu1 %v5624_v60 }
 0x431   : > { %5655 = vmatprep.subr.mxu1 %v2119_v13 }
 0x432   : > { %5656 = vmatpush3.msra.mxu1 %v2119_v13  ;;  %v7448_v17 = vpop.permute.xlu0 %2508 }
 0x433   : > { %5657 = vmatprep.subr.mxu1 %v7366_v47  ;;  %9088 = vst [vmem:[#allocation20_spill] sm:$0xff] %v7448_v17 }
 0x434   : > { %5658 = vmatpush3.msra.mxu1 %v7366_v47 }
 0x435   : > { %5659 = vmatprep.subr.mxu1 %v7371_v21 }
 0x436   : > { %5660 = vmatpush3.msra.mxu1 %v7371_v21  ;;  %v7452_v13 = vpop.permute.xlu0 %2506 }
 0x437   : > { %5661 = vmatprep.subr.mxu1 %v7348_v50  ;;  %9089 = vst [vmem:[#allocation21_spill] sm:$0xff] %v7452_v13 }
 0x438   : > { %5662 = vmatpush3.msra.mxu1 %v7348_v50 }
 0x439   : > { %5663 = vmatprep.subr.mxu1 %v7358_v52 }
 0x43a   : > { %5664 = vmatpush3.msra.mxu1 %v7358_v52  ;;  %v7454_v50 = vpop.permute.xlu0 %2502 }
 0x43b   : > { %v7435_v62 = vpop.eup %6196  ;;  %5665 = vmatprep.subr.mxu1 %v7338_v41  ;;  %9090 = vst [vmem:[#allocation22_spill] sm:$0xff] %v7454_v50 }
 0x43c   : > { %1896 = vadd.xlane.f32.xlu1 %v7435_v62  ;;  %5666 = vmatpush3.msra.mxu1 %v7338_v41 }
 0x43d   : > { %5667 = vmatprep.subr.mxu1 %v7343_v1 }
 0x43e   : > { %5668 = vmatpush3.msra.mxu1 %v7343_v1  ;;  %v7456_v41 = vpop.permute.xlu0 %2498 }
 0x43f   : > { %5749 = vmatprep.subr.msk.mxu1 %vm977_vm1, %v7432_v25  ;;  %9091 = vst [vmem:[#allocation23_spill] sm:$0xff] %v7456_v41 }
 0x442   : > { %v7458_v52 = vpop.permute.xlu0 %2494 }
 0x443   : > { %9092 = vst [vmem:[#allocation24_spill] sm:$0xff] %v7458_v52 }
 0x446   : > { %v7460_v1 = vpop.permute.xlu0 %2490 }
 0x447   : > { %9093 = vst [vmem:[#allocation25_spill] sm:$0xff] %v7460_v1 }
 0x44d   : > { %2468 = vrot.lane.b32.xlu1 %v6878_v63, %s6530_s22 }
 0x46e   : > { %v7462_v47 = vpop.xlane.xlu0 %1189 }
 0x470   : > { %v7464_v21 = vpop.xlane.xlu1 %1187 }
 0x472   : > { %v1815_v60 = vpop.xlane.xlu0 %1814 }
 0x473   : > { %v1846_v57 = vsub.f32 %v7257_v31, %v1815_v60 }
 0x474   : > { %v7467_v14 = vpop.xlane.xlu1 %1191 }
 0x475   : > { %v1862_v51 = vmul.f32 1.442695, %v1846_v57 }
 0x476   : > { %v7469_v44 = vpop.xlane.xlu0 %1820 }
 0x477   : > { %6198 = vpow2.f32 %v1862_v51 }
 0x478   : > { %v1825_v55 = vpop.xlane.xlu1 %1824 }
 0x479   : > { %v1851_v0 = vsub.f32 %v7277_v46, %v1825_v55 }
 0x47a   : > { %v7471_v19 = vpop.xlane.xlu0 %1193 }
 0x47b   : > { %v1872_v31 = vmul.f32 1.442695, %v1851_v0 }
 0x47c   : > { %v7473_v59 = vpop.xlane.xlu1 %1195 }
 0x47e   : > { %v1819_v35 = vpop.xlane.xlu0 %1818 }
 0x47f   : > { %v1848_v1 = vsub.f32 %v7294_v29, %v1819_v35 }
 0x480   : > { %v1829_v52 = vpop.xlane.xlu1 %1828 }
 0x481   : > { %v1866_v41 = vmul.f32 1.442695, %v1848_v1  ;;  %v1853_v50 = vsub.f32 %v7299_v56, %v1829_v52 }
 0x482   : > { %v7477_v24 = vpop.xlane.xlu0 %1197 }
 0x483   : > { %6200 = vpow2.f32 %v1866_v41  ;;  %v1876_v1 = vmul.f32 1.442695, %v1853_v50 }
 0x484   : > { %v7479_v60 = vpop.eup %6198  ;;  %v7481_v57 = vpop.xlane.xlu1 %1199  ;;  %6202 = vpow2.f32 %v1872_v31 }
 0x485   : > { %1894 = vadd.xlane.f32.xlu0 %v7479_v60 }
 0x486   : > { %v1823_v51 = vpop.xlane.xlu0 %1822 }
 0x487   : > { %v1850_v46 = vsub.f32 %v7316_v54, %v1823_v51 }
 0x488   : > { %v1833_v55 = vpop.xlane.xlu1 %1832 }
 0x489   : > { %v1870_v29 = vmul.f32 1.442695, %v1850_v46  ;;  %v1855_v0 = vsub.f32 %v7319_v18, %v1833_v55 }
 0x48a   : > { %v7486_v35 = vpop.xlane.xlu0 %1201 }
 0x48b   : > { %6204 = vpow2.f32 %v1870_v29  ;;  %v1880_v63 = vmul.f32 1.442695, %v1855_v0 }
 0x48c   : > { %v7489_v41 = vpop.xlane.xlu1 %1203  ;;  %6206 = vpow2.f32 %v1876_v1 }
 0x48d   : > { %6208 = vpow2.f32 %v1880_v63 }
 0x48e   : > { %v1827_v13 = vpop.xlane.xlu0 %1826 }
 0x490   : > { %v7491_v17 = vpop.eup %6200  ;;  %v1837_v31 = vpop.xlane.xlu1 %1836 }
 0x491   : > { %1898 = vadd.xlane.f32.xlu1 %v7491_v17  ;;  %v7496_v54 = vpop.eup %6202  ;;  %v1857_v50 = vsub.f32 %v7345_v10, %v1837_v31 }
 0x492   : > { %v7494_v56 = vpop.xlane.xlu0 %1205  ;;  %9094 = vst [vmem:[#allocation26_spill] sm:$0xff] %v7496_v54 }
 0x493   : > { %v1884_v63 = vmul.f32 1.442695, %v1857_v50 }
 0x494   : > { %v7498_v52 = vpop.xlane.xlu1 %1207 }
 0x495   : > { %1904 = vadd.xlane.f32.xlu1 %v7496_v54 }
 0x496   : > { %v1831_v18 = vpop.xlane.xlu0 %1830 }
 0x497   : > { %v1854_v51 = vsub.f32 %v7368_v28, %v1831_v18 }
 0x498   : > { %v7503_v46 = vpop.eup %6204  ;;  %v1841_v55 = vpop.xlane.xlu1 %1840 }
 0x499   : > { %9095 = vst [vmem:[#allocation27_spill] sm:$0xff] %v7503_v46  ;;  %v1878_v29 = vmul.f32 1.442695, %v1854_v51  ;;  %1902 = vadd.xlane.f32.xlu1 %v7503_v46  ;;  %v1859_v0 = vsub.f32 %v7375_v11, %v1841_v55  ;;  %v7511_v54 = vpop.eup %6206  ;;  %v1849_v11 = vsub.f32 %v7274_v43, %v7469_v44 }
 0x49a   : > { %v7506_v1 = vpop.xlane.xlu0 %1209  ;;  %9096 = vst [vmem:[#allocation28_spill] sm:$0xff] %v7511_v54  ;;  %v7514_v31 = vpop.eup %6208 }
 0x49b   : > { %6210 = vpow2.f32 %v1878_v29  ;;  %2466 = vrot.lane.b32.xlu0 %v6880_v37, %s6530_s22  ;;  %v1888_v28 = vmul.f32 1.442695, %v1859_v0  ;;  %9097 = vst [vmem:[#allocation29_spill] sm:$0xff] %v7514_v31 }
 0x49c   : > { %6212 = vpow2.f32 %v1884_v63  ;;  %v7521_v51 = vpop.xlane.xlu1 %1211  ;;  %v1852_v63 = vsub.f32 %v7340_v42, %v1827_v13 }
 0x49d   : > { %1908 = vadd.xlane.f32.xlu1 %v7511_v54  ;;  %6214 = vpow2.f32 %v1888_v28  ;;  %v1868_v54 = vmul.f32 1.442695, %v1849_v11 }
 0x49e   : > { %v1835_v10 = vpop.xlane.xlu0 %1834  ;;  %v1874_v43 = vmul.f32 1.442695, %v1852_v63 }
 0x49f   : > { %v1856_v44 = vsub.f32 %v7392_v34, %v1835_v10 }
 0x4a0   : > { %v1845_v46 = vpop.xlane.xlu1 %1844 }
 0x4a1   : > { %1912 = vadd.xlane.f32.xlu1 %v7514_v31  ;;  %v1882_v42 = vmul.f32 1.442695, %v1856_v44  ;;  %v1861_v13 = vsub.f32 %v7395_v32, %v1845_v46  ;;  %v1221_v44 = vsub.f32 %v7268_v39, %v7467_v14  ;;  %v1227_v39 = vsub.f32 %v7332_v33, %v7489_v41 }
 0x4a2   : > { %v7517_v18 = vpop.xlane.xlu0 %1213 }
 0x4a6   : > { %v1839_v50 = vpop.xlane.xlu0 %1838 }
 0x4a7   : > { %v1858_v55 = vsub.f32 %v7409_v20, %v1839_v50 }
 0x4a8   : > { %v7524_v29 = vpop.eup %6210 }
 0x4a9   : > { %v1886_v0 = vmul.f32 1.442695, %v1858_v55  ;;  %1910 = vadd.xlane.f32.xlu1 %v7524_v29  ;;  %v7530_v28 = vpop.eup %6212 }
 0x4aa   : > { %v7528_v31 = vpop.xlane.xlu0 %1217  ;;  %v7535_v50 = vpop.eup %6214 }
 0x4ab   : > { %6216 = vpow2.f32 %v1886_v0  ;;  %v1220_v0 = vsub.f32 %v7249_v22, %v7462_v47  ;;  %v1222_v22 = vsub.f32 %v7282_v49, %v7471_v19  ;;  %v1226_v19 = vsub.f32 %v7324_v16, %v7486_v35  ;;  %v9099_v35 = vld [vmem:[#allocation15_spill] sm:$0xff] }
 0x4ac   : > { %6218 = vpow2.f32 %v1868_v54  ;;  %v1892_v54 = vmul.f32 1.442695, %v1861_v13 }
 0x4ad   : > { %1916 = vadd.xlane.f32.xlu1 %v7530_v28  ;;  %6220 = vpow2.f32 %v1874_v43  ;;  %v1237_v43 = vmul.f32 1.442695, %v1220_v0  ;;  %v1241_v14 = vmul.f32 1.442695, %v1222_v22 }
 0x4ae   : > { %v1843_v20 = vpop.xlane.xlu0 %1842 }
 0x4af   : > { %v1860_v11 = vsub.f32 %v7419_v26, %v1843_v20  ;;  %v1239_v20 = vmul.f32 1.442695, %v1221_v44 }
 0x4b1   : > { %v1890_v55 = vmul.f32 1.442695, %v1860_v11  ;;  %1920 = vadd.xlane.f32.xlu1 %v7535_v50  ;;  %v1223_v11 = vsub.f32 %v7288_v23, %v7473_v59  ;;  %v1224_v23 = vsub.f32 %v7302_v58, %v7477_v24  ;;  %v1231_v59 = vsub.f32 %v7384_v40, %v7521_v51  ;;  %v7604_v24 = vpop.xlane.xlu1 %1215 }
 0x4b2   : > { %v1230_v51 = vsub.f32 %v9099_v35, %v7506_v1  ;;  %v9108_v35 = vld [vmem:[#allocation9_spill] sm:$0xff] }
 0x4b3   : > { %6222 = vpow2.f32 %v1890_v55  ;;  %v1243_v13 = vmul.f32 1.442695, %v1223_v11  ;;  %v1225_v55 = vsub.f32 %v7308_v61, %v7481_v57  ;;  %v1245_v49 = vmul.f32 1.442695, %v1224_v23  ;;  %v9098_v57 = vld [vmem:[#allocation13_spill] sm:$0xff] }
 0x4b4   : > { %6224 = vpow2.f32 %v1882_v42  ;;  %v1219_v42 = vsub.f32 %v7254_v30, %v7464_v21  ;;  %v1251_v30 = vmul.f32 1.442695, %v1227_v39  ;;  %v1229_v21 = vsub.f32 %v7360_v53, %v7498_v52 }
 0x4b5   : > { %6226 = vpow2.f32 %v1892_v54  ;;  %v1247_v47 = vmul.f32 1.442695, %v1225_v55  ;;  %v1249_v53 = vmul.f32 1.442695, %v1226_v19  ;;  %v1228_v41 = vsub.f32 %v9098_v57, %v7494_v56 }
 0x4b6   : > { %6228 = vpow2.f32 %v1237_v43  ;;  %v1235_v54 = vmul.f32 1.442695, %v1219_v42  ;;  %v1255_v33 = vmul.f32 1.442695, %v1229_v21  ;;  %v1259_v52 = vmul.f32 1.442695, %v1231_v59 }
 0x4b7   : > { %6230 = vpow2.f32 %v1239_v20  ;;  %v1253_v40 = vmul.f32 1.442695, %v1228_v41  ;;  %v1257_v20 = vmul.f32 1.442695, %v1230_v51  ;;  %v1232_v11 = vsub.f32 %v7398_v48, %v7517_v18  ;;  %v9100_v59 = vld [vmem:[#allocation7_spill] sm:$0xff]  ;;  %v9104_v41 = vld [vmem:[#allocation20_spill] sm:$0xff] }
 0x4b8   : > { %v7539_v63 = vpop.eup %6216  ;;  %6232 = vpow2.f32 %v1243_v13  ;;  %v1234_v55 = vsub.f32 %v7416_v36, %v7528_v31 }
 0x4b9   : > { %v7541_v34 = vpop.eup %6218  ;;  %1918 = vadd.xlane.f32.xlu1 %v7539_v63  ;;  %6234 = vpow2.f32 %v1235_v54  ;;  %v1261_v13 = vmul.f32 1.442695, %v1232_v11  ;;  %v9110_v11 = vld [vmem:[#allocation22_spill] sm:$0xff] }
 0x4ba   : > { %1900 = vadd.xlane.f32.xlu0 %v7541_v34  ;;  %v7545_v26 = vpop.eup %6220  ;;  %6236 = vpow2.f32 %v1247_v47  ;;  %v1265_v48 = vmul.f32 1.442695, %v1234_v55  ;;  %v9111_v55 = vld [vmem:[#allocation18_spill] sm:$0xff] }
 0x4bb   : > { %6238 = vpow2.f32 %v1241_v14 }
 0x4bc   : > { %6240 = vpow2.f32 %v1251_v30 }
 0x4bd   : > { %6242 = vpow2.f32 %v1245_v49 }
 0x4be   : > { %1906 = vadd.xlane.f32.xlu0 %v7545_v26  ;;  %6244 = vpow2.f32 %v1255_v33 }
 0x4bf   : > { %6246 = vpow2.f32 %v1249_v53  ;;  %v9103_v53 = vld [vmem:[#allocation4_spill] sm:$0xff] }
 0x4c0   : > { %v7548_v32 = vpop.eup %6222  ;;  %6248 = vpow2.f32 %v1259_v52  ;;  %v9106_v52 = vld [vmem:[#allocation21_spill] sm:$0xff] }
 0x4c1   : > { %v7550_v46 = vpop.eup %6224  ;;  %1922 = vadd.xlane.f32.xlu1 %v7548_v32 }
 0x4c2   : > { %1914 = vadd.xlane.f32.xlu0 %v7550_v46  ;;  %v7554_v10 = vpop.eup %6226 }
 0x4c3   : > { %v7595_v61 = vpop.eup %6228 }
 0x4c4   : > { %v7602_v58 = vpop.eup %6230 }
 0x4c5   : > { %v7609_v0 = vpop.eup %6232  ;;  %v1897_v16 = vpop.xlane.xlu1 %1896 }
 0x4c6   : > { %1924 = vadd.xlane.f32.xlu0 %v7554_v10  ;;  %v7614_v43 = vpop.eup %6234  ;;  %6250 = vrcp.f32 %v1897_v16  ;;  %v9107_v16 = vld [vmem:[#allocation2_spill] sm:$0xff] }
 0x4c7   : > { %v7616_v44 = vpop.eup %6236 }
 0x4c8   : > { %v7622_v42 = vpop.eup %6238 }
 0x4c9   : > { %v7624_v1 = vpop.eup %6240  ;;  %v7634_v47 = vpop.permute.xlu1 %2468 }
 0x4ca   : > { %v7630_v54 = vpop.eup %6242 }
 0x4cb   : > { %v7632_v22 = vpop.eup %6244 }
 0x4cc   : > { %v7638_v18 = vpop.eup %6246 }
 0x4cd   : > { %v7640_v39 = vpop.eup %6248 }
 0x4d2   : > { %2470 = vrot.lane.b32.xlu1 %v6884_v3, %s6530_s22 }
 0x4d3   : > { %v6251_v36 = vpop.eup %6250 }
 0x4d4   : > { %v1943_v21 = vmul.f32 %v6251_v36, %v7435_v62  ;;  %v9112_v36 = vld [vmem:[#allocation10_spill] sm:$0xff] }
 0x4d6   : > { %2472 = vrot.lane.b32.xlu1 %v6882_v2, %s6530_s22 }
 0x4da   : > { %2474 = vrot.lane.b32.xlu1 %v6888_v5, %s6530_s22 }
 0x4dc   : > { %2480 = vrot.lane.b32.xlu0 %v6890_v6, %s6530_s22 }
 0x4de   : > { %2476 = vrot.lane.b32.xlu1 %v6886_v4, %s6530_s22 }
 0x4e0   : > { %2484 = vrot.lane.b32.xlu0 %v6894_v8, %s6530_s22 }
 0x4e2   : > { %2478 = vrot.lane.b32.xlu1 %v6892_v7, %s6530_s22 }
 0x4e4   : > { %2488 = vrot.lane.b32.xlu0 %v6900_v9, %s6530_s22 }
 0x4e6   : > { %2482 = vrot.lane.b32.xlu1 %v6898_v45, %s6530_s22 }
 0x4ea   : > { %2486 = vrot.lane.b32.xlu1 %v6906_v12, %s6530_s22  ;;  %s6531_s22 = smov 48  }
 0x503   : > { %1269 = vadd.xlane.f32.xlu0 %v7595_v61 }
 0x507   : > { %1271 = vadd.xlane.f32.xlu0 %v7602_v58 }
 0x50b   : > { %1275 = vadd.xlane.f32.xlu0 %v7609_v0 }
 0x50e   : > { %1267 = vadd.xlane.f32.xlu1 %v7614_v43  ;;  %v1895_v56 = vpop.xlane.xlu0 %1894 }
 0x50f   : > { %6252 = vrcp.f32 %v1895_v56  ;;  %1279 = vadd.xlane.f32.xlu0 %v7616_v44  ;;  %v9109_v56 = vld [vmem:[#allocation5_spill] sm:$0xff] }
 0x510   : > { %6254 = vpow2.f32 %v1253_v40 }
 0x511   : > { %6256 = vpow2.f32 %v1257_v20 }
 0x512   : > { %1273 = vadd.xlane.f32.xlu1 %v7622_v42  ;;  %6258 = vpow2.f32 %v1261_v13  ;;  %v7701_v51 = vpop.permute.xlu0 %2466 }
 0x513   : > { %1283 = vadd.xlane.f32.xlu0 %v7624_v1 }
 0x516   : > { %1277 = vadd.xlane.f32.xlu1 %v7630_v54 }
 0x517   : > { %1287 = vadd.xlane.f32.xlu0 %v7632_v22 }
 0x51a   : > { %v1899_v14 = vpop.xlane.xlu1 %1898  ;;  %1281 = vadd.xlane.f32.xlu1 %v7638_v18 }
 0x51b   : > { %6260 = vrcp.f32 %v1899_v14  ;;  %1291 = vadd.xlane.f32.xlu0 %v7640_v39 }
 0x51c   : > { %v6253_v31 = vpop.eup %6252  ;;  %6262 = vpow2.f32 %v1265_v48  ;;  %v1233_v48 = vsub.f32 %v9111_v55, %v7604_v24 }
 0x51d   : > { %v7644_v23 = vpop.eup %6254  ;;  %v1942_v30 = vmul.f32 %v6253_v31, %v7479_v60 }
 0x51e   : > { %1285 = vadd.xlane.f32.xlu1 %v7644_v23  ;;  %v7649_v49 = vpop.eup %6256  ;;  %v1905_v33 = vpop.xlane.xlu1 %1904 }
 0x51f   : > { %5669 = vmatprep.mubr.f32.mxu1 %v1942_v30  ;;  %v7656_v19 = vpop.eup %6258  ;;  %v1263_v30 = vmul.f32 1.442695, %v1233_v48 }
 0x520   : > { %5670 = vmatmul.mubr.f32.vlgmr.msra.gmra.mxu1 %v1943_v21  ;;  %v9113_v21 = vld [vmem:[#allocation23_spill] sm:$0xff] }
 0x521   : > { %5750 = vmatpush3.xpose.msk.msra.mxu1 %vm977_vm1, %v7432_v25 }
 0x522   : > { %5751 = vmatprep.subr.msk.mxu1 %vm977_vm1, %v7421_v27  ;;  %1289 = vadd.xlane.f32.xlu1 %v7649_v49 }
 0x525   : > { %5752 = vmatpush3.xpose.msk.msra.mxu1 %vm977_vm1, %v7421_v27  ;;  %v1903_v27 = vpop.xlane.xlu1 %1902 }
 0x526   : > { %5753 = vmatprep.subr.msk.mxu1 %vm977_vm1, %v7444_v15  ;;  %1293 = vadd.xlane.f32.xlu1 %v7656_v19  ;;  %6264 = vrcp.f32 %v1903_v27 }
 0x528   : > { %v6261_v62 = vpop.eup %6260 }
 0x529   : > { %v7663_v60 = vpop.eup %6262  ;;  %5754 = vmatpush3.xpose.msk.msra.mxu1 %vm977_vm1, %v7444_v15  ;;  %v1944_v25 = vmul.f32 %v6261_v62, %v7491_v17  ;;  %v9101_v15 = vld [vmem:[#allocation3_spill] sm:$0xff]  ;;  %v9102_v17 = vld [vmem:[#allocation8_spill] sm:$0xff]  ;;  %v1909_v57 = vpop.xlane.xlu1 %1908 }
 0x52a   : > { %5755 = vmatprep.subr.msk.mxu1 %vm977_vm1, %v9100_v59  ;;  %1297 = vadd.xlane.f32.xlu1 %v7663_v60 }
 0x52b   : > { %5672 = vmatprep.mubr.f32.mxu1 %v1944_v25  ;;  %v9114_v25 = vld [vmem:[#allocation11_spill] sm:$0xff] }
 0x52d   : > { %5756 = vmatpush3.xpose.msk.msra.mxu1 %vm977_vm1, %v9100_v59  ;;  %v1913_v40 = vpop.xlane.xlu1 %1912 }
 0x52e   : > { %5757 = vmatprep.subr.msk.mxu1 %vm977_vm1, %v7446_v38 }
 0x531   : > { %5758 = vmatpush3.xpose.msk.msra.mxu1 %vm977_vm1, %v7446_v38  ;;  %2876 = vrot.lane.b32.xlu0 %v9101_v15, %s6531_s22  ;;  %v9105_v38 = vld [vmem:[#allocation6_spill] sm:$0xff] }
 0x532   : > { %5759 = vmatprep.subr.msk.mxu1 %vm977_vm1, %v9102_v17  ;;  %v1911_v20 = vpop.xlane.xlu1 %1910 }
 0x535   : > { %5760 = vmatpush3.xpose.msk.msra.mxu1 %vm977_vm1, %v9102_v17  ;;  %2882 = vrot.lane.b32.xlu0 %v9103_v53, %s6531_s22  ;;  %v9115_v17 = vld [vmem:[#allocation24_spill] sm:$0xff] }
 0x536   : > { %5761 = vmatprep.subr.msk.mxu1 %vm977_vm1, %v9104_v41  ;;  %v1917_v14 = vpop.xlane.xlu1 %1916 }
 0x539   : > { %5762 = vmatpush3.xpose.msk.msra.mxu1 %vm977_vm1, %v9104_v41  ;;  %2886 = vrot.lane.b32.xlu0 %v9105_v38, %s6531_s22 }
 0x53a   : > { %5763 = vmatprep.subr.msk.mxu1 %vm977_vm1, %v9106_v52  ;;  %v1921_v24 = vpop.xlane.xlu1 %1920 }
 0x53b   : > { %2878 = vrot.lane.b32.xlu1 %v9107_v16, %s6531_s22 }
 0x53d   : > { %5764 = vmatpush3.xpose.msk.msra.mxu1 %vm977_vm1, %v9106_v52  ;;  %2890 = vrot.lane.b32.xlu0 %v6882_v2, %s6531_s22  ;;  %v9116_v52 = vld [vmem:[#allocation27_spill] sm:$0xff] }
 0x53e   : > { %5765 = vmatprep.subr.msk.mxu1 %vm977_vm1, %v9108_v35 }
 0x53f   : > { %2880 = vrot.lane.b32.xlu1 %v9109_v56, %s6531_s22 }
 0x541   : > { %5766 = vmatpush3.xpose.msk.msra.mxu1 %vm977_vm1, %v9108_v35 }
 0x542   : > { %5767 = vmatprep.subr.msk.mxu1 %vm977_vm1, %v9110_v11  ;;  %v1919_v59 = vpop.xlane.xlu1 %1918 }
 0x543   : > { %2884 = vrot.lane.b32.xlu1 %v6880_v37, %s6531_s22  ;;  %v1901_v13 = vpop.xlane.xlu0 %1900 }
 0x544   : > { %6266 = vrcp.f32 %v1901_v13  ;;  %v9118_v13 = vld [vmem:[#allocation26_spill] sm:$0xff] }
 0x545   : > { %5768 = vmatpush3.xpose.msk.msra.mxu1 %vm977_vm1, %v9110_v11  ;;  %6268 = vrcp.f32 %v1905_v33  ;;  %v6265_v33 = vpop.eup %6264  ;;  %v9117_v11 = vld [vmem:[#allocation12_spill] sm:$0xff] }
 0x546   : > { %5769 = vmatprep.subr.msk.mxu1 %vm977_vm1, %v9112_v36 }
 0x547   : > { %2888 = vrot.lane.b32.xlu1 %v6884_v3, %s6531_s22  ;;  %v1907_v31 = vpop.xlane.xlu0 %1906 }
 0x548   : > { %6270 = vrcp.f32 %v1907_v31 }
 0x549   : > { %5770 = vmatpush3.xpose.msk.msra.mxu1 %vm977_vm1, %v9112_v36  ;;  %6272 = vrcp.f32 %v1909_v57 }
 0x54a   : > { %5771 = vmatprep.subr.msk.mxu1 %vm977_vm1, %v9113_v21  ;;  %6274 = vrcp.f32 %v1911_v20  ;;  %v1923_v35 = vpop.xlane.xlu1 %1922 }
 0x54b   : > { %2892 = vrot.lane.b32.xlu1 %v6888_v5, %s6531_s22  ;;  %v1915_v62 = vpop.xlane.xlu0 %1914  ;;  %6276 = vpow2.f32 %v1263_v30  ;;  %v9119_v30 = vld [vmem:[#allocation25_spill] sm:$0xff] }
 0x54c   : > { %6278 = vrcp.f32 %v1913_v40  ;;  %v1946_v40 = vmul.f32 %v6265_v33, %v9116_v52  ;;  %v9121_v33 = vld [vmem:[#allocation29_spill] sm:$0xff] }
 0x54d   : > { %5772 = vmatpush3.xpose.msk.msra.mxu1 %vm977_vm1, %v9113_v21  ;;  %6280 = vrcp.f32 %v1915_v62  ;;  %v9120_v21 = vld [vmem:[#allocation28_spill] sm:$0xff] }
 0x54e   : > { %5773 = vmatprep.subr.msk.mxu1 %vm977_vm1, %v9114_v25  ;;  %6282 = vrcp.f32 %v1917_v14 }
 0x54f   : > { %2896 = vrot.lane.b32.xlu1 %v6892_v7, %s6531_s22  ;;  %6284 = vrcp.f32 %v1919_v59  ;;  %v1925_v14 = vpop.xlane.xlu0 %1924 }
 0x550   : > { %6286 = vrcp.f32 %v1921_v24 }
 0x551   : > { %v6267_v27 = vpop.eup %6266  ;;  %5774 = vmatpush3.xpose.msk.msra.mxu1 %vm977_vm1, %v9114_v25  ;;  %6288 = vrcp.f32 %v1923_v35  ;;  %v2471_v35 = vpop.permute.xlu1 %2470 }
 0x552   : > { %5775 = vmatprep.subr.msk.mxu1 %vm977_vm1, %v9115_v17  ;;  %v1945_v57 = vmul.f32 %v6267_v27, %v7541_v34  ;;  %v6269_v41 = vpop.eup %6268  ;;  %6290 = vrcp.f32 %v1925_v14 }
 0x553   : > { %2900 = vrot.lane.b32.xlu1 %v6898_v45, %s6531_s22  ;;  %v1947_v34 = vmul.f32 %v6269_v41, %v9118_v13 }
 0x554   : > { %5673 = vmatmul.mubr.f32.gmra.mxu1 %v1945_v57 }
 0x555   : > { %v6271_v20 = vpop.eup %6270  ;;  %5776 = vmatpush3.xpose.msk.msra.mxu1 %vm977_vm1, %v9115_v17  ;;  %5675 = vmatprep.mubr.f32.mxu1 %v1946_v40 }
 0x556   : > { %5777 = vmatprep.subr.msk.mxu1 %vm977_vm1, %v9117_v11  ;;  %v1948_v55 = vmul.f32 %v6271_v20, %v7545_v26  ;;  %v6273_v48 = vpop.eup %6272 }
 0x557   : > { %2904 = vrot.lane.b32.xlu1 %v6906_v12, %s6531_s22  ;;  %v6275_v36 = vpop.eup %6274  ;;  %v1949_v26 = vmul.f32 %v6273_v48, %v9120_v21  ;;  %v7800_v48 = vld [vmem:[%s9029_s5 + $0x10] sm:$0xff] }
 0x558   : > { %5676 = vmatmul.mubr.f32.gmra.mxu1 %v1947_v34  ;;  %v7749_v31 = vpop.eup %6276  ;;  %v1950_v62 = vmul.f32 %v6275_v36, %v7524_v29  ;;  %v9123_v34 = vld [vmem:[#allocation16_spill] sm:$0xff]  ;;  %5805 = vmatprep.subr.mxu0 %v7800_v48 }
 0x559   : > { %5778 = vmatpush3.xpose.msk.msra.mxu1 %vm977_vm1, %v9117_v11  ;;  %5678 = vmatprep.mubr.f32.mxu1 %v1948_v55  ;;  %v6279_v24 = vpop.eup %6278 }
 0x55a   : > { %5779 = vmatprep.subr.msk.mxu1 %vm977_vm1, %v9119_v30  ;;  %v6281_v25 = vpop.eup %6280  ;;  %v1951_v59 = vmul.f32 %v6279_v24, %v9121_v33 }
 0x55b   : > { %3308 = vrot.lane.b32.xlu1 %v6900_v9, %s6532_s20  ;;  %v6283_v27 = vpop.eup %6282  ;;  %v1952_v17 = vmul.f32 %v6281_v25, %v7550_v46 }
 0x55c   : > { %1295 = vadd.xlane.f32.xlu0 %v7749_v31  ;;  %5679 = vmatmul.mubr.f32.gmra.mxu1 %v1949_v26  ;;  %v6285_v57 = vpop.eup %6284  ;;  %v1953_v29 = vmul.f32 %v6283_v27, %v7530_v28  ;;  %v2473_v28 = vpop.permute.xlu1 %2472 }
 0x55d   : > { %5780 = vmatpush3.xpose.msk.msra.mxu1 %vm977_vm1, %v9119_v30  ;;  %5681 = vmatprep.mubr.f32.mxu1 %v1950_v62  ;;  %v6287_v41 = vpop.eup %6286  ;;  %v1954_v52 = vmul.f32 %v6285_v57, %v7539_v63  ;;  %v9122_v63 = vld [vmem:[#allocation14_spill] sm:$0xff] }
 0x55e   : > { %v6289_v40 = vpop.eup %6288  ;;  %v1955_v20 = vmul.f32 %v6287_v41, %v7535_v50 }
 0x55f   : > { %3304 = vrot.lane.b32.xlu1 %v6894_v8, %s6532_s20  ;;  %v6291_v11 = vpop.eup %6290  ;;  %v1956_v46 = vmul.f32 %v6289_v40, %v7548_v32  ;;  %v9124_v32 = vld [vmem:[#allocation17_spill] sm:$0xff] }
 0x560   : > { %5682 = vmatmul.mubr.f32.gmra.mxu1 %v1951_v59  ;;  %v1957_v13 = vmul.f32 %v6291_v11, %v7554_v10  ;;  %v2475_v50 = vpop.permute.xlu1 %2474  ;;  %v9125_v10 = vld [vmem:[#allocation19_spill] sm:$0xff] }
 0x561   : > { %5684 = vmatprep.mubr.f32.mxu1 %v1952_v17 }
 0x563   : > { %3300 = vrot.lane.b32.xlu1 %v6890_v6, %s6532_s20 }
 0x564   : > { %5685 = vmatmul.mubr.f32.gmra.mxu1 %v1953_v29  ;;  %v2477_v55 = vpop.permute.xlu1 %2476 }
 0x565   : > { %5687 = vmatprep.mubr.f32.mxu1 %v1954_v52 }
 0x567   : > { %3296 = vrot.lane.b32.xlu1 %v6886_v4, %s6532_s20 }
 0x568   : > { %5688 = vmatmul.mubr.f32.gmra.mxu1 %v1955_v20  ;;  %v2479_v14 = vpop.permute.xlu1 %2478 }
 0x569   : > { %5690 = vmatprep.mubr.f32.mxu1 %v1956_v46 }
 0x56b   : > { %3292 = vrot.lane.b32.xlu1 %v6882_v2, %s6532_s20 }
 0x56c   : > { %5691 = vmatmul.mubr.f32.gmra.mxu1 %v1957_v13  ;;  %v2483_v36 = vpop.permute.xlu1 %2482 }
 0x56d   : > { %5781 = vmatprep.mubr.msk.f32.mxu1 %vm977_vm1, %v9122_v63 }
 0x56f   : > { %3288 = vrot.lane.b32.xlu1 %v9105_v38, %s6532_s20 }
 0x570   : > { %5782 = vmatmul.mubr.msk.f32.vlgmr.msra.gmra.mxu1 %vm977_vm1, %v9123_v34  ;;  %v2487_v21 = vpop.permute.xlu1 %2486 }
 0x571   : > { %5784 = vmatprep.mubr.msk.f32.mxu1 %vm977_vm1, %v9124_v32 }
 0x572   : > { %2894 = vrot.lane.b32.xlu0 %v6886_v4, %s6531_s22 }
 0x573   : > { %3282 = vrot.lane.b32.xlu1 %v9109_v56, %s6532_s20 }
 0x574   : > { %5785 = vmatmul.mubr.msk.f32.gmra.mxu1 %vm977_vm1, %v9125_v10 }
 0x575   : > { %5787 = vmatprep.mubr.msk.f32.mxu1 %vm977_vm1, %v7701_v51  ;;  %v2481_v51 = vpop.permute.xlu0 %2480 }
 0x576   : > { %2898 = vrot.lane.b32.xlu0 %v6890_v6, %s6531_s22 }
 0x577   : > { %3278 = vrot.lane.b32.xlu1 %v9101_v15, %s6532_s20 }
 0x578   : > { %5788 = vmatmul.mubr.msk.f32.gmra.mxu1 %vm977_vm1, %v7634_v47 }
 0x579   : > { %5790 = vmatprep.mubr.msk.f32.mxu1 %vm977_vm1, %v2471_v35  ;;  %v2485_v47 = vpop.permute.xlu0 %2484 }
 0x57a   : > { %2902 = vrot.lane.b32.xlu0 %v6894_v8, %s6531_s22 }
 0x57b   : > { %3248 = vrot.lane.b32.xlu1 %v9107_v16, %s6533_s24 }
 0x57c   : > { %5791 = vmatmul.mubr.msk.f32.gmra.mxu1 %vm977_vm1, %v2473_v28 }
 0x57d   : > { %5793 = vmatprep.mubr.msk.f32.mxu1 %vm977_vm1, %v2475_v50  ;;  %v2489_v30 = vpop.permute.xlu0 %2488 }
 0x57e   : > { %2906 = vrot.lane.b32.xlu0 %v6900_v9, %s6531_s22 }
 0x57f   : > { %3258 = vrot.lane.b32.xlu1 %v6884_v3, %s6533_s24 }
 0x580   : > { %5794 = vmatmul.mubr.msk.f32.gmra.mxu1 %vm977_vm1, %v2477_v55 }
 0x581   : > { %5796 = vmatprep.mubr.msk.f32.mxu1 %vm977_vm1, %v2479_v14 }
 0x582   : > { %3306 = vrot.lane.b32.xlu0 %v6906_v12, %s6532_s20 }
 0x583   : > { %3262 = vrot.lane.b32.xlu1 %v6888_v5, %s6533_s24 }
 0x584   : > { %5797 = vmatmul.mubr.msk.f32.gmra.mxu1 %vm977_vm1, %v2481_v51 }
 0x585   : > { %5799 = vmatprep.mubr.msk.f32.mxu1 %vm977_vm1, %v2483_v36 }
 0x586   : > { %3302 = vrot.lane.b32.xlu0 %v6898_v45, %s6532_s20 }
 0x587   : > { %3266 = vrot.lane.b32.xlu1 %v6892_v7, %s6533_s24 }
 0x588   : > { %5800 = vmatmul.mubr.msk.f32.gmra.mxu1 %vm977_vm1, %v2485_v47 }
 0x589   : > { %5802 = vmatprep.mubr.msk.f32.mxu1 %vm977_vm1, %v2487_v21 }
 0x58a   : > { %3298 = vrot.lane.b32.xlu0 %v6892_v7, %s6532_s20 }
 0x58b   : > { %3270 = vrot.lane.b32.xlu1 %v6898_v45, %s6533_s24 }
 0x58c   : > { %5803 = vmatmul.mubr.msk.f32.gmra.mxu1 %vm977_vm1, %v2489_v30  ;;  %v1270_v26 = vpop.xlane.xlu0 %1269 }
 0x58d   : > { %6292 = vrcp.f32 %v1270_v26 }
 0x58e   : > { %3294 = vrot.lane.b32.xlu0 %v6888_v5, %s6532_s20 }
 0x590   : > { %v1272_v24 = vpop.xlane.xlu0 %1271 }
 0x591   : > { %6294 = vrcp.f32 %v1272_v24 }
 0x592   : > { %3290 = vrot.lane.b32.xlu0 %v6884_v3, %s6532_s20 }
 0x594   : > { %v1276_v62 = vpop.xlane.xlu0 %1275 }
 0x596   : > { %3286 = vrot.lane.b32.xlu0 %v6880_v37, %s6532_s20 }
 0x597   : > { %v1268_v25 = vpop.xlane.xlu1 %1267 }
 0x598   : > { %6296 = vrcp.f32 %v1268_v25  ;;  %v1280_v33 = vpop.xlane.xlu0 %1279 }
 0x599   : > { %6298 = vrcp.f32 %v1276_v62 }
 0x59a   : > { %3284 = vrot.lane.b32.xlu0 %v9103_v53, %s6532_s20  ;;  %v6293_v29 = vpop.eup %6292 }
 0x59b   : > { %v1274_v59 = vpop.xlane.xlu1 %1273  ;;  %v1316_v11 = vmul.f32 %v6293_v29, %v7595_v61 }
 0x59c   : > { %6300 = vrcp.f32 %v1274_v59  ;;  %v1284_v27 = vpop.xlane.xlu0 %1283 }
 0x59d   : > { %6302 = vrcp.f32 %v1280_v33 }
 0x59e   : > { %3280 = vrot.lane.b32.xlu0 %v9107_v16, %s6532_s20  ;;  %v6295_v52 = vpop.eup %6294 }
 0x59f   : > { %v1278_v17 = vpop.xlane.xlu1 %1277  ;;  %v1317_v13 = vmul.f32 %v6295_v52, %v7602_v58 }
 0x5a0   : > { %6304 = vrcp.f32 %v1278_v17  ;;  %v1288_v57 = vpop.xlane.xlu0 %1287 }
 0x5a1   : > { %6306 = vrcp.f32 %v1284_v27 }
 0x5a2   : > { %3246 = vrot.lane.b32.xlu0 %v9101_v15, %s6533_s24 }
 0x5a3   : > { %v1282_v41 = vpop.xlane.xlu1 %1281 }
 0x5a4   : > { %6308 = vrcp.f32 %v1282_v41  ;;  %v1292_v28 = vpop.xlane.xlu0 %1291 }
 0x5a5   : > { %v6297_v40 = vpop.eup %6296  ;;  %6310 = vrcp.f32 %v1288_v57 }
 0x5a6   : > { %3250 = vrot.lane.b32.xlu0 %v9109_v56, %s6533_s24  ;;  %v1315_v35 = vmul.f32 %v6297_v40, %v7614_v43  ;;  %v6299_v46 = vpop.eup %6298 }
 0x5a7   : > { %v1286_v20 = vpop.xlane.xlu1 %1285  ;;  %v1319_v61 = vmul.f32 %v6299_v46, %v7609_v0 }
 0x5a8   : > { %6312 = vrcp.f32 %v1286_v20  ;;  %5725 = vmatprep.mubr.f32.mxu0 %v1315_v35  ;;  %v2877_v27 = vpop.permute.xlu0 %2876 }
 0x5a9   : > { %v6301_v63 = vpop.eup %6300  ;;  %5726 = vmatmul.mubr.f32.vlgmr.msra.gmra.mxu0 %v1316_v11  ;;  %6314 = vrcp.f32 %v1292_v28 }
 0x5aa   : > { %3252 = vrot.lane.b32.xlu0 %v9103_v53, %s6533_s24  ;;  %5728 = vmatprep.mubr.f32.mxu0 %v1317_v13  ;;  %v1318_v50 = vmul.f32 %v6301_v63, %v7622_v42  ;;  %v6303_v34 = vpop.eup %6302 }
 0x5ab   : > { %v1290_v43 = vpop.xlane.xlu1 %1289  ;;  %5806 = vmatpush3.msra.mxu0 %v7800_v48  ;;  %v1321_v42 = vmul.f32 %v6303_v34, %v7616_v44 }
 0x5ac   : > { %6316 = vrcp.f32 %v1290_v43 }
 0x5ad   : > { %v6305_v32 = vpop.eup %6304  ;;  %5729 = vmatmul.mubr.f32.gmra.mxu0 %v1318_v50 }
 0x5ae   : > { %3254 = vrot.lane.b32.xlu0 %v6880_v37, %s6533_s24  ;;  %5731 = vmatprep.mubr.f32.mxu0 %v1319_v61  ;;  %v1320_v58 = vmul.f32 %v6305_v32, %v7630_v54  ;;  %v6307_v55 = vpop.eup %6306 }
 0x5af   : > { %v1294_v10 = vpop.xlane.xlu1 %1293  ;;  %v1323_v47 = vmul.f32 %v6307_v55, %v7624_v1 }
 0x5b0   : > { %6318 = vrcp.f32 %v1294_v10 }
 0x5b1   : > { %v6309_v51 = vpop.eup %6308  ;;  %5732 = vmatmul.mubr.f32.gmra.mxu0 %v1320_v58 }
 0x5b2   : > { %3256 = vrot.lane.b32.xlu0 %v9105_v38, %s6533_s24  ;;  %5734 = vmatprep.mubr.f32.mxu0 %v1321_v42  ;;  %v1322_v0 = vmul.f32 %v6309_v51, %v7638_v18  ;;  %v6311_v14 = vpop.eup %6310 }
 0x5b3   : > { %v1298_v48 = vpop.xlane.xlu1 %1297  ;;  %v1325_v21 = vmul.f32 %v6311_v14, %v7632_v22 }
 0x5b4   : > { %6320 = vrcp.f32 %v1298_v48 }
 0x5b5   : > { %v6313_v36 = vpop.eup %6312  ;;  %5735 = vmatmul.mubr.f32.gmra.mxu0 %v1322_v0 }
 0x5b6   : > { %3260 = vrot.lane.b32.xlu0 %v6882_v2, %s6533_s24  ;;  %5737 = vmatprep.mubr.f32.mxu0 %v1323_v47  ;;  %v1324_v44 = vmul.f32 %v6313_v36, %v7644_v23  ;;  %v6315_v30 = vpop.eup %6314 }
 0x5b7   : > { %v2879_v54 = vpop.permute.xlu1 %2878  ;;  %v1327_v24 = vmul.f32 %v6315_v30, %v7640_v39 }
 0x5b9   : > { %v6317_v26 = vpop.eup %6316  ;;  %5738 = vmatmul.mubr.f32.gmra.mxu0 %v1324_v44 }
 0x5ba   : > { %3264 = vrot.lane.b32.xlu0 %v6886_v4, %s6533_s24  ;;  %5740 = vmatprep.mubr.f32.mxu0 %v1325_v21  ;;  %v1326_v1 = vmul.f32 %v6317_v26, %v7649_v49  ;;  %v2883_v49 = vpop.permute.xlu0 %2882 }
 0x5bb   : > { %v2881_v18 = vpop.permute.xlu1 %2880 }
 0x5bd   : > { %v6319_v62 = vpop.eup %6318  ;;  %5741 = vmatmul.mubr.f32.gmra.mxu0 %v1326_v1 }
 0x5be   : > { %3268 = vrot.lane.b32.xlu0 %v6890_v6, %s6533_s24  ;;  %5743 = vmatprep.mubr.f32.mxu0 %v1327_v24  ;;  %v1328_v23 = vmul.f32 %v6319_v62, %v7656_v19  ;;  %v2887_v39 = vpop.permute.xlu0 %2886 }
 0x5bf   : > { %v2885_v22 = vpop.permute.xlu1 %2884 }
 0x5c1   : > { %5744 = vmatmul.mubr.f32.gmra.mxu0 %v1328_v23  ;;  %v6321_v20 = vpop.eup %6320 }
 0x5c2   : > { %v2891_v41 = vpop.permute.xlu0 %2890  ;;  %v1330_v13 = vmul.f32 %v6321_v20, %v7663_v60  ;;  %v7977_v20 = vld [vmem:[%s9025_s1 + $0x18] sm:$0xff] }
 0x5c3   : > { %v2889_v25 = vpop.permute.xlu1 %2888 }
 0x5c7   : > { %v2893_v33 = vpop.permute.xlu1 %2892 }
 0x5cb   : > { %v2897_v59 = vpop.permute.xlu1 %2896 }
 0x5cf   : > { %v2901_v17 = vpop.permute.xlu1 %2900 }
 0x5d3   : > { %v2905_v57 = vpop.permute.xlu1 %2904 }
 0x5d7   : > { %v3309_v29 = vpop.permute.xlu1 %3308 }
 0x5d8   : > { %5887 = vmatprep.subr.msk.mxu1 %vm977_vm1, %v3309_v29 }
 0x5d9   : > { %5888 = vmatpush3.xpose.msk.msra.mxu1 %vm977_vm1, %v3309_v29  ;;  %v7959_v29 = vld [vmem:[%s9025_s1 + $0x8] sm:$0xff] }
 0x5db   : > { %v3305_v50 = vpop.permute.xlu1 %3304 }
 0x5df   : > { %v3301_v43 = vpop.permute.xlu1 %3300 }
 0x5e0   : > { %v7900_v10 = vpop.f32.mrf.mxu1 }
 0x5e1   : > { %9126 = vst [vmem:[#allocation13_spill] sm:$0xff] %v7900_v10 }
 0x5e2   : > { %v7906_v42 = vpop.f32.mrf.mxu1 }
 0x5e3   : > { %v3297_v32 = vpop.permute.xlu1 %3296  ;;  %9127 = vst [vmem:[#allocation15_spill] sm:$0xff] %v7906_v42 }
 0x5e5   : > { %v1296_v52 = vpop.xlane.xlu0 %1295 }
 0x5e6   : > { %6322 = vrcp.f32 %v1296_v52 }
 0x5e7   : > { %v3293_v51 = vpop.permute.xlu1 %3292 }
 0x5e9   : > { %v2895_v19 = vpop.permute.xlu0 %2894 }
 0x5ed   : > { %v2899_v40 = vpop.permute.xlu0 %2898 }
 0x5f1   : > { %v2903_v35 = vpop.permute.xlu0 %2902 }
 0x5f3   : > { %v6323_v11 = vpop.eup %6322 }
 0x5f4   : > { %v1329_v46 = vmul.f32 %v6323_v11, %v7749_v31 }
 0x5f5   : > { %v2907_v28 = vpop.permute.xlu0 %2906 }
 0x5f6   : > { %5746 = vmatprep.mubr.f32.mxu0 %v1329_v46 }
 0x5f7   : > { %5747 = vmatmul.mubr.f32.gmra.mxu0 %v1330_v13 }
 0x5f8   : > { %5807 = vmatprep.mubr.msk.f32.mxu0 %vm977_vm1, %v2877_v27 }
 0x5f9   : > { %v3307_v63 = vpop.permute.xlu0 %3306 }
 0x5fa   : > { %5889 = vmatprep.subr.msk.mxu1 %vm977_vm1, %v3307_v63 }
 0x5fb   : > { %5808 = vmatmul.mubr.msk.f32.vlgmr.msra.gmra.mxu0 %vm977_vm1, %v2879_v54  ;;  %5890 = vmatpush3.xpose.msk.msra.mxu1 %vm977_vm1, %v3307_v63  ;;  %v3289_v54 = vpop.permute.xlu1 %3288 }
 0x5fc   : > { %5810 = vmatprep.mubr.msk.f32.mxu0 %vm977_vm1, %v2881_v18  ;;  %5891 = vmatprep.subr.msk.mxu1 %vm977_vm1, %v3305_v50 }
 0x5fd   : > { %v3303_v31 = vpop.permute.xlu0 %3302 }
 0x5ff   : > { %5811 = vmatmul.mubr.msk.f32.gmra.mxu0 %vm977_vm1, %v2883_v49  ;;  %5892 = vmatpush3.xpose.msk.msra.mxu1 %vm977_vm1, %v3305_v50  ;;  %v3283_v62 = vpop.permute.xlu1 %3282  ;;  %v7989_v50 = vld [vmem:[%s9025_s1 + $0x10] sm:$0xff] }
 0x600   : > { %5813 = vmatprep.mubr.msk.f32.mxu0 %vm977_vm1, %v2885_v22  ;;  %5893 = vmatprep.subr.msk.mxu1 %vm977_vm1, %v3303_v31 }
 0x601   : > { %v3299_v60 = vpop.permute.xlu0 %3298 }
 0x603   : > { %5814 = vmatmul.mubr.msk.f32.gmra.mxu0 %vm977_vm1, %v2887_v39  ;;  %5894 = vmatpush3.xpose.msk.msra.mxu1 %vm977_vm1, %v3303_v31 }
 0x604   : > { %5816 = vmatprep.mubr.msk.f32.mxu0 %vm977_vm1, %v2889_v25  ;;  %5895 = vmatprep.subr.msk.mxu1 %vm977_vm1, %v3301_v43 }
 0x605   : > { %v3295_v34 = vpop.permute.xlu0 %3294 }
 0x607   : > { %5817 = vmatmul.mubr.msk.f32.gmra.mxu0 %vm977_vm1, %v2891_v41  ;;  %5896 = vmatpush3.xpose.msk.msra.mxu1 %vm977_vm1, %v3301_v43  ;;  %v7998_v43 = vld [vmem:[%s9025_s1 + $0x20] sm:$0xff] }
 0x608   : > { %5819 = vmatprep.mubr.msk.f32.mxu0 %vm977_vm1, %v2893_v33  ;;  %5897 = vmatprep.subr.msk.mxu1 %vm977_vm1, %v3299_v60 }
 0x609   : > { %v3291_v61 = vpop.permute.xlu0 %3290 }
 0x60b   : > { %5820 = vmatmul.mubr.msk.f32.gmra.mxu0 %vm977_vm1, %v2895_v19  ;;  %5898 = vmatpush3.xpose.msk.msra.mxu1 %vm977_vm1, %v3299_v60  ;;  %v7967_v19 = vld [vmem:[%s9025_s1] sm:$0xff] }
 0x60c   : > { %5822 = vmatprep.mubr.msk.f32.mxu0 %vm977_vm1, %v2897_v59  ;;  %5899 = vmatprep.subr.msk.mxu1 %vm977_vm1, %v3297_v32  ;;  %v3279_v59 = vpop.permute.xlu1 %3278 }
 0x60d   : > { %v3287_v58 = vpop.permute.xlu0 %3286 }
 0x60f   : > { %5823 = vmatmul.mubr.msk.f32.gmra.mxu0 %vm977_vm1, %v2899_v40  ;;  %5900 = vmatpush3.xpose.msk.msra.mxu1 %vm977_vm1, %v3297_v32 }
 0x610   : > { %5825 = vmatprep.mubr.msk.f32.mxu0 %vm977_vm1, %v2901_v17  ;;  %5901 = vmatprep.subr.msk.mxu1 %vm977_vm1, %v3295_v34  ;;  %v3249_v41 = vpop.permute.xlu1 %3248 }
 0x611   : > { %v3285_v55 = vpop.permute.xlu0 %3284 }
 0x613   : > { %5826 = vmatmul.mubr.msk.f32.gmra.mxu0 %vm977_vm1, %v2903_v35  ;;  %5902 = vmatpush3.xpose.msk.msra.mxu1 %vm977_vm1, %v3295_v34 }
 0x614   : > { %v7910_v0 = vpop.f32.mrf.mxu1  ;;  %5828 = vmatprep.mubr.msk.f32.mxu0 %vm977_vm1, %v2905_v57  ;;  %5903 = vmatprep.subr.msk.mxu1 %vm977_vm1, %v3293_v51  ;;  %v3259_v13 = vpop.permute.xlu1 %3258 }
 0x615   : > { %9128 = vst [vmem:[#allocation7_spill] sm:$0xff] %v7910_v0  ;;  %v3281_v48 = vpop.permute.xlu0 %3280 }
 0x616   : > { %v7914_v14 = vpop.f32.mrf.mxu1 }
 0x617   : > { %9129 = vst [vmem:[#allocation3_spill] sm:$0xff] %v7914_v14  ;;  %5829 = vmatmul.mubr.msk.f32.gmra.mxu0 %vm977_vm1, %v2907_v28  ;;  %5904 = vmatpush3.xpose.msk.msra.mxu1 %vm977_vm1, %v3293_v51 }
 0x618   : > { %v7918_v47 = vpop.f32.mrf.mxu1  ;;  %5905 = vmatprep.subr.msk.mxu1 %vm977_vm1, %v3291_v61  ;;  %v3263_v51 = vpop.permute.xlu1 %3262 }
 0x619   : > { %9130 = vst [vmem:[#allocation8_spill] sm:$0xff] %v7918_v47  ;;  %v3247_v36 = vpop.permute.xlu0 %3246 }
 0x61a   : > { %v7921_v44 = vpop.f32.mrf.mxu1  ;;  %5919 = vmatprep.mubr.msk.f32.mxu1 %vm977_vm1, %v3247_v36 }
 0x61b   : > { %9131 = vst [vmem:[#allocation4_spill] sm:$0xff] %v7921_v44  ;;  %5906 = vmatpush3.xpose.msk.msra.mxu1 %vm977_vm1, %v3291_v61 }
 0x61c   : > { %v7925_v30 = vpop.f32.mrf.mxu1  ;;  %5907 = vmatprep.subr.msk.mxu1 %vm977_vm1, %v3289_v54 }
 0x61d   : > { %9132 = vst [vmem:[#allocation20_spill] sm:$0xff] %v7925_v30  ;;  %v3251_v24 = vpop.permute.xlu0 %3250 }
 0x61e   : > { %v7928_v21 = vpop.f32.mrf.mxu1 }
 0x61f   : > { %9133 = vst [vmem:[#allocation6_spill] sm:$0xff] %v7928_v21  ;;  %5908 = vmatpush3.xpose.msk.msra.mxu1 %vm977_vm1, %v3289_v54  ;;  %v8020_v54 = vld [vmem:[%s9025_s1 + $0x38] sm:$0xff] }
 0x620   : > { %v7931_v26 = vpop.f32.mrf.mxu1  ;;  %5909 = vmatprep.subr.msk.mxu1 %vm977_vm1, %v3287_v58 }
 0x621   : > { %9134 = vst [vmem:[#allocation21_spill] sm:$0xff] %v7931_v26  ;;  %v3253_v33 = vpop.permute.xlu0 %3252 }
 0x622   : > { %v7934_v1 = vpop.f32.mrf.mxu1 }
 0x623   : > { %9135 = vst [vmem:[#allocation2_spill] sm:$0xff] %v7934_v1  ;;  %5910 = vmatpush3.xpose.msk.msra.mxu1 %vm977_vm1, %v3287_v58  ;;  %v8008_v58 = vld [vmem:[%s9025_s1 + $0x28] sm:$0xff] }
 0x624   : > { %v7937_v18 = vpop.f32.mrf.mxu1  ;;  %5911 = vmatprep.subr.msk.mxu1 %vm977_vm1, %v3285_v55 }
 0x625   : > { %9136 = vst [vmem:[#allocation9_spill] sm:$0xff] %v7937_v18  ;;  %v3255_v49 = vpop.permute.xlu0 %3254 }
 0x626   : > { %v7940_v23 = vpop.f32.mrf.mxu1 }
 0x627   : > { %9137 = vst [vmem:[#allocation5_spill] sm:$0xff] %v7940_v23  ;;  %5912 = vmatpush3.xpose.msk.msra.mxu1 %vm977_vm1, %v3285_v55 }
 0x628   : > { %v7943_v22 = vpop.f32.mrf.mxu1  ;;  %5913 = vmatprep.subr.msk.mxu1 %vm977_vm1, %v3283_v62 }
 0x629   : > { %9138 = vst [vmem:[#allocation22_spill] sm:$0xff] %v7943_v22  ;;  %v3257_v28 = vpop.permute.xlu0 %3256 }
 0x62a   : > { %v7946_v25 = vpop.f32.mrf.mxu1 }
 0x62b   : > { %9139 = vst [vmem:[#allocation18_spill] sm:$0xff] %v7946_v25  ;;  %5914 = vmatpush3.xpose.msk.msra.mxu1 %vm977_vm1, %v3283_v62 }
 0x62c   : > { %v7949_v27 = vpop.f32.mrf.mxu1  ;;  %5915 = vmatprep.subr.msk.mxu1 %vm977_vm1, %v3281_v48 }
 0x62d   : > { %9140 = vst [vmem:[#allocation10_spill] sm:$0xff] %v7949_v27  ;;  %v3261_v32 = vpop.permute.xlu0 %3260  ;;  %v8111_v27 = vld [vmem:[%s9025_s1 + $0x78] sm:$0xff] }
 0x62e   : > { %v7952_v17 = vpop.f32.mrf.mxu1  ;;  %9144 = vst [vmem:[#allocation27_spill] sm:$0xff] %v8111_v27 }
 0x62f   : > { %9141 = vst [vmem:[#allocation23_spill] sm:$0xff] %v7952_v17  ;;  %5916 = vmatpush3.xpose.msk.msra.mxu1 %vm977_vm1, %v3281_v48  ;;  %v8102_v17 = vld [vmem:[%s9025_s1 + $0x68] sm:$0xff] }
 0x630   : > { %v5783_v57 = vpop.f32.mrf.mxu1  ;;  %5917 = vmatprep.subr.msk.mxu1 %vm977_vm1, %v3279_v59 }
 0x631   : > { %v7962_v39 = vadd.f32 %v7959_v29, %v5783_v57 }
 0x632   : > { %v2652_v52 = vpop.f32.mrf.mxu1 }
 0x633   : > { %v7970_v40 = vadd.f32 %v7967_v19, %v2652_v52  ;;  %2733 = vmax.xlane.f32.xlu1 %v7962_v39  ;;  %5918 = vmatpush3.xpose.msk.msra.mxu1 %vm977_vm1, %v3279_v59  ;;  %v3267_v59 = vpop.permute.xlu1 %3266 }
 0x634   : > { %v5786_v35 = vpop.f32.mrf.mxu1 }
 0x635   : > { %v7980_v11 = vadd.f32 %v7977_v20, %v5786_v35  ;;  %2731 = vmax.xlane.f32.xlu0 %v7970_v40 }
 0x636   : > { %v2662_v46 = vpop.f32.mrf.mxu1  ;;  %5920 = vmatmul.mubr.msk.f32.vlgmr.msra.gmra.mxu1 %vm977_vm1, %v3249_v41 }
 0x637   : > { %2737 = vmax.xlane.f32.xlu1 %v7980_v11  ;;  %5922 = vmatprep.mubr.msk.f32.mxu1 %vm977_vm1, %v3251_v24  ;;  %v7992_v31 = vadd.f32 %v7989_v50, %v2662_v46 }
 0x638   : > { %v5789_v63 = vpop.f32.mrf.mxu1 }
 0x639   : > { %v8011_v55 = vadd.f32 %v8008_v58, %v5789_v63  ;;  %v3271_v63 = vpop.permute.xlu1 %3270 }
 0x63a   : > { %v2672_v60 = vpop.f32.mrf.mxu1  ;;  %5923 = vmatmul.mubr.msk.f32.gmra.mxu1 %vm977_vm1, %v3253_v33  ;;  %v3265_v33 = vpop.permute.xlu0 %3264 }
 0x63b   : > { %v8001_v34 = vadd.f32 %v7998_v43, %v2672_v60  ;;  %2735 = vmax.xlane.f32.xlu1 %v7992_v31  ;;  %5925 = vmatprep.mubr.msk.f32.mxu1 %vm977_vm1, %v3255_v49  ;;  %v8031_v49 = vld [vmem:[%s9025_s1 + $0x30] sm:$0xff] }
 0x63c   : > { %v5792_v61 = vpop.f32.mrf.mxu1 }
 0x63d   : > { %2739 = vmax.xlane.f32.xlu0 %v8001_v34  ;;  %v8023_v24 = vadd.f32 %v8020_v54, %v5792_v61  ;;  %v8053_v61 = vld [vmem:[%s9025_s1 + $0x50] sm:$0xff] }
 0x63e   : > { %v2682_v48 = vpop.f32.mrf.mxu1  ;;  %5926 = vmatmul.mubr.msk.f32.gmra.mxu1 %vm977_vm1, %v3257_v28  ;;  %v3269_v46 = vpop.permute.xlu0 %3268  ;;  %v8042_v28 = vld [vmem:[%s9025_s1 + $0x40] sm:$0xff] }
 0x63f   : > { %2741 = vmax.xlane.f32.xlu1 %v8011_v55  ;;  %5928 = vmatprep.mubr.msk.f32.mxu1 %vm977_vm1, %v3259_v13  ;;  %v8034_v41 = vadd.f32 %v8031_v49, %v2682_v48  ;;  %v8062_v48 = vld [vmem:[%s9025_s1 + $0x60] sm:$0xff] }
 0x640   : > { %v5795_v36 = vpop.f32.mrf.mxu1  ;;  %9142 = vst [vmem:[#allocation11_spill] sm:$0xff] %v8062_v48 }
 0x642   : > { %v2692_v62 = vpop.f32.mrf.mxu1  ;;  %5929 = vmatmul.mubr.msk.f32.gmra.mxu1 %vm977_vm1, %v3261_v32 }
 0x643   : > { %2745 = vmax.xlane.f32.xlu1 %v8023_v24  ;;  %5931 = vmatprep.mubr.msk.f32.mxu1 %vm977_vm1, %v3263_v51  ;;  %v8045_v13 = vadd.f32 %v8042_v28, %v2692_v62 }
 0x644   : > { %v5798_v57 = vpop.f32.mrf.mxu1 }
 0x646   : > { %v2702_v52 = vpop.f32.mrf.mxu1  ;;  %5932 = vmatmul.mubr.msk.f32.gmra.mxu1 %vm977_vm1, %v3265_v33 }
 0x647   : > { %2743 = vmax.xlane.f32.xlu1 %v8034_v41  ;;  %5934 = vmatprep.mubr.msk.f32.mxu1 %vm977_vm1, %v3267_v59  ;;  %v8056_v32 = vadd.f32 %v8053_v61, %v2702_v52  ;;  %v8073_v59 = vld [vmem:[%s9025_s1 + $0x70] sm:$0xff] }
 0x648   : > { %v5801_v35 = vpop.f32.mrf.mxu1  ;;  %9143 = vst [vmem:[#allocation24_spill] sm:$0xff] %v8073_v59 }
 0x64a   : > { %v2712_v60 = vpop.f32.mrf.mxu1  ;;  %5935 = vmatmul.mubr.msk.f32.gmra.mxu1 %vm977_vm1, %v3269_v46  ;;  %v8084_v46 = vld [vmem:[%s9025_s1 + $0x48] sm:$0xff] }
 0x64b   : > { %2747 = vmax.xlane.f32.xlu1 %v8045_v13  ;;  %5937 = vmatprep.mubr.msk.f32.mxu1 %vm977_vm1, %v3271_v63  ;;  %v8065_v62 = vadd.f32 %v8062_v48, %v2712_v60  ;;  %v8087_v63 = vadd.f32 %v8084_v46, %v5795_v36  ;;  %v8093_v60 = vld [vmem:[%s9025_s1 + $0x58] sm:$0xff]  ;;  %v8105_v36 = vadd.f32 %v8102_v17, %v5801_v35 }
 0x64c   : > { %v5804_v51 = vpop.f32.mrf.mxu1 }
 0x64e   : > { %v2722_v33 = vpop.f32.mrf.mxu1 }
 0x64f   : > { %2751 = vmax.xlane.f32.xlu1 %v8056_v32  ;;  %v8076_v52 = vadd.f32 %v8073_v59, %v2722_v33  ;;  %v8096_v33 = vadd.f32 %v8093_v60, %v5798_v57  ;;  %v8114_v57 = vadd.f32 %v8111_v27, %v5804_v51 }
 0x653   : > { %3272 = vrot.lane.b32.xlu0 %v6894_v8, %s6533_s24  ;;  %2755 = vmax.xlane.f32.xlu1 %v8065_v62 }
 0x657   : > { %2759 = vmax.xlane.f32.xlu1 %v8076_v52 }
 0x668   : > { %3274 = vrot.lane.b32.xlu1 %v6906_v12, %s6533_s24 }
 0x669   : > { %v8117_v25 = vpop.f32.mrf.mxu0 }
 0x66a   : > { %9145 = vst [vmem:[#allocation12_spill] sm:$0xff] %v8117_v25 }
 0x66b   : > { %v8119_v22 = vpop.f32.mrf.mxu0 }
 0x66c   : > { %9146 = vst [vmem:[#allocation26_spill] sm:$0xff] %v8119_v22 }
 0x66d   : > { %v8121_v23 = vpop.f32.mrf.mxu0 }
 0x66e   : > { %9147 = vst [vmem:[#allocation25_spill] sm:$0xff] %v8121_v23 }
 0x66f   : > { %v8123_v35 = vpop.f32.mrf.mxu0 }
 0x670   : > { %9148 = vst [vmem:[#allocation28_spill] sm:$0xff] %v8123_v35 }
 0x671   : > { %v8125_v18 = vpop.f32.mrf.mxu0 }
 0x672   : > { %2749 = vmax.xlane.f32.xlu0 %v8087_v63  ;;  %9149 = vst [vmem:[#allocation29_spill] sm:$0xff] %v8125_v18 }
 0x673   : > { %v8129_v1 = vpop.f32.mrf.mxu0 }
 0x674   : > { %9150 = vst [vmem:[#allocation14_spill] sm:$0xff] %v8129_v1 }
 0x675   : > { %v8131_v26 = vpop.f32.mrf.mxu0 }
 0x676   : > { %2753 = vmax.xlane.f32.xlu0 %v8096_v33  ;;  %9151 = vst [vmem:[#allocation16_spill] sm:$0xff] %v8131_v26 }
 0x677   : > { %v8133_v51 = vpop.f32.mrf.mxu0 }
 0x678   : > { %9152 = vst [vmem:[#allocation17_spill] sm:$0xff] %v8133_v51 }
 0x679   : > { %v8135_v21 = vpop.f32.mrf.mxu0 }
 0x67a   : > { %2757 = vmax.xlane.f32.xlu0 %v8105_v36  ;;  %9153 = vst [vmem:[#allocation19_spill] sm:$0xff] %v8135_v21 }
 0x67b   : > { %v8137_v30 = vpop.f32.mrf.mxu0 }
 0x67c   : > { %9154 = vst [vmem:[#allocation30_spill] sm:$0xff] %v8137_v30 }
 0x67d   : > { %v8139_v44 = vpop.f32.mrf.mxu0 }
 0x67e   : > { %2761 = vmax.xlane.f32.xlu0 %v8114_v57  ;;  %9155 = vst [vmem:[#allocation31_spill] sm:$0xff] %v8139_v44 }
 0x67f   : > { %v8141_v47 = vpop.f32.mrf.mxu0 }
 0x680   : > { %9156 = vst [vmem:[#allocation32_spill] sm:$0xff] %v8141_v47 }
 0x681   : > { %v8143_v35 = vpop.f32.mrf.mxu0 }
 0x682   : > { %9157 = vst [vmem:[#allocation33_spill] sm:$0xff] %v8143_v35 }
 0x683   : > { %v8145_v18 = vpop.f32.mrf.mxu0 }
 0x684   : > { %9158 = vst [vmem:[#allocation34_spill] sm:$0xff] %v8145_v18 }
 0x694   : > { %3276 = vrot.lane.b32.xlu0 %v6900_v9, %s6533_s24  ;;  %s6534_s24 = smov 40  }
 0x6b7   : > { %v8147_v14 = vpop.f32.mrf.mxu0 }
 0x6b8   : > { %9159 = vst [vmem:[#allocation35_spill] sm:$0xff] %v8147_v14 }
 0x6b9   : > { %v8149_v23 = vpop.f32.mrf.mxu0 }
 0x6ba   : > { %9160 = vst [vmem:[#allocation36_spill] sm:$0xff] %v8149_v23 }
 0x6bb   : > { %v8151_v1 = vpop.f32.mrf.mxu0 }
 0x6bc   : > { %v2734_v26 = vpop.xlane.xlu1 %2733 }
 0x6bd   : > { %v2764_v51 = vsub.f32 %v7962_v39, %v2734_v26  ;;  %v8154_v21 = vpop.f32.mrf.mxu0 }
 0x6be   : > { %v2732_v30 = vpop.xlane.xlu0 %2731 }
 0x6bf   : > { %v2781_v0 = vmul.f32 1.442695, %v2764_v51  ;;  %v2763_v44 = vsub.f32 %v7970_v40, %v2732_v30  ;;  %v8157_v47 = vpop.f32.mrf.mxu0 }
 0x6c0   : > { %v2738_v35 = vpop.xlane.xlu1 %2737 }
 0x6c1   : > { %6324 = vpow2.f32 %v2781_v0  ;;  %v2779_v18 = vmul.f32 1.442695, %v2763_v44  ;;  %v2766_v14 = vsub.f32 %v7980_v11, %v2738_v35  ;;  %v8160_v22 = vpop.f32.mrf.mxu0 }
 0x6c3   : > { %6326 = vpow2.f32 %v2779_v18  ;;  %v2785_v23 = vmul.f32 1.442695, %v2766_v14  ;;  %v8162_v42 = vpop.f32.mrf.mxu0 }
 0x6c4   : > { %v2736_v26 = vpop.xlane.xlu1 %2735 }
 0x6c5   : > { %v2765_v39 = vsub.f32 %v7992_v31, %v2736_v26  ;;  %v8165_v25 = vpop.f32.mrf.mxu0  ;;  %6328 = vpow2.f32 %v2785_v23 }
 0x6c6   : > { %v2740_v51 = vpop.xlane.xlu0 %2739 }
 0x6c7   : > { %v2783_v30 = vmul.f32 1.442695, %v2765_v39  ;;  %v2767_v40 = vsub.f32 %v8001_v34, %v2740_v51  ;;  %v8168_v0 = vpop.f32.mrf.mxu0 }
 0x6c8   : > { %v2742_v44 = vpop.xlane.xlu1 %2741 }
 0x6c9   : > { %6330 = vpow2.f32 %v2783_v30  ;;  %v2768_v11 = vsub.f32 %v8011_v55, %v2742_v44  ;;  %v8171_v18 = vpop.f32.mrf.mxu0  ;;  %v2787_v14 = vmul.f32 1.442695, %v2767_v40 }
 0x6ca   : > { %v3273_v35 = vpop.permute.xlu0 %3272 }
 0x6cb   : > { %v2789_v10 = vmul.f32 1.442695, %v2768_v11  ;;  %v8173_v59 = vpop.f32.mrf.mxu0  ;;  %5938 = vmatmul.mubr.msk.f32.gmra.mxu1 %vm977_vm1, %v3273_v35 }
 0x6cc   : > { %v2746_v31 = vpop.xlane.xlu1 %2745 }
 0x6cd   : > { %6332 = vpow2.f32 %v2789_v10  ;;  %v2770_v23 = vsub.f32 %v8023_v24, %v2746_v31  ;;  %v8177_v34 = vpop.f32.mrf.mxu0 }
 0x6ce   : > { %v8179_v26 = vpop.eup %6324  ;;  %6334 = vpow2.f32 %v2787_v14 }
 0x6cf   : > { %v2793_v39 = vmul.f32 1.442695, %v2770_v23  ;;  %2813 = vadd.xlane.f32.xlu0 %v8179_v26  ;;  %v5824_v55 = vpop.f32.mrf.mxu0 }
 0x6d0   : > { %v8182_v51 = vpop.eup %6326  ;;  %v2744_v30 = vpop.xlane.xlu1 %2743 }
 0x6d1   : > { %6336 = vpow2.f32 %v2793_v39  ;;  %v2769_v40 = vsub.f32 %v8034_v41, %v2744_v30  ;;  %v3056_v44 = vpop.f32.mrf.mxu0  ;;  %2811 = vadd.xlane.f32.xlu1 %v8182_v51 }
 0x6d2   : > { %v8186_v11 = vpop.eup %6328 }
 0x6d3   : > { %v2791_v10 = vmul.f32 1.442695, %v2769_v40  ;;  %v5827_v24 = vpop.f32.mrf.mxu0 }
 0x6d4   : > { %v2748_v35 = vpop.xlane.xlu1 %2747 }
 0x6d5   : > { %6338 = vpow2.f32 %v2791_v10  ;;  %v2771_v14 = vsub.f32 %v8045_v13, %v2748_v35  ;;  %v3066_v31 = vpop.f32.mrf.mxu0  ;;  %2817 = vadd.xlane.f32.xlu1 %v8186_v11 }
 0x6d6   : > { %v8190_v23 = vpop.eup %6330 }
 0x6d7   : > { %v2795_v27 = vmul.f32 1.442695, %v2771_v14  ;;  %2815 = vadd.xlane.f32.xlu0 %v8190_v23  ;;  %v5830_v41 = vpop.f32.mrf.mxu0 }
 0x6d8   : > { %v2752_v39 = vpop.xlane.xlu1 %2751  ;;  %5831 = vmatprep.subr.mxu0 %v5830_v41 }
 0x6d9   : > { %6340 = vpow2.f32 %v2795_v27  ;;  %v2773_v30 = vsub.f32 %v8056_v32, %v2752_v39  ;;  %v3076_v40 = vpop.f32.mrf.mxu0  ;;  %5832 = vmatpush3.msra.mxu0 %v5830_v41 }
 0x6da   : > { %v8194_v48 = vpop.eup %6332  ;;  %5833 = vmatprep.subr.mxu0 %v3076_v40 }
 0x6db   : > { %v8196_v13 = vpop.eup %6334  ;;  %v2799_v10 = vmul.f32 1.442695, %v2773_v30  ;;  %5834 = vmatpush3.msra.mxu0 %v3076_v40  ;;  %2821 = vadd.xlane.f32.xlu1 %v8194_v48 }
 0x6dc   : > { %2819 = vadd.xlane.f32.xlu0 %v8196_v13  ;;  %v2756_v35 = vpop.xlane.xlu1 %2755  ;;  %5835 = vmatprep.subr.mxu0 %v5827_v24 }
 0x6dd   : > { %6342 = vpow2.f32 %v2799_v10  ;;  %v2775_v27 = vsub.f32 %v8065_v62, %v2756_v35  ;;  %5836 = vmatpush3.msra.mxu0 %v5827_v24 }
 0x6de   : > { %v8201_v32 = vpop.eup %6336  ;;  %5837 = vmatprep.subr.mxu0 %v3066_v31 }
 0x6df   : > { %v2803_v14 = vmul.f32 1.442695, %v2775_v27  ;;  %5838 = vmatpush3.msra.mxu0 %v3066_v31  ;;  %2825 = vadd.xlane.f32.xlu1 %v8201_v32 }
 0x6e0   : > { %v2760_v41 = vpop.xlane.xlu1 %2759  ;;  %5839 = vmatprep.subr.mxu0 %v5824_v55 }
 0x6e1   : > { %6344 = vpow2.f32 %v2803_v14  ;;  %v2777_v39 = vsub.f32 %v8076_v52, %v2760_v41  ;;  %5840 = vmatpush3.msra.mxu0 %v5824_v55 }
 0x6e2   : > { %v8205_v30 = vpop.eup %6338  ;;  %5841 = vmatprep.subr.mxu0 %v3056_v44 }
 0x6e3   : > { %v2807_v40 = vmul.f32 1.442695, %v2777_v39  ;;  %5842 = vmatpush3.msra.mxu0 %v3056_v44  ;;  %2823 = vadd.xlane.f32.xlu0 %v8205_v30 }
 0x6e4   : > { %v3275_v62 = vpop.permute.xlu1 %3274  ;;  %5843 = vmatprep.subr.mxu0 %v8173_v59 }
 0x6e5   : > { %6346 = vpow2.f32 %v2807_v40  ;;  %5844 = vmatpush3.msra.mxu0 %v8173_v59  ;;  %5940 = vmatprep.mubr.msk.f32.mxu1 %vm977_vm1, %v3275_v62 }
 0x6e6   : > { %v8211_v24 = vpop.eup %6340  ;;  %5845 = vmatprep.subr.mxu0 %v8177_v34 }
 0x6e7   : > { %5846 = vmatpush3.msra.mxu0 %v8177_v34  ;;  %2827 = vadd.xlane.f32.xlu0 %v8211_v24 }
 0x6e8   : > { %5847 = vmatprep.subr.mxu0 %v8168_v0 }
 0x6e9   : > { %5848 = vmatpush3.msra.mxu0 %v8168_v0 }
 0x6ea   : > { %v8218_v52 = vpop.eup %6342  ;;  %5849 = vmatprep.subr.mxu0 %v8171_v18 }
 0x6eb   : > { %5850 = vmatpush3.msra.mxu0 %v8171_v18  ;;  %2831 = vadd.xlane.f32.xlu0 %v8218_v52 }
 0x6ec   : > { %5851 = vmatprep.subr.mxu0 %v8162_v42 }
 0x6ed   : > { %5852 = vmatpush3.msra.mxu0 %v8162_v42 }
 0x6ee   : > { %v8225_v59 = vpop.eup %6344  ;;  %5853 = vmatprep.subr.mxu0 %v8165_v25 }
 0x6ef   : > { %5854 = vmatpush3.msra.mxu0 %v8165_v25  ;;  %2835 = vadd.xlane.f32.xlu0 %v8225_v59 }
 0x6f0   : > { %5855 = vmatprep.subr.mxu0 %v8157_v47 }
 0x6f1   : > { %5856 = vmatpush3.msra.mxu0 %v8157_v47 }
 0x6f2   : > { %v8232_v0 = vpop.eup %6346  ;;  %5857 = vmatprep.subr.mxu0 %v8160_v22 }
 0x6f3   : > { %5858 = vmatpush3.msra.mxu0 %v8160_v22  ;;  %2839 = vadd.xlane.f32.xlu0 %v8232_v0 }
 0x6f4   : > { %5859 = vmatprep.subr.mxu0 %v8151_v1 }
 0x6f5   : > { %5860 = vmatpush3.msra.mxu0 %v8151_v1 }
 0x6f6   : > { %5861 = vmatprep.subr.mxu0 %v8154_v21 }
 0x6f7   : > { %5862 = vmatpush3.msra.mxu0 %v8154_v21 }
 0x6fb   : > { %v2750_v42 = vpop.xlane.xlu0 %2749 }
 0x6fc   : > { %v2772_v25 = vsub.f32 %v8087_v63, %v2750_v42 }
 0x6fe   : > { %v2797_v47 = vmul.f32 1.442695, %v2772_v25 }
 0x6ff   : > { %v2754_v18 = vpop.xlane.xlu0 %2753 }
 0x700   : > { %6348 = vpow2.f32 %v2797_v47  ;;  %v2774_v34 = vsub.f32 %v8096_v33, %v2754_v18 }
 0x702   : > { %v2801_v55 = vmul.f32 1.442695, %v2774_v34 }
 0x703   : > { %v2758_v22 = vpop.xlane.xlu0 %2757 }
 0x704   : > { %6350 = vpow2.f32 %v2801_v55  ;;  %v2776_v44 = vsub.f32 %v8105_v36, %v2758_v22 }
 0x706   : > { %v2805_v31 = vmul.f32 1.442695, %v2776_v44 }
 0x707   : > { %v2762_v10 = vpop.xlane.xlu0 %2761 }
 0x708   : > { %6352 = vpow2.f32 %v2805_v31  ;;  %v2778_v1 = vsub.f32 %v8114_v57, %v2762_v10 }
 0x709   : > { %3664 = vrot.lane.b32.xlu0 %v9101_v15, %s6534_s24 }
 0x70a   : > { %v2809_v21 = vmul.f32 1.442695, %v2778_v1 }
 0x70b   : > { %v3277_v63 = vpop.permute.xlu0 %3276 }
 0x70c   : > { %6354 = vpow2.f32 %v2809_v21  ;;  %5941 = vmatmul.mubr.msk.f32.gmra.mxu1 %vm977_vm1, %v3277_v63 }
 0x70d   : > { %v8248_v33 = vpop.eup %6348  ;;  %3670 = vrot.lane.b32.xlu0 %v9103_v53, %s6534_s24  ;;  %v5921_v53 = vpop.f32.mrf.mxu1 }
 0x70e   : > { %2829 = vadd.xlane.f32.xlu1 %v8248_v33 }
 0x711   : > { %v8253_v36 = vpop.eup %6350  ;;  %3674 = vrot.lane.b32.xlu0 %v9105_v38, %s6534_s24 }
 0x712   : > { %2833 = vadd.xlane.f32.xlu1 %v8253_v36 }
 0x715   : > { %v8258_v15 = vpop.eup %6352  ;;  %3678 = vrot.lane.b32.xlu0 %v6882_v2, %s6534_s24  ;;  %v3440_v2 = vpop.f32.mrf.mxu1 }
 0x716   : > { %2837 = vadd.xlane.f32.xlu1 %v8258_v15  ;;  %v8318_v42 = vadd.f32 %v7967_v19, %v3440_v2 }
 0x717   : > { %v5924_v38 = vpop.f32.mrf.mxu1 }
 0x718   : > { %v8324_v55 = vadd.f32 %v7977_v20, %v5924_v38 }
 0x719   : > { %v8263_v57 = vpop.eup %6354  ;;  %3682 = vrot.lane.b32.xlu0 %v6886_v4, %s6534_s24  ;;  %v3450_v4 = vpop.f32.mrf.mxu1 }
 0x71a   : > { %2841 = vadd.xlane.f32.xlu1 %v8263_v57  ;;  %v8296_v35 = vadd.f32 %v7989_v50, %v3450_v4 }
 0x71d   : > { %3686 = vrot.lane.b32.xlu0 %v6890_v6, %s6534_s24  ;;  %v3663_v6 = vld [vmem:[%s9029_s5 + $0x18] sm:$0xff] }
 0x71e   : > { %5943 = vmatprep.subr.mxu0 %v3663_v6 }
 0x721   : > { %3690 = vrot.lane.b32.xlu0 %v6894_v8, %s6534_s24  ;;  %v5927_v8 = vpop.f32.mrf.mxu1 }
 0x722   : > { %v8330_v44 = vadd.f32 %v8008_v58, %v5927_v8 }
 0x725   : > { %3694 = vrot.lane.b32.xlu0 %v6900_v9, %s6534_s24  ;;  %v3460_v9 = vpop.f32.mrf.mxu1 }
 0x72b   : > { %3666 = vrot.lane.b32.xlu1 %v9107_v16, %s6534_s24  ;;  %v5930_v16 = vpop.f32.mrf.mxu1 }
 0x72c   : > { %v8336_v21 = vadd.f32 %v8020_v54, %v5930_v16 }
 0x72f   : > { %3668 = vrot.lane.b32.xlu1 %v9109_v56, %s6534_s24  ;;  %v8290_v56 = vadd.f32 %v7959_v29, %v5921_v53 }
 0x733   : > { %3672 = vrot.lane.b32.xlu1 %v6880_v37, %s6534_s24  ;;  %v3470_v37 = vpop.f32.mrf.mxu1 }
 0x734   : > { %v8306_v29 = vadd.f32 %v8031_v49, %v3470_v37 }
 0x737   : > { %3676 = vrot.lane.b32.xlu1 %v6884_v3, %s6534_s24  ;;  %v5933_v3 = vpop.f32.mrf.mxu1 }
 0x73b   : > { %3680 = vrot.lane.b32.xlu1 %v6888_v5, %s6534_s24  ;;  %v8302_v5 = vadd.f32 %v7998_v43, %v3460_v9 }
 0x73f   : > { %3684 = vrot.lane.b32.xlu1 %v6892_v7, %s6534_s24  ;;  %v3480_v7 = vpop.f32.mrf.mxu1 }
 0x740   : > { %v8310_v50 = vadd.f32 %v8042_v28, %v3480_v7 }
 0x743   : > { %3688 = vrot.lane.b32.xlu1 %v6898_v45, %s6534_s24  ;;  %v5936_v45 = vpop.f32.mrf.mxu1 }
 0x744   : > { %3521 = vmax.xlane.f32.xlu0 %v8290_v56 }
 0x745   : > { %v3490_v27 = vpop.f32.mrf.mxu1 }
 0x747   : > { %3692 = vrot.lane.b32.xlu1 %v6906_v12, %s6534_s24  ;;  %v8314_v12 = vadd.f32 %v8053_v61, %v3490_v27 }
 0x748   : > { %3523 = vmax.xlane.f32.xlu0 %v8296_v35 }
 0x74c   : > { %3527 = vmax.xlane.f32.xlu0 %v8302_v5 }
 0x750   : > { %3531 = vmax.xlane.f32.xlu0 %v8306_v29 }
 0x754   : > { %3535 = vmax.xlane.f32.xlu0 %v8310_v50 }
 0x758   : > { %3539 = vmax.xlane.f32.xlu0 %v8314_v12  ;;  %v2814_v43 = vpop.xlane.xlu0 %2813 }
 0x759   : > { %6356 = vrcp.f32 %v2814_v43 }
 0x75a   : > { %v2812_v14 = vpop.xlane.xlu1 %2811 }
 0x75b   : > { %6358 = vrcp.f32 %v2812_v14 }
 0x75e   : > { %v2818_v49 = vpop.xlane.xlu1 %2817 }
 0x75f   : > { %6360 = vrcp.f32 %v2818_v49 }
 0x760   : > { %v2816_v41 = vpop.xlane.xlu0 %2815 }
 0x761   : > { %6362 = vrcp.f32 %v2816_v41 }
 0x764   : > { %v2822_v39 = vpop.xlane.xlu1 %2821 }
 0x765   : > { %6364 = vrcp.f32 %v2822_v39  ;;  %v2820_v28 = vpop.xlane.xlu0 %2819 }
 0x766   : > { %6366 = vrcp.f32 %v2820_v28  ;;  %v6357_v40 = vpop.eup %6356 }
 0x767   : > { %v2860_v47 = vmul.f32 %v6357_v40, %v8179_v26 }
 0x768   : > { %v6359_v62 = vpop.eup %6358  ;;  %v2826_v61 = vpop.xlane.xlu1 %2825 }
 0x769   : > { %v2859_v25 = vmul.f32 %v6359_v62, %v8182_v51  ;;  %6368 = vrcp.f32 %v2826_v61 }
 0x76b   : > { %5863 = vmatprep.mubr.f32.mxu0 %v2859_v25  ;;  %3519 = vmax.xlane.f32.xlu1 %v8318_v42 }
 0x76c   : > { %5864 = vmatmul.mubr.f32.vlgmr.msra.gmra.mxu0 %v2860_v47  ;;  %v2824_v18 = vpop.xlane.xlu0 %2823  ;;  %v6361_v34 = vpop.eup %6360 }
 0x76d   : > { %6370 = vrcp.f32 %v2824_v18  ;;  %5944 = vmatpush3.msra.mxu0 %v3663_v6  ;;  %v2862_v26 = vmul.f32 %v6361_v34, %v8186_v11  ;;  %v8340_v11 = vadd.f32 %v8084_v46, %v5933_v3 }
 0x76e   : > { %v6363_v22 = vpop.eup %6362 }
 0x76f   : > { %3525 = vmax.xlane.f32.xlu1 %v8324_v55  ;;  %v2861_v19 = vmul.f32 %v6363_v22, %v8190_v23 }
 0x770   : > { %v2828_v51 = vpop.xlane.xlu0 %2827 }
 0x771   : > { %6372 = vrcp.f32 %v2828_v51  ;;  %5866 = vmatprep.mubr.f32.mxu0 %v2861_v19 }
 0x772   : > { %v6365_v31 = vpop.eup %6364  ;;  %5867 = vmatmul.mubr.f32.gmra.mxu0 %v2862_v26 }
 0x773   : > { %v6367_v10 = vpop.eup %6366  ;;  %3529 = vmax.xlane.f32.xlu1 %v8330_v44  ;;  %v2864_v20 = vmul.f32 %v6365_v31, %v8194_v48  ;;  %v9162_v31 = vld [vmem:[#allocation27_spill] sm:$0xff] }
 0x774   : > { %v2863_v1 = vmul.f32 %v6367_v10, %v8196_v13  ;;  %v8346_v13 = vadd.f32 %v8093_v60, %v5936_v45  ;;  %v2832_v38 = vpop.xlane.xlu0 %2831 }
 0x775   : > { %6374 = vrcp.f32 %v2832_v38 }
 0x776   : > { %5869 = vmatprep.mubr.f32.mxu0 %v2863_v1  ;;  %v6369_v58 = vpop.eup %6368 }
 0x777   : > { %5870 = vmatmul.mubr.f32.gmra.mxu0 %v2864_v20  ;;  %3533 = vmax.xlane.f32.xlu1 %v8336_v21  ;;  %v2866_v48 = vmul.f32 %v6369_v58, %v8201_v32 }
 0x778   : > { %v2836_v60 = vpop.xlane.xlu0 %2835 }
 0x77a   : > { %v6371_v23 = vpop.eup %6370 }
 0x77b   : > { %3537 = vmax.xlane.f32.xlu1 %v8340_v11  ;;  %v2865_v63 = vmul.f32 %v6371_v23, %v8205_v30  ;;  %v9161_v30 = vld [vmem:[#allocation11_spill] sm:$0xff]  ;;  %v9163_v23 = vld [vmem:[#allocation24_spill] sm:$0xff] }
 0x77c   : > { %v2840_v8 = vpop.xlane.xlu0 %2839 }
 0x77d   : > { %5872 = vmatprep.mubr.f32.mxu0 %v2865_v63 }
 0x77e   : > { %v6373_v54 = vpop.eup %6372  ;;  %5873 = vmatmul.mubr.f32.gmra.mxu0 %v2866_v48 }
 0x77f   : > { %3541 = vmax.xlane.f32.xlu1 %v8346_v13  ;;  %v2867_v53 = vmul.f32 %v6373_v54, %v8211_v24 }
 0x781   : > { %5875 = vmatprep.mubr.f32.mxu0 %v2867_v53 }
 0x782   : > { %v6375_v37 = vpop.eup %6374 }
 0x783   : > { %v2869_v43 = vmul.f32 %v6375_v37, %v8218_v52 }
 0x78b   : > { %v5939_v46 = vpop.f32.mrf.mxu1 }
 0x78c   : > { %v8351_v2 = vadd.f32 %v8102_v17, %v5939_v46  ;;  %v3665_v17 = vpop.permute.xlu0 %3664 }
 0x78d   : > { %v3500_v4 = vpop.f32.mrf.mxu1 }
 0x78e   : > { %v8354_v6 = vadd.f32 %v9161_v30, %v3500_v4  ;;  %3545 = vmax.xlane.f32.xlu1 %v8351_v2 }
 0x790   : > { %3543 = vmax.xlane.f32.xlu0 %v8354_v6  ;;  %v3671_v7 = vpop.permute.xlu0 %3670 }
 0x794   : > { %v3675_v39 = vpop.permute.xlu0 %3674 }
 0x797   : > { %v2830_v32 = vpop.xlane.xlu1 %2829 }
 0x798   : > { %6376 = vrcp.f32 %v2830_v32  ;;  %v3679_v47 = vpop.permute.xlu0 %3678 }
 0x799   : > { %6378 = vrcp.f32 %v2836_v60 }
 0x79b   : > { %v2834_v24 = vpop.xlane.xlu1 %2833 }
 0x79c   : > { %6380 = vrcp.f32 %v2834_v24 }
 0x79d   : > { %6382 = vrcp.f32 %v2840_v8 }
 0x79f   : > { %v2838_v9 = vpop.xlane.xlu1 %2837 }
 0x7a0   : > { %6384 = vrcp.f32 %v2838_v9 }
 0x7a3   : > { %v2842_v16 = vpop.xlane.xlu1 %2841 }
 0x7a4   : > { %6386 = vrcp.f32 %v2842_v16 }
 0x7a5   : > { %v6377_v3 = vpop.eup %6376 }
 0x7a6   : > { %v2868_v45 = vmul.f32 %v6377_v3, %v8248_v33  ;;  %v6379_v14 = vpop.eup %6378 }
 0x7a7   : > { %v3667_v27 = vpop.permute.xlu1 %3666  ;;  %v2871_v28 = vmul.f32 %v6379_v14, %v8225_v59  ;;  %v3683_v59 = vpop.permute.xlu0 %3682 }
 0x7a8   : > { %5876 = vmatmul.mubr.f32.gmra.mxu0 %v2868_v45 }
 0x7a9   : > { %v6381_v49 = vpop.eup %6380  ;;  %5878 = vmatprep.mubr.f32.mxu0 %v2869_v43 }
 0x7aa   : > { %v2870_v41 = vmul.f32 %v6381_v49, %v8253_v36  ;;  %v6383_v40 = vpop.eup %6382 }
 0x7ab   : > { %v3669_v62 = vpop.permute.xlu1 %3668  ;;  %v2873_v33 = vmul.f32 %v6383_v40, %v8232_v0 }
 0x7ac   : > { %5879 = vmatmul.mubr.f32.gmra.mxu0 %v2870_v41 }
 0x7ad   : > { %v6385_v61 = vpop.eup %6384  ;;  %5881 = vmatprep.mubr.f32.mxu0 %v2871_v28 }
 0x7ae   : > { %v2872_v25 = vmul.f32 %v6385_v61, %v8258_v15  ;;  %v3687_v15 = vpop.permute.xlu0 %3686 }
 0x7af   : > { %v3673_v18 = vpop.permute.xlu1 %3672 }
 0x7b0   : > { %5882 = vmatmul.mubr.f32.gmra.mxu0 %v2872_v25 }
 0x7b1   : > { %v6387_v52 = vpop.eup %6386  ;;  %5884 = vmatprep.mubr.f32.mxu0 %v2873_v33 }
 0x7b2   : > { %v2874_v34 = vmul.f32 %v6387_v52, %v8263_v57  ;;  %v3691_v57 = vpop.permute.xlu0 %3690 }
 0x7b3   : > { %v3677_v36 = vpop.permute.xlu1 %3676 }
 0x7b4   : > { %5885 = vmatmul.mubr.f32.gmra.mxu0 %v2874_v34 }
 0x7b5   : > { %5945 = vmatprep.mubr.msk.f32.mxu0 %vm977_vm1, %v3665_v17 }
 0x7b6   : > { %v3695_v19 = vpop.permute.xlu0 %3694 }
 0x7b7   : > { %v3681_v0 = vpop.permute.xlu1 %3680 }
 0x7b8   : > { %5946 = vmatmul.mubr.msk.f32.vlgmr.msra.gmra.mxu0 %vm977_vm1, %v3667_v27 }
 0x7b9   : > { %5948 = vmatprep.mubr.msk.f32.mxu0 %vm977_vm1, %v3669_v62 }
 0x7bb   : > { %v3685_v22 = vpop.permute.xlu1 %3684 }
 0x7bc   : > { %5949 = vmatmul.mubr.msk.f32.gmra.mxu0 %vm977_vm1, %v3671_v7 }
 0x7bd   : > { %5951 = vmatprep.mubr.msk.f32.mxu0 %vm977_vm1, %v3673_v18 }
 0x7bf   : > { %v3689_v51 = vpop.permute.xlu1 %3688 }
 0x7c0   : > { %5952 = vmatmul.mubr.msk.f32.gmra.mxu0 %vm977_vm1, %v3675_v39 }
 0x7c1   : > { %5954 = vmatprep.mubr.msk.f32.mxu0 %vm977_vm1, %v3677_v36 }
 0x7c3   : > { %v3693_v48 = vpop.permute.xlu1 %3692 }
 0x7c4   : > { %5955 = vmatmul.mubr.msk.f32.gmra.mxu0 %vm977_vm1, %v3679_v47 }
 0x7c5   : > { %5957 = vmatprep.mubr.msk.f32.mxu0 %vm977_vm1, %v3681_v0 }
 0x7c8   : > { %5958 = vmatmul.mubr.msk.f32.gmra.mxu0 %vm977_vm1, %v3683_v59 }
 0x7c9   : > { %5960 = vmatprep.mubr.msk.f32.mxu0 %vm977_vm1, %v3685_v22 }
 0x7cc   : > { %v5942_v26 = vpop.f32.mrf.mxu1  ;;  %5961 = vmatmul.mubr.msk.f32.gmra.mxu0 %vm977_vm1, %v3687_v15 }
 0x7cd   : > { %v8378_v10 = vadd.f32 %v9162_v31, %v5942_v26  ;;  %5963 = vmatprep.mubr.msk.f32.mxu0 %vm977_vm1, %v3689_v51  ;;  %v3522_v20 = vpop.xlane.xlu0 %3521  ;;  %v9164_v26 = vld [vmem:[#allocation13_spill] sm:$0xff]  ;;  %v9165_v31 = vld [vmem:[#allocation12_spill] sm:$0xff] }
 0x7ce   : > { %v3552_v1 = vsub.f32 %v8290_v56, %v3522_v20  ;;  %v3510_v58 = vpop.f32.mrf.mxu1  ;;  %v2385_v20 = vadd.f32 %v9165_v31, %v9164_v26 }
 0x7cf   : > { %v8383_v63 = vadd.f32 %v9163_v23, %v3510_v58  ;;  %3549 = vmax.xlane.f32.xlu1 %v8378_v10  ;;  %v9167_v58 = vld [vmem:[#allocation26_spill] sm:$0xff] }
 0x7d0   : > { %v3569_v54 = vmul.f32 1.442695, %v3552_v1  ;;  %5964 = vmatmul.mubr.msk.f32.gmra.mxu0 %vm977_vm1, %v3691_v57 }
 0x7d1   : > { %3547 = vmax.xlane.f32.xlu0 %v8383_v63  ;;  %5966 = vmatprep.mubr.msk.f32.mxu0 %vm977_vm1, %v3693_v48  ;;  %v3524_v56 = vpop.xlane.xlu0 %3523 }
 0x7d2   : > { %6388 = vpow2.f32 %v3569_v54  ;;  %v3553_v38 = vsub.f32 %v8296_v35, %v3524_v56 }
 0x7d4   : > { %5967 = vmatmul.mubr.msk.f32.gmra.mxu0 %vm977_vm1, %v3695_v19  ;;  %v3571_v8 = vmul.f32 1.442695, %v3553_v38  ;;  %v9169_v38 = vld [vmem:[#allocation25_spill] sm:$0xff] }
 0x7d5   : > { %v3528_v46 = vpop.xlane.xlu0 %3527 }
 0x7d6   : > { %v3555_v24 = vsub.f32 %v8302_v5, %v3528_v46  ;;  %v9168_v46 = vld [vmem:[#allocation7_spill] sm:$0xff] }
 0x7d8   : > { %v3575_v3 = vmul.f32 1.442695, %v3555_v24 }
 0x7d9   : > { %v3532_v30 = vpop.xlane.xlu0 %3531 }
 0x7da   : > { %v3557_v7 = vsub.f32 %v8306_v29, %v3532_v30 }
 0x7dd   : > { %v3536_v16 = vpop.xlane.xlu0 %3535 }
 0x7de   : > { %v3559_v43 = vsub.f32 %v8310_v50, %v3536_v16  ;;  %v9172_v16 = vld [vmem:[#allocation8_spill] sm:$0xff] }
 0x7df   : > { %v8390_v53 = vpop.eup %6388 }
 0x7e0   : > { %3601 = vadd.xlane.f32.xlu1 %v8390_v53  ;;  %v3583_v41 = vmul.f32 1.442695, %v3559_v43 }
 0x7e1   : > { %v3540_v14 = vpop.xlane.xlu0 %3539 }
 0x7e2   : > { %v3561_v39 = vsub.f32 %v8314_v12, %v3540_v14  ;;  %v9176_v14 = vld [vmem:[#allocation20_spill] sm:$0xff] }
 0x7e4   : > { %v3587_v50 = vmul.f32 1.442695, %v3561_v39  ;;  %v9178_v39 = vld [vmem:[#allocation6_spill] sm:$0xff] }
 0x7f4   : > { %v3520_v4 = vpop.xlane.xlu1 %3519 }
 0x7f5   : > { %v3551_v60 = vsub.f32 %v8318_v42, %v3520_v4  ;;  %v3579_v42 = vmul.f32 1.442695, %v3557_v7  ;;  %v2395_v4 = vadd.f32 %v9169_v38, %v9168_v46  ;;  %v9185_v46 = vld [vmem:[#allocation31_spill] sm:$0xff] }
 0x7f7   : > { %v3567_v32 = vmul.f32 1.442695, %v3551_v60  ;;  %v9170_v60 = vld [vmem:[#allocation3_spill] sm:$0xff] }
 0x7f8   : > { %v3526_v17 = vpop.xlane.xlu1 %3525 }
 0x7f9   : > { %6390 = vpow2.f32 %v3567_v32  ;;  %v3554_v9 = vsub.f32 %v8324_v55, %v3526_v17  ;;  %v9171_v32 = vld [vmem:[#allocation28_spill] sm:$0xff] }
 0x7fa   : > { %6392 = vpow2.f32 %v3571_v8  ;;  %v2390_v8 = vadd.f32 %v9171_v32, %v9170_v60  ;;  %v9186_v60 = vld [vmem:[#allocation5_spill] sm:$0xff]  ;;  %v9187_v32 = vld [vmem:[#allocation32_spill] sm:$0xff] }
 0x7fb   : > { %v3573_v37 = vmul.f32 1.442695, %v3554_v9 }
 0x7fc   : > { %v3530_v45 = vpop.xlane.xlu1 %3529 }
 0x7fd   : > { %6394 = vpow2.f32 %v3573_v37  ;;  %v3556_v35 = vsub.f32 %v8330_v44, %v3530_v45  ;;  %v9173_v37 = vld [vmem:[#allocation29_spill] sm:$0xff]  ;;  %v9174_v45 = vld [vmem:[#allocation4_spill] sm:$0xff] }
 0x7fe   : > { %6396 = vpow2.f32 %v3575_v3  ;;  %v2405_v3 = vadd.f32 %v9173_v37, %v9172_v16  ;;  %v9188_v37 = vld [vmem:[#allocation22_spill] sm:$0xff] }
 0x7ff   : > { %v3577_v27 = vmul.f32 1.442695, %v3556_v35  ;;  %v9175_v35 = vld [vmem:[#allocation14_spill] sm:$0xff] }
 0x800   : > { %v3534_v5 = vpop.xlane.xlu1 %3533 }
 0x801   : > { %6398 = vpow2.f32 %v3577_v27  ;;  %v3558_v55 = vsub.f32 %v8336_v21, %v3534_v5  ;;  %v2400_v27 = vadd.f32 %v9175_v35, %v9174_v45 }
 0x802   : > { %6400 = vpow2.f32 %v3579_v42 }
 0x803   : > { %v3581_v49 = vmul.f32 1.442695, %v3558_v55  ;;  %v9177_v55 = vld [vmem:[#allocation16_spill] sm:$0xff] }
 0x804   : > { %v3538_v29 = vpop.xlane.xlu1 %3537 }
 0x805   : > { %6402 = vpow2.f32 %v3581_v49  ;;  %v3560_v28 = vsub.f32 %v8340_v11, %v3538_v29  ;;  %v2415_v49 = vadd.f32 %v9177_v55, %v9176_v14  ;;  %v9179_v29 = vld [vmem:[#allocation17_spill] sm:$0xff] }
 0x806   : > { %v8403_v44 = vpop.eup %6390  ;;  %6404 = vpow2.f32 %v3583_v41 }
 0x807   : > { %v3585_v40 = vmul.f32 1.442695, %v3560_v28  ;;  %3599 = vadd.xlane.f32.xlu0 %v8403_v44  ;;  %v8406_v61 = vpop.eup %6392  ;;  %v2410_v28 = vadd.f32 %v9179_v29, %v9178_v39  ;;  %v9193_v39 = vld [vmem:[#allocation35_spill] sm:$0xff] }
 0x808   : > { %v3542_v62 = vpop.xlane.xlu1 %3541 }
 0x809   : > { %6406 = vpow2.f32 %v3585_v40  ;;  %v3562_v21 = vsub.f32 %v8346_v13, %v3542_v62 }
 0x80a   : > { %v8409_v25 = vpop.eup %6394  ;;  %6408 = vpow2.f32 %v3587_v50 }
 0x80b   : > { %v3589_v12 = vmul.f32 1.442695, %v3562_v21  ;;  %3605 = vadd.xlane.f32.xlu1 %v8409_v25  ;;  %3603 = vadd.xlane.f32.xlu0 %v8406_v61  ;;  %v8413_v11 = vpop.eup %6396 }
 0x80d   : > { %6410 = vpow2.f32 %v3589_v12 }
 0x80e   : > { %v8415_v33 = vpop.eup %6398 }
 0x80f   : > { %3609 = vadd.xlane.f32.xlu1 %v8415_v33  ;;  %3607 = vadd.xlane.f32.xlu0 %v8413_v11  ;;  %v8419_v52 = vpop.eup %6400 }
 0x812   : > { %v8421_v13 = vpop.eup %6402 }
 0x813   : > { %3613 = vadd.xlane.f32.xlu1 %v8421_v13  ;;  %3611 = vadd.xlane.f32.xlu0 %v8419_v52  ;;  %v8425_v47 = vpop.eup %6404 }
 0x816   : > { %v8427_v18 = vpop.eup %6406 }
 0x817   : > { %v3546_v34 = vpop.xlane.xlu1 %3545  ;;  %3617 = vadd.xlane.f32.xlu1 %v8427_v18  ;;  %3615 = vadd.xlane.f32.xlu0 %v8425_v47  ;;  %v8432_v36 = vpop.eup %6408 }
 0x818   : > { %v3564_v59 = vsub.f32 %v8351_v2, %v3546_v34 }
 0x819   : > { %v3544_v15 = vpop.xlane.xlu0 %3543 }
 0x81a   : > { %v8434_v0 = vpop.eup %6410  ;;  %v3593_v57 = vmul.f32 1.442695, %v3564_v59  ;;  %v3563_v22 = vsub.f32 %v8354_v6, %v3544_v15  ;;  %v9166_v6 = vld [vmem:[#allocation15_spill] sm:$0xff] }
 0x81b   : > { %3621 = vadd.xlane.f32.xlu1 %v8434_v0  ;;  %3619 = vadd.xlane.f32.xlu0 %v8432_v36  ;;  %v2380_v23 = vadd.f32 %v9167_v58, %v9166_v6 }
 0x81c   : > { %6412 = vpow2.f32 %v3593_v57  ;;  %v3591_v19 = vmul.f32 1.442695, %v3563_v22  ;;  %v9180_v22 = vld [vmem:[#allocation21_spill] sm:$0xff] }
 0x81e   : > { %6414 = vpow2.f32 %v3591_v19  ;;  %v9181_v19 = vld [vmem:[#allocation19_spill] sm:$0xff] }
 0x81f   : > { %v2425_v26 = vadd.f32 %v9181_v19, %v9180_v22 }
 0x829   : > { %v8439_v51 = vpop.eup %6412 }
 0x82a   : > { %3625 = vadd.xlane.f32.xlu1 %v8439_v51 }
 0x82b   : > { %v8442_v2 = vpop.eup %6414 }
 0x82c   : > { %v5865_v1 = vpop.f32.mrf.mxu0  ;;  %3623 = vadd.xlane.f32.xlu0 %v8442_v2 }
 0x82d   : > { %v8449_v48 = vadd.f32 %v5865_v1, %v2385_v20  ;;  %v9182_v20 = vld [vmem:[#allocation2_spill] sm:$0xff] }
 0x82e   : > { %v3151_v54 = vpop.f32.mrf.mxu0  ;;  %v9183_v1 = vld [vmem:[#allocation30_spill] sm:$0xff] }
 0x82f   : > { %v8451_v56 = vadd.f32 %v3151_v54, %v2380_v23  ;;  %v2420_v6 = vadd.f32 %v9183_v1, %v9182_v20 }
 0x832   : > { %v5868_v30 = vpop.f32.mrf.mxu0 }
 0x833   : > { %v8457_v24 = vadd.f32 %v5868_v30, %v2395_v4 }
 0x834   : > { %v3161_v17 = vpop.f32.mrf.mxu0 }
 0x835   : > { %v8459_v9 = vadd.f32 %v3161_v17, %v2390_v8  ;;  %v2430_v8 = vadd.f32 %v9187_v32, %v9186_v60 }
 0x837   : > { %v5871_v7 = vpop.f32.mrf.mxu0 }
 0x838   : > { %v8465_v42 = vadd.f32 %v5871_v7, %v2405_v3  ;;  %v9189_v3 = vld [vmem:[#allocation33_spill] sm:$0xff] }
 0x839   : > { %v3171_v43 = vpop.f32.mrf.mxu0  ;;  %v2445_v7 = vadd.f32 %v9189_v3, %v9188_v37 }
 0x83a   : > { %v8467_v5 = vadd.f32 %v3171_v43, %v2400_v27  ;;  %v9190_v27 = vld [vmem:[#allocation18_spill] sm:$0xff] }
 0x83b   : > { %v9191_v43 = vld [vmem:[#allocation34_spill] sm:$0xff] }
 0x83c   : > { %v2440_v14 = vadd.f32 %v9191_v43, %v9190_v27 }
 0x83e   : > { %v5874_v41 = vpop.f32.mrf.mxu0 }
 0x83f   : > { %v8473_v40 = vadd.f32 %v5874_v41, %v2415_v49  ;;  %v9192_v41 = vld [vmem:[#allocation10_spill] sm:$0xff] }
 0x840   : > { %v3181_v50 = vpop.f32.mrf.mxu0  ;;  %v2455_v29 = vadd.f32 %v9193_v39, %v9192_v41 }
 0x841   : > { %v8475_v62 = vadd.f32 %v3181_v50, %v2410_v28 }
 0x858   : > { %v3550_v21 = vpop.xlane.xlu1 %3549 }
 0x859   : > { %v3566_v12 = vsub.f32 %v8378_v10, %v3550_v21  ;;  %v9184_v10 = vld [vmem:[#allocation9_spill] sm:$0xff]  ;;  %v9194_v21 = vld [vmem:[#allocation23_spill] sm:$0xff] }
 0x85a   : > { %v3548_v34 = vpop.xlane.xlu0 %3547  ;;  %v2435_v38 = vadd.f32 %v9185_v46, %v9184_v10 }
 0x85b   : > { %v3597_v59 = vmul.f32 1.442695, %v3566_v12  ;;  %v3565_v15 = vsub.f32 %v8383_v63, %v3548_v34  ;;  %v9195_v12 = vld [vmem:[#allocation36_spill] sm:$0xff] }
 0x85c   : > { %v2450_v34 = vadd.f32 %v9195_v12, %v9194_v21 }
 0x85d   : > { %6416 = vpow2.f32 %v3597_v59  ;;  %v3595_v57 = vmul.f32 1.442695, %v3565_v15 }
 0x85f   : > { %6418 = vpow2.f32 %v3595_v57 }
 0x868   : > { %v5877_v31 = vpop.f32.mrf.mxu0 }
 0x869   : > { %v8483_v58 = vadd.f32 %v5877_v31, %v2425_v26  ;;  %v3602_v3 = vpop.xlane.xlu1 %3601 }
 0x86a   : > { %v8485_v23 = vpop.eup %6416  ;;  %v3191_v54 = vpop.f32.mrf.mxu0 }
 0x86b   : > { %v8489_v4 = vadd.f32 %v3191_v54, %v2420_v6  ;;  %3629 = vadd.xlane.f32.xlu1 %v8485_v23 }
 0x86c   : > { %v8492_v63 = vpop.eup %6418  ;;  %v5880_v30 = vpop.f32.mrf.mxu0 }
 0x86d   : > { %v8496_v17 = vadd.f32 %v5880_v30, %v2435_v38  ;;  %3627 = vadd.xlane.f32.xlu0 %v8492_v63 }
 0x86e   : > { %v3201_v16 = vpop.f32.mrf.mxu0 }
 0x86f   : > { %v8501_v45 = vadd.f32 %v3201_v16, %v2430_v8 }
 0x870   : > { %v5883_v35 = vpop.f32.mrf.mxu0 }
 0x871   : > { %v8505_v55 = vadd.f32 %v5883_v35, %v2445_v7 }
 0x872   : > { %v3211_v49 = vpop.f32.mrf.mxu0 }
 0x873   : > { %v8509_v28 = vadd.f32 %v3211_v49, %v2440_v14 }
 0x874   : > { %v5886_v50 = vpop.f32.mrf.mxu0 }
 0x875   : > { %v8513_v59 = vadd.f32 %v5886_v50, %v2455_v29 }
 0x876   : > { %v3221_v15 = vpop.f32.mrf.mxu0 }
 0x877   : > { %v8515_v57 = vadd.f32 %v3221_v15, %v2450_v34 }
 0x878   : > { %v8517_v22 = vpop.f32.mrf.mxu0 }
 0x87a   : > { %v8519_v19 = vpop.f32.mrf.mxu0 }
 0x87c   : > { %v5950_v26 = vpop.f32.mrf.mxu0 }
 0x87e   : > { %v3804_v31 = vpop.f32.mrf.mxu0 }
 0x880   : > { %v5953_v20 = vpop.f32.mrf.mxu0 }
 0x882   : > { %v3814_v1 = vpop.f32.mrf.mxu0 }
 0x884   : > { %v5956_v6 = vpop.f32.mrf.mxu0 }
 0x886   : > { %v3824_v54 = vpop.f32.mrf.mxu0 }
 0x888   : > { %v5959_v10 = vpop.f32.mrf.mxu0 }
 0x88a   : > { %v3834_v46 = vpop.f32.mrf.mxu0 }
 0x88c   : > { %v5962_v38 = vpop.f32.mrf.mxu0 }
 0x88e   : > { %v3844_v30 = vpop.f32.mrf.mxu0 }
 0x890   : > { %v5965_v60 = vpop.f32.mrf.mxu0  ;;  %v3600_v32 = vpop.xlane.xlu0 %3599 }
 0x891   : > { %6420 = vrcp.f32 %v3600_v32 }
 0x892   : > { %v3854_v8 = vpop.f32.mrf.mxu0  ;;  %6422 = vrcp.f32 %v3602_v3 }
 0x894   : > { %v5968_v16 = vpop.f32.mrf.mxu0  ;;  %v3604_v7 = vpop.xlane.xlu0 %3603 }
 0x895   : > { %5969 = vmatprep.subr.mxu0 %v5968_v16  ;;  %v3606_v35 = vpop.xlane.xlu1 %3605  ;;  %6424 = vrcp.f32 %v3604_v7 }
 0x896   : > { %v3864_v37 = vpop.f32.mrf.mxu0  ;;  %5970 = vmatpush3.msra.mxu0 %v5968_v16  ;;  %6426 = vrcp.f32 %v3606_v35 }
 0x897   : > { %5971 = vmatprep.subr.mxu0 %v3864_v37 }
 0x898   : > { %5972 = vmatpush3.msra.mxu0 %v3864_v37  ;;  %v3608_v43 = vpop.xlane.xlu0 %3607 }
 0x899   : > { %5973 = vmatprep.subr.mxu0 %v5965_v60  ;;  %v3610_v49 = vpop.xlane.xlu1 %3609  ;;  %6428 = vrcp.f32 %v3608_v43 }
 0x89a   : > { %5974 = vmatpush3.msra.mxu0 %v5965_v60  ;;  %6430 = vrcp.f32 %v3610_v49 }
 0x89b   : > { %5975 = vmatprep.subr.mxu0 %v3854_v8 }
 0x89c   : > { %5976 = vmatpush3.msra.mxu0 %v3854_v8  ;;  %v3612_v41 = vpop.xlane.xlu0 %3611 }
 0x89d   : > { %5977 = vmatprep.subr.mxu0 %v5962_v38  ;;  %v3614_v39 = vpop.xlane.xlu1 %3613  ;;  %6432 = vrcp.f32 %v3612_v41 }
 0x89e   : > { %v6421_v27 = vpop.eup %6420  ;;  %5978 = vmatpush3.msra.mxu0 %v5962_v38  ;;  %6434 = vrcp.f32 %v3614_v39  ;;  %v6501_v39 = vld [vmem:[%s6621_s14] sm:$0xff] }
 0x89f   : > { %5979 = vmatprep.subr.mxu0 %v3844_v30  ;;  %v3647_v14 = vmul.f32 %v6421_v27, %v8403_v44  ;;  %v6423_v50 = vpop.eup %6422 }
 0x8a0   : > { %5980 = vmatpush3.msra.mxu0 %v3844_v30  ;;  %v3616_v44 = vpop.xlane.xlu0 %3615  ;;  %v3648_v34 = vmul.f32 %v6423_v50, %v8390_v53 }
 0x8a1   : > { %5981 = vmatprep.subr.mxu0 %v5959_v10  ;;  %6001 = vmatprep.mubr.f32.mxu0 %v3647_v14  ;;  %v3618_v29 = vpop.xlane.xlu1 %3617  ;;  %6436 = vrcp.f32 %v3616_v44  ;;  %v6500_v14 = vld [vmem:[%s6621_s14 + $0x8] sm:$0xff] }
 0x8a2   : > { %5982 = vmatpush3.msra.mxu0 %v5959_v10  ;;  %v6425_v21 = vpop.eup %6424  ;;  %6438 = vrcp.f32 %v3618_v29 }
 0x8a3   : > { %5983 = vmatprep.subr.mxu0 %v3834_v46  ;;  %v6427_v15 = vpop.eup %6426 }
 0x8a4   : > { %5984 = vmatpush3.msra.mxu0 %v3834_v46  ;;  %v3620_v12 = vpop.xlane.xlu0 %3619 }
 0x8a5   : > { %5985 = vmatprep.subr.mxu0 %v5956_v6  ;;  %6440 = vrcp.f32 %v3620_v12 }
 0x8a6   : > { %5986 = vmatpush3.msra.mxu0 %v5956_v6  ;;  %v3650_v6 = vmul.f32 %v6427_v15, %v8409_v25 }
 0x8a7   : > { %5987 = vmatprep.subr.mxu0 %v3824_v54 }
 0x8a8   : > { %5988 = vmatpush3.msra.mxu0 %v3824_v54 }
 0x8a9   : > { %5989 = vmatprep.subr.mxu0 %v5953_v20 }
 0x8aa   : > { %5990 = vmatpush3.msra.mxu0 %v5953_v20  ;;  %v3622_v20 = vpop.xlane.xlu1 %3621 }
 0x8ab   : > { %5991 = vmatprep.subr.mxu0 %v3814_v1  ;;  %6442 = vrcp.f32 %v3622_v20 }
 0x8ac   : > { %5992 = vmatpush3.msra.mxu0 %v3814_v1  ;;  %v6429_v1 = vpop.eup %6428 }
 0x8ad   : > { %5993 = vmatprep.subr.mxu0 %v5950_v26  ;;  %v3651_v53 = vmul.f32 %v6429_v1, %v8413_v11 }
 0x8ae   : > { %5994 = vmatpush3.msra.mxu0 %v5950_v26  ;;  %v3649_v26 = vmul.f32 %v6425_v21, %v8406_v61  ;;  %v6502_v21 = vld [vmem:[%s6621_s14 + $0x18] sm:$0xff] }
 0x8af   : > { %5995 = vmatprep.subr.mxu0 %v3804_v31 }
 0x8b0   : > { %5996 = vmatpush3.msra.mxu0 %v3804_v31 }
 0x8b1   : > { %5997 = vmatprep.subr.mxu0 %v8517_v22 }
 0x8b2   : > { %5998 = vmatpush3.msra.mxu0 %v8517_v22  ;;  %v6431_v22 = vpop.eup %6430 }
 0x8b3   : > { %5999 = vmatprep.subr.mxu0 %v8519_v19  ;;  %v3626_v54 = vpop.xlane.xlu1 %3625  ;;  %v6433_v10 = vpop.eup %6432 }
 0x8b4   : > { %6000 = vmatpush3.msra.mxu0 %v8519_v19  ;;  %v3652_v19 = vmul.f32 %v6431_v22, %v8415_v33  ;;  %v6435_v46 = vpop.eup %6434  ;;  %v3653_v61 = vmul.f32 %v6433_v10, %v8419_v52  ;;  %v6504_v22 = vld [vmem:[%s6621_s14 + $0x28] sm:$0xff] }
 0x8b5   : > { %6002 = vmatmul.mubr.f32.vlgmr.msra.gmra.mxu0 %v3648_v34  ;;  %v3624_v31 = vpop.xlane.xlu0 %3623  ;;  %v6437_v38 = vpop.eup %6436  ;;  %v3654_v30 = vmul.f32 %v6435_v46, %v8421_v13  ;;  %v6505_v46 = vld [vmem:[%s6621_s14 + $0x20] sm:$0xff] }
 0x8b6   : > { %6004 = vmatprep.mubr.f32.mxu0 %v3649_v26  ;;  %6444 = vrcp.f32 %v3624_v31  ;;  %v6439_v25 = vpop.eup %6438  ;;  %v3655_v60 = vmul.f32 %v6437_v38, %v8425_v47  ;;  %v6503_v26 = vld [vmem:[%s6621_s14 + $0x10] sm:$0xff] }
 0x8b7   : > { %6446 = vrcp.f32 %v3626_v54  ;;  %v6441_v32 = vpop.eup %6440  ;;  %v3656_v11 = vmul.f32 %v6439_v25, %v8427_v18 }
 0x8b8   : > { %v6443_v8 = vpop.eup %6442  ;;  %v3657_v16 = vmul.f32 %v6441_v32, %v8432_v36 }
 0x8b9   : > { %6005 = vmatmul.mubr.f32.gmra.mxu0 %v3650_v6  ;;  %v3658_v52 = vmul.f32 %v6443_v8, %v8434_v0 }
 0x8ba   : > { %6007 = vmatprep.mubr.f32.mxu0 %v3651_v53 }
 0x8bd   : > { %6008 = vmatmul.mubr.f32.gmra.mxu0 %v3652_v19 }
 0x8be   : > { %6010 = vmatprep.mubr.f32.mxu0 %v3653_v61 }
 0x8c1   : > { %6011 = vmatmul.mubr.f32.gmra.mxu0 %v3654_v30 }
 0x8c2   : > { %6013 = vmatprep.mubr.f32.mxu0 %v3655_v60  ;;  %v6506_v60 = vld [vmem:[%s6621_s14 + $0x38] sm:$0xff] }
 0x8c3   : > { %v6445_v33 = vpop.eup %6444 }
 0x8c4   : > { %v6447_v37 = vpop.eup %6446  ;;  %v3659_v3 = vmul.f32 %v6445_v33, %v8442_v2  ;;  %v6507_v33 = vld [vmem:[%s6621_s14 + $0x30] sm:$0xff] }
 0x8c5   : > { %6014 = vmatmul.mubr.f32.gmra.mxu0 %v3656_v11  ;;  %v3660_v13 = vmul.f32 %v6447_v37, %v8439_v51  ;;  %v8545_v51 = vld [vmem:[%s9030_s6] ss:$0 sm:$0xff] }
 0x8c6   : > { %6016 = vmatprep.mubr.f32.mxu0 %v3657_v16 }
 0x8c9   : > { %6017 = vmatmul.mubr.f32.gmra.mxu0 %v3658_v52 }
 0x8ca   : > { %6019 = vmatprep.mubr.f32.mxu0 %v3659_v3 }
 0x8cd   : > { %6020 = vmatmul.mubr.f32.gmra.mxu0 %v3660_v13 }
 0x8f4   : > { %v3630_v47 = vpop.xlane.xlu1 %3629 }
 0x8f5   : > { %6448 = vrcp.f32 %v3630_v47  ;;  %v6508_v47 = vld [vmem:[%s6621_s14 + $0x48] sm:$0xff] }
 0x8f6   : > { %v3628_v18 = vpop.xlane.xlu0 %3627 }
 0x8f7   : > { %6450 = vrcp.f32 %v3628_v18 }
 0x902   : > { %v6449_v36 = vpop.eup %6448 }
 0x903   : > { %v3662_v0 = vmul.f32 %v6449_v36, %v8485_v23 }
 0x904   : > { %v6451_v7 = vpop.eup %6450 }
 0x905   : > { %v3661_v35 = vmul.f32 %v6451_v7, %v8492_v63 }
 0x907   : > { %6022 = vmatprep.mubr.f32.mxu0 %v3661_v35 }
 0x908   : > { %6023 = vmatmul.mubr.f32.gmra.mxu0 %v3662_v0  ;;  %v6509_v0 = vld [vmem:[%s6621_s14 + $0x40] sm:$0xff] }
 0x975   : > { %v6003_v2 = vpop.f32.mrf.mxu0 }
 0x976   : > { %v4019_v27 = vadd.f32 %v6003_v2, %v8449_v48 }
 0x977   : > { %v3939_v43 = vpop.f32.mrf.mxu0 }
 0x978   : > { %v4035_v49 = vadd.f32 %v6500_v14, %v4019_v27  ;;  %v4018_v41 = vadd.f32 %v3939_v43, %v8451_v56 }
 0x979   : > { %v6006_v63 = vpop.f32.mrf.mxu0 }
 0x97a   : > { %v8550_v23 = vadd.f32 %v8545_v51, %v4035_v49  ;;  %v4034_v44 = vadd.f32 %v6501_v39, %v4018_v41  ;;  %v4021_v29 = vadd.f32 %v6006_v63, %v8457_v24  ;;  %v6510_v49 = vld [vmem:[%s6621_s14 + $0x58] sm:$0xff] }
 0x97b   : > { %v3949_v48 = vpop.f32.mrf.mxu0 }
 0x97c   : > { %v8555_v50 = vadd.f32 %v8545_v51, %v4034_v44  ;;  %v4037_v12 = vadd.f32 %v6502_v21, %v4021_v29  ;;  %v4020_v34 = vadd.f32 %v3949_v48, %v8459_v9  ;;  %v4078_v56 = vsel %vm462_vm0, %v8550_v23, 0.0  ;;  %v6511_v29 = vld [vmem:[%s6621_s14 + $0x50] sm:$0xff] }
 0x97d   : > { %4079 = vadd.xlane.f32.xlu1 %v4078_v56  ;;  %v6009_v15 = vpop.f32.mrf.mxu0  ;;  %v6512_v56 = vld [vmem:[%s6621_s14 + $0x68] sm:$0xff] }
 0x97e   : > { %v8562_v20 = vadd.f32 %v8545_v51, %v4037_v12  ;;  %v4036_v24 = vadd.f32 %v6503_v26, %v4020_v34  ;;  %v4023_v1 = vadd.f32 %v6009_v15, %v8465_v42  ;;  %v4075_v31 = vsel %vm462_vm0, %v8555_v50, 0.0 }
 0x97f   : > { %4076 = vadd.xlane.f32.xlu0 %v4075_v31  ;;  %v3959_v6 = vpop.f32.mrf.mxu0 }
 0x980   : > { %v8569_v9 = vadd.f32 %v8545_v51, %v4036_v24  ;;  %v4039_v54 = vadd.f32 %v6504_v22, %v4023_v1  ;;  %v4022_v53 = vadd.f32 %v3959_v6, %v8467_v5  ;;  %v4084_v10 = vsel %vm462_vm0, %v8562_v20, 0.0 }
 0x981   : > { %4085 = vadd.xlane.f32.xlu1 %v4084_v10  ;;  %v6012_v19 = vpop.f32.mrf.mxu0 }
 0x982   : > { %v8576_v42 = vadd.f32 %v8545_v51, %v4039_v54  ;;  %v4038_v61 = vadd.f32 %v6505_v46, %v4022_v53  ;;  %v4025_v38 = vadd.f32 %v6012_v19, %v8473_v40  ;;  %v4081_v30 = vsel %vm462_vm0, %v8569_v9, 0.0  ;;  %v6514_v46 = vld [vmem:[%s6621_s14 + $0x78] sm:$0xff] }
 0x983   : > { %4082 = vadd.xlane.f32.xlu0 %v4081_v30  ;;  %v3969_v25 = vpop.f32.mrf.mxu0 }
 0x984   : > { %v8583_v5 = vadd.f32 %v8545_v51, %v4038_v61  ;;  %v4041_v32 = vadd.f32 %v6506_v60, %v4025_v38  ;;  %v4024_v11 = vadd.f32 %v3969_v25, %v8475_v62  ;;  %v4090_v8 = vsel %vm462_vm0, %v8576_v42, 0.0  ;;  %v6515_v25 = vld [vmem:[%s6621_s14 + $0x70] sm:$0xff] }
 0x985   : > { %4091 = vadd.xlane.f32.xlu1 %v4090_v8  ;;  %v6015_v16 = vpop.f32.mrf.mxu0 }
 0x986   : > { %v8590_v40 = vadd.f32 %v8545_v51, %v4041_v32  ;;  %v4040_v52 = vadd.f32 %v6507_v33, %v4024_v11  ;;  %v4027_v37 = vadd.f32 %v6015_v16, %v8483_v58  ;;  %v4087_v3 = vsel %vm462_vm0, %v8583_v5, 0.0 }
 0x987   : > { %4088 = vadd.xlane.f32.xlu0 %v4087_v3  ;;  %v3979_v13 = vpop.f32.mrf.mxu0 }
 0x988   : > { %v8597_v62 = vadd.f32 %v8545_v51, %v4040_v52  ;;  %v4043_v18 = vadd.f32 %v6508_v47, %v4027_v37  ;;  %v4026_v36 = vadd.f32 %v3979_v13, %v8489_v4  ;;  %v4096_v7 = vsel %vm462_vm0, %v8590_v40, 0.0 }
 0x989   : > { %4097 = vadd.xlane.f32.xlu1 %v4096_v7  ;;  %v6018_v35 = vpop.f32.mrf.mxu0 }
 0x98a   : > { %v8604_v58 = vadd.f32 %v8545_v51, %v4043_v18  ;;  %v4042_v2 = vadd.f32 %v6509_v0, %v4026_v36  ;;  %v4029_v27 = vadd.f32 %v6018_v35, %v8496_v17  ;;  %v4093_v43 = vsel %vm462_vm0, %v8597_v62, 0.0 }
 0x98b   : > { %4094 = vadd.xlane.f32.xlu0 %v4093_v43  ;;  %v3989_v14 = vpop.f32.mrf.mxu0 }
 0x98c   : > { %v8611_v4 = vadd.f32 %v8545_v51, %v4042_v2  ;;  %v4045_v41 = vadd.f32 %v6510_v49, %v4029_v27  ;;  %v4028_v63 = vadd.f32 %v3989_v14, %v8501_v45  ;;  %v4102_v39 = vsel %vm462_vm0, %v8604_v58, 0.0 }
 0x98d   : > { %4103 = vadd.xlane.f32.xlu1 %v4102_v39  ;;  %v6021_v44 = vpop.f32.mrf.mxu0 }
 0x98e   : > { %v8618_v17 = vadd.f32 %v8545_v51, %v4045_v41  ;;  %v4044_v48 = vadd.f32 %v6511_v29, %v4028_v63  ;;  %v4031_v21 = vadd.f32 %v6021_v44, %v8505_v55  ;;  %v4099_v12 = vsel %vm462_vm0, %v8611_v4, 0.0  ;;  %v6513_v55 = vld [vmem:[%s6621_s14 + $0x60] sm:$0xff] }
 0x98f   : > { %4100 = vadd.xlane.f32.xlu0 %v4099_v12  ;;  %v3999_v34 = vpop.f32.mrf.mxu0 }
 0x990   : > { %v8625_v45 = vadd.f32 %v8545_v51, %v4044_v48  ;;  %v4047_v15 = vadd.f32 %v6512_v56, %v4031_v21  ;;  %v4030_v26 = vadd.f32 %v3999_v34, %v8509_v28  ;;  %v4108_v24 = vsel %vm462_vm0, %v8618_v17, 0.0 }
 0x991   : > { %4109 = vadd.xlane.f32.xlu1 %v4108_v24 }
 0x992   : > { %v8632_v1 = vadd.f32 %v8545_v51, %v4047_v15  ;;  %v4046_v31 = vadd.f32 %v6513_v55, %v4030_v26  ;;  %v4105_v6 = vsel %vm462_vm0, %v8625_v45, 0.0 }
 0x993   : > { %4106 = vadd.xlane.f32.xlu0 %v4105_v6 }
 0x994   : > { %v8638_v22 = vadd.f32 %v8545_v51, %v4046_v31  ;;  %v4114_v28 = vsel %vm462_vm0, %v8632_v1, 0.0 }
 0x995   : > { %4115 = vadd.xlane.f32.xlu1 %v4114_v28 }
 0x996   : > { %v4111_v54 = vsel %vm462_vm0, %v8638_v22, 0.0 }
 0x997   : > { %4112 = vadd.xlane.f32.xlu0 %v4111_v54 }
 0x9c8   : > { %v6024_v53 = vpop.f32.mrf.mxu0 }
 0x9c9   : > { %v4033_v10 = vadd.f32 %v6024_v53, %v8513_v59 }
 0x9ca   : > { %v4009_v19 = vpop.f32.mrf.mxu0 }
 0x9cb   : > { %v4049_v61 = vadd.f32 %v6514_v46, %v4033_v10  ;;  %v4032_v38 = vadd.f32 %v4009_v19, %v8515_v57 }
 0x9cd   : > { %v8648_v30 = vadd.f32 %v8545_v51, %v4049_v61  ;;  %v4048_v60 = vadd.f32 %v6515_v25, %v4032_v38 }
 0x9cf   : > { %v8652_v32 = vadd.f32 %v8545_v51, %v4048_v60  ;;  %v4120_v11 = vsel %vm462_vm0, %v8648_v30, 0.0 }
 0x9d0   : > { %4121 = vadd.xlane.f32.xlu1 %v4120_v11 }
 0x9d1   : > { %v4117_v59 = vsel %vm462_vm0, %v8652_v32, 0.0 }
 0x9d2   : > { %4118 = vadd.xlane.f32.xlu0 %v4117_v59 }
 0xa06   : > { %v4080_v8 = vpop.xlane.xlu1 %4079 }
 0xa07   : > { %v4124_v16 = vmul.f32 0.03125, %v4080_v8 }
 0xa08   : > { %v4077_v33 = vpop.xlane.xlu0 %4076 }
 0xa09   : > { %v8659_v57 = vsub.f32 %v8550_v23, %v4124_v16  ;;  %v4123_v52 = vmul.f32 0.03125, %v4077_v33 }
 0xa0a   : > { %v4086_v37 = vpop.xlane.xlu1 %4085 }
 0xa0b   : > { %v8662_v3 = vsub.f32 %v8555_v50, %v4123_v52  ;;  %v4126_v51 = vmul.f32 0.03125, %v4086_v37  ;;  %v4156_v13 = vmul.f32 %v8659_v57, %v8659_v57 }
 0xa0c   : > { %v4083_v47 = vpop.xlane.xlu0 %4082 }
 0xa0d   : > { %v8667_v18 = vsub.f32 %v8562_v20, %v4126_v51  ;;  %v4125_v36 = vmul.f32 0.03125, %v4083_v47  ;;  %v4174_v7 = vsel %vm462_vm0, %v4156_v13, 0.0  ;;  %v4155_v35 = vmul.f32 %v8662_v3, %v8662_v3 }
 0xa0e   : > { %v4092_v0 = vpop.xlane.xlu1 %4091  ;;  %4175 = vadd.xlane.f32.xlu1 %v4174_v7 }
 0xa0f   : > { %v8673_v2 = vsub.f32 %v8569_v9, %v4125_v36  ;;  %v4128_v27 = vmul.f32 0.03125, %v4092_v0  ;;  %v4171_v43 = vsel %vm462_vm0, %v4155_v35, 0.0  ;;  %v4158_v14 = vmul.f32 %v8667_v18, %v8667_v18 }
 0xa10   : > { %4172 = vadd.xlane.f32.xlu0 %v4171_v43  ;;  %v4089_v49 = vpop.xlane.xlu0 %4088 }
 0xa11   : > { %v8679_v41 = vsub.f32 %v8576_v42, %v4128_v27  ;;  %v4127_v63 = vmul.f32 0.03125, %v4089_v49  ;;  %v4180_v39 = vsel %vm462_vm0, %v4158_v14, 0.0  ;;  %v4157_v44 = vmul.f32 %v8673_v2, %v8673_v2 }
 0xa12   : > { %v4098_v29 = vpop.xlane.xlu1 %4097  ;;  %4181 = vadd.xlane.f32.xlu1 %v4180_v39 }
 0xa13   : > { %v8685_v48 = vsub.f32 %v8583_v5, %v4127_v63  ;;  %v4130_v21 = vmul.f32 0.03125, %v4098_v29  ;;  %v4177_v12 = vsel %vm462_vm0, %v4157_v44, 0.0  ;;  %v4160_v34 = vmul.f32 %v8679_v41, %v8679_v41 }
 0xa14   : > { %4178 = vadd.xlane.f32.xlu0 %v4177_v12  ;;  %v4095_v56 = vpop.xlane.xlu0 %4094 }
 0xa15   : > { %v8691_v15 = vsub.f32 %v8590_v40, %v4130_v21  ;;  %v4129_v26 = vmul.f32 0.03125, %v4095_v56  ;;  %v4186_v24 = vsel %vm462_vm0, %v4160_v34, 0.0  ;;  %v4159_v55 = vmul.f32 %v8685_v48, %v8685_v48  ;;  %v4330_v34 = vld [vmem:[%s9033_s9 + $0x18] sm:$0xff]  ;;  %v4329_v56 = vld [vmem:[%s9033_s9 + $0x10] sm:$0xff] }
 0xa16   : > { %v4104_v31 = vpop.xlane.xlu1 %4103  ;;  %4187 = vadd.xlane.f32.xlu1 %v4186_v24  ;;  %6025 = vmatprep.subr.mxu1 %v4330_v34  ;;  %v4327_v24 = vld [vmem:[%s9033_s9] sm:$0xff] }
 0xa17   : > { %v8697_v6 = vsub.f32 %v8597_v62, %v4129_v26  ;;  %v4132_v28 = vmul.f32 0.03125, %v4104_v31  ;;  %v4183_v54 = vsel %vm462_vm0, %v4159_v55, 0.0  ;;  %v4162_v53 = vmul.f32 %v8691_v15, %v8691_v15  ;;  %6026 = vmatpush3.msra.mxu1 %v4330_v34  ;;  %v4328_v26 = vld [vmem:[%s9033_s9 + $0x8] sm:$0xff] }
 0xa18   : > { %4184 = vadd.xlane.f32.xlu0 %v4183_v54  ;;  %v4101_v10 = vpop.xlane.xlu0 %4100  ;;  %6027 = vmatprep.subr.mxu1 %v4329_v56 }
 0xa19   : > { %v8703_v19 = vsub.f32 %v8604_v58, %v4132_v28  ;;  %v4131_v46 = vmul.f32 0.03125, %v4101_v10  ;;  %v4192_v61 = vsel %vm462_vm0, %v4162_v53, 0.0  ;;  %v4161_v38 = vmul.f32 %v8697_v6, %v8697_v6  ;;  %6028 = vmatpush3.msra.mxu1 %v4329_v56 }
 0xa1a   : > { %v4110_v25 = vpop.xlane.xlu1 %4109  ;;  %4193 = vadd.xlane.f32.xlu1 %v4192_v61  ;;  %6029 = vmatprep.subr.mxu1 %v4328_v26 }
 0xa1b   : > { %v8709_v60 = vsub.f32 %v8611_v4, %v4131_v46  ;;  %v4134_v11 = vmul.f32 0.03125, %v4110_v25  ;;  %v4189_v59 = vsel %vm462_vm0, %v4161_v38, 0.0  ;;  %v4164_v8 = vmul.f32 %v8703_v19, %v8703_v19  ;;  %6030 = vmatpush3.msra.mxu1 %v4328_v26 }
 0xa1c   : > { %4190 = vadd.xlane.f32.xlu0 %v4189_v59  ;;  %v4107_v16 = vpop.xlane.xlu0 %4106  ;;  %6031 = vmatprep.subr.mxu1 %v4327_v24  ;;  %v8774_v59 = vld [vmem:[%s9035_s11 + $0x70] sm:$0xff] }
 0xa1d   : > { %v8715_v33 = vsub.f32 %v8618_v17, %v4134_v11  ;;  %v4133_v52 = vmul.f32 0.03125, %v4107_v16  ;;  %v4198_v37 = vsel %vm462_vm0, %v4164_v8, 0.0  ;;  %v4163_v51 = vmul.f32 %v8709_v60, %v8709_v60  ;;  %6032 = vmatpush3.msra.mxu1 %v4327_v24  ;;  %v8769_v11 = vld [vmem:[%s9035_s11 + $0x78] sm:$0xff]  ;;  %v8782_v8 = vld [vmem:[%s9035_s11 + $0x68] sm:$0xff]  ;;  %v8789_v16 = vld [vmem:[%s9035_s11 + $0x60] sm:$0xff] }
 0xa1e   : > { %v4116_v13 = vpop.xlane.xlu1 %4115  ;;  %4199 = vadd.xlane.f32.xlu1 %v4198_v37  ;;  %6057 = vmatprep.subr.mxu0 %v8769_v11  ;;  %v8803_v37 = vld [vmem:[%s9035_s11 + $0x50] sm:$0xff] }
 0xa1f   : > { %v8721_v47 = vsub.f32 %v8625_v45, %v4133_v52  ;;  %v4136_v36 = vmul.f32 0.03125, %v4116_v13  ;;  %v4195_v7 = vsel %vm462_vm0, %v4163_v51, 0.0  ;;  %v4166_v35 = vmul.f32 %v8715_v33, %v8715_v33  ;;  %6113 = vmatprep.subr.mxu1 %v8769_v11  ;;  %6058 = vmatpush3.msra.mxu0 %v8769_v11  ;;  %v8796_v52 = vld [vmem:[%s9035_s11 + $0x58] sm:$0xff]  ;;  %v8810_v51 = vld [vmem:[%s9035_s11 + $0x48] sm:$0xff]  ;;  %v8817_v13 = vld [vmem:[%s9035_s11 + $0x40] sm:$0xff] }
 0xa20   : > { %4196 = vadd.xlane.f32.xlu0 %v4195_v7  ;;  %v4113_v0 = vpop.xlane.xlu0 %4112  ;;  %6059 = vmatprep.subr.mxu0 %v8774_v59  ;;  %v8831_v7 = vld [vmem:[%s9035_s11 + $0x30] sm:$0xff] }
 0xa21   : > { %v8727_v27 = vsub.f32 %v8632_v1, %v4136_v36  ;;  %v4135_v43 = vmul.f32 0.03125, %v4113_v0  ;;  %v4204_v14 = vsel %vm462_vm0, %v4166_v35, 0.0  ;;  %v4165_v49 = vmul.f32 %v8721_v47, %v8721_v47  ;;  %6060 = vmatpush3.msra.mxu0 %v8774_v59  ;;  %v8824_v36 = vld [vmem:[%s9035_s11 + $0x38] sm:$0xff] }
 0xa22   : > { %4205 = vadd.xlane.f32.xlu1 %v4204_v14  ;;  %6061 = vmatprep.subr.mxu0 %v8782_v8 }
 0xa23   : > { %v8733_v63 = vsub.f32 %v8638_v22, %v4135_v43  ;;  %v4201_v39 = vsel %vm462_vm0, %v4165_v49, 0.0  ;;  %v4168_v44 = vmul.f32 %v8727_v27, %v8727_v27  ;;  %6062 = vmatpush3.msra.mxu0 %v8782_v8  ;;  %v8838_v43 = vld [vmem:[%s9035_s11 + $0x28] sm:$0xff] }
 0xa24   : > { %4202 = vadd.xlane.f32.xlu0 %v4201_v39  ;;  %6063 = vmatprep.subr.mxu0 %v8789_v16 }
 0xa25   : > { %v4210_v29 = vsel %vm462_vm0, %v4168_v44, 0.0  ;;  %v4167_v21 = vmul.f32 %v8733_v63, %v8733_v63  ;;  %6064 = vmatpush3.msra.mxu0 %v8789_v16  ;;  %v8845_v44 = vld [vmem:[%s9035_s11 + $0x20] sm:$0xff] }
 0xa26   : > { %4211 = vadd.xlane.f32.xlu1 %v4210_v29  ;;  %6065 = vmatprep.subr.mxu0 %v8796_v52 }
 0xa27   : > { %v4207_v12 = vsel %vm462_vm0, %v4167_v21, 0.0  ;;  %6066 = vmatpush3.msra.mxu0 %v8796_v52 }
 0xa28   : > { %4208 = vadd.xlane.f32.xlu0 %v4207_v12  ;;  %6067 = vmatprep.subr.mxu0 %v8803_v37 }
 0xa29   : > { %6068 = vmatpush3.msra.mxu0 %v8803_v37 }
 0xa2a   : > { %6069 = vmatprep.subr.mxu0 %v8810_v51 }
 0xa2b   : > { %6070 = vmatpush3.msra.mxu0 %v8810_v51 }
 0xa2c   : > { %6071 = vmatprep.subr.mxu0 %v8817_v13 }
 0xa2d   : > { %6072 = vmatpush3.msra.mxu0 %v8817_v13 }
 0xa2e   : > { %6073 = vmatprep.subr.mxu0 %v8824_v36 }
 0xa2f   : > { %6074 = vmatpush3.msra.mxu0 %v8824_v36 }
 0xa30   : > { %6075 = vmatprep.subr.mxu0 %v8831_v7 }
 0xa31   : > { %6076 = vmatpush3.msra.mxu0 %v8831_v7 }
 0xa32   : > { %6077 = vmatprep.subr.mxu0 %v8838_v43 }
 0xa33   : > { %6078 = vmatpush3.msra.mxu0 %v8838_v43 }
 0xa34   : > { %6079 = vmatprep.subr.mxu0 %v8845_v44 }
 0xa35   : > { %6080 = vmatpush3.msra.mxu0 %v8845_v44 }
 0xa59   : > { %v4122_v55 = vpop.xlane.xlu1 %4121 }
 0xa5a   : > { %v4138_v31 = vmul.f32 0.03125, %v4122_v55 }
 0xa5b   : > { %v4119_v28 = vpop.xlane.xlu0 %4118 }
 0xa5c   : > { %v8755_v54 = vsub.f32 %v8648_v30, %v4138_v31  ;;  %v4137_v53 = vmul.f32 0.03125, %v4119_v28 }
 0xa5e   : > { %v8758_v10 = vsub.f32 %v8652_v32, %v4137_v53  ;;  %v4170_v46 = vmul.f32 %v8755_v54, %v8755_v54 }
 0xa60   : > { %v4216_v61 = vsel %vm462_vm0, %v4170_v46, 0.0  ;;  %v4169_v38 = vmul.f32 %v8758_v10, %v8758_v10 }
 0xa61   : > { %4217 = vadd.xlane.f32.xlu1 %v4216_v61 }
 0xa62   : > { %v4213_v25 = vsel %vm462_vm0, %v4169_v38, 0.0 }
 0xa63   : > { %4214 = vadd.xlane.f32.xlu0 %v4213_v25 }
 0xa97   : > { %v4176_v35 = vpop.xlane.xlu1 %4175 }
 0xa98   : > { %v4220_v0 = vmul.f32 0.03125, %v4176_v35 }
 0xa99   : > { %v4173_v14 = vpop.xlane.xlu0 %4172 }
 0xa9a   : > { %v4236_v49 = vadd.f32 1e-05, %v4220_v0  ;;  %v4219_v39 = vmul.f32 0.03125, %v4173_v14 }
 0xa9b   : > { %v4182_v29 = vpop.xlane.xlu1 %4181 }
 0xa9c   : > { %6452 = vrsqrt.f32 %v4236_v49  ;;  %v4235_v21 = vadd.f32 1e-05, %v4219_v39  ;;  %v4222_v12 = vmul.f32 0.03125, %v4182_v29 }
 0xa9d   : > { %v4179_v34 = vpop.xlane.xlu0 %4178 }
 0xa9e   : > { %6454 = vrsqrt.f32 %v4235_v21  ;;  %v4238_v56 = vadd.f32 1e-05, %v4222_v12  ;;  %v4221_v26 = vmul.f32 0.03125, %v4179_v34  ;;  %v8854_v34 = vld [vmem:[%s9031_s7] ss:$0 sm:$0xff] }
 0xa9f   : > { %v4188_v24 = vpop.xlane.xlu1 %4187 }
 0xaa0   : > { %6456 = vrsqrt.f32 %v4238_v56  ;;  %v4237_v55 = vadd.f32 1e-05, %v4221_v26  ;;  %v4224_v31 = vmul.f32 0.03125, %v4188_v24 }
 0xaa1   : > { %v4185_v28 = vpop.xlane.xlu0 %4184 }
 0xaa2   : > { %6458 = vrsqrt.f32 %v4237_v55  ;;  %v4240_v53 = vadd.f32 1e-05, %v4224_v31  ;;  %v4223_v46 = vmul.f32 0.03125, %v4185_v28 }
 0xaa3   : > { %v4194_v61 = vpop.xlane.xlu1 %4193 }
 0xaa4   : > { %6460 = vrsqrt.f32 %v4240_v53  ;;  %v4239_v38 = vadd.f32 1e-05, %v4223_v46  ;;  %v4226_v25 = vmul.f32 0.03125, %v4194_v61 }
 0xaa5   : > { %v4191_v35 = vpop.xlane.xlu0 %4190 }
 0xaa6   : > { %6462 = vrsqrt.f32 %v4239_v38  ;;  %v4242_v0 = vadd.f32 1e-05, %v4226_v25  ;;  %v4225_v14 = vmul.f32 0.03125, %v4191_v35 }
 0xaa7   : > { %v4200_v49 = vpop.xlane.xlu1 %4199 }
 0xaa8   : > { %6464 = vrsqrt.f32 %v4242_v0  ;;  %v4241_v39 = vadd.f32 1e-05, %v4225_v14  ;;  %v4228_v29 = vmul.f32 0.03125, %v4200_v49 }
 0xaa9   : > { %v6453_v21 = vpop.eup %6452  ;;  %v4197_v12 = vpop.xlane.xlu0 %4196 }
 0xaaa   : > { %v4268_v56 = vmul.f32 %v6453_v21, %v8659_v57  ;;  %6466 = vrsqrt.f32 %v4241_v39  ;;  %v4244_v26 = vadd.f32 1e-05, %v4228_v29  ;;  %v4227_v24 = vmul.f32 0.03125, %v4197_v12  ;;  %v8862_v57 = vld [vmem:[%s9032_s8] ss:$0 sm:$0xff] }
 0xaab   : > { %v6455_v55 = vpop.eup %6454  ;;  %v4206_v31 = vpop.xlane.xlu1 %4205 }
 0xaac   : > { %6468 = vrsqrt.f32 %v4244_v26  ;;  %v4243_v28 = vadd.f32 1e-05, %v4227_v24  ;;  %v4230_v53 = vmul.f32 0.03125, %v4206_v31  ;;  %v4290_v61 = vmul.f32 %v8854_v34, %v4268_v56 }
 0xaad   : > { %v6457_v46 = vpop.eup %6456  ;;  %v4203_v38 = vpop.xlane.xlu0 %4202  ;;  %v4267_v25 = vmul.f32 %v6455_v55, %v8662_v3 }
 0xaae   : > { %6470 = vrsqrt.f32 %v4243_v28  ;;  %v4246_v35 = vadd.f32 1e-05, %v4230_v53  ;;  %v4229_v0 = vmul.f32 0.03125, %v4203_v38  ;;  %v4270_v29 = vmul.f32 %v6457_v46, %v8667_v18 }
 0xaaf   : > { %v6459_v14 = vpop.eup %6458  ;;  %v4212_v49 = vpop.xlane.xlu1 %4211  ;;  %v4289_v39 = vmul.f32 %v8854_v34, %v4267_v25  ;;  %v4312_v55 = vadd.f32 %v8862_v57, %v4290_v61 }
 0xab0   : > { %6472 = vrsqrt.f32 %v4246_v35  ;;  %v4245_v21 = vadd.f32 1e-05, %v4229_v0  ;;  %v4232_v12 = vmul.f32 0.03125, %v4212_v49  ;;  %v4269_v56 = vmul.f32 %v6459_v14, %v8673_v2 }
 0xab1   : > { %v6461_v3 = vpop.eup %6460  ;;  %v4209_v26 = vpop.xlane.xlu0 %4208  ;;  %v4311_v24 = vadd.f32 %v8862_v57, %v4289_v39  ;;  %v4292_v31 = vmul.f32 %v8854_v34, %v4270_v29 }
 0xab2   : > { %6474 = vrsqrt.f32 %v4245_v21  ;;  %v4248_v28 = vadd.f32 1e-05, %v4232_v12  ;;  %v4231_v53 = vmul.f32 0.03125, %v4209_v26  ;;  %v4291_v38 = vmul.f32 %v8854_v34, %v4269_v56 }
 0xab3   : > { %v6463_v25 = vpop.eup %6462  ;;  %6033 = vmatprep.mubr.msk.f32.mxu1 %vm462_vm0, %v4311_v24  ;;  %v4272_v18 = vmul.f32 %v6461_v3, %v8679_v41  ;;  %v4314_v14 = vadd.f32 %v8862_v57, %v4292_v31 }
 0xab4   : > { %6476 = vrsqrt.f32 %v4248_v28  ;;  %v4247_v2 = vadd.f32 1e-05, %v4231_v53  ;;  %6034 = vmatmul.mubr.msk.f32.vlgmr.msra.gmra.mxu1 %vm462_vm0, %v4312_v55  ;;  %v4313_v46 = vadd.f32 %v8862_v57, %v4291_v38  ;;  %v4271_v61 = vmul.f32 %v6463_v25, %v8685_v48 }
 0xab5   : > { %v6465_v35 = vpop.eup %6464  ;;  %v4294_v0 = vmul.f32 %v8854_v34, %v4272_v18  ;;  %6129 = vmatpush3.msra.mxu1 %v8769_v11 }
 0xab6   : > { %6478 = vrsqrt.f32 %v4247_v2  ;;  %6036 = vmatprep.mubr.msk.f32.mxu1 %vm462_vm0, %v4313_v46  ;;  %v4293_v41 = vmul.f32 %v8854_v34, %v4271_v61  ;;  %v4274_v49 = vmul.f32 %v6465_v35, %v8691_v15  ;;  %6114 = vmatprep.subr.mxu1 %v8774_v59 }
 0xab7   : > { %v6467_v39 = vpop.eup %6466  ;;  %6130 = vmatpush3.msra.mxu1 %v8774_v59  ;;  %v4316_v21 = vadd.f32 %v8862_v57, %v4294_v0  ;;  %v4548_v0 = vld [vmem:[%s9035_s11 + $0x8] sm:$0xff] }
 0xab8   : > { %6037 = vmatmul.mubr.msk.f32.gmra.mxu1 %vm462_vm0, %v4314_v14  ;;  %v4315_v48 = vadd.f32 %v8862_v57, %v4293_v41  ;;  %v4273_v11 = vmul.f32 %v6467_v39, %v8697_v6  ;;  %6115 = vmatprep.subr.mxu1 %v8782_v8  ;;  %v4296_v12 = vmul.f32 %v8854_v34, %v4274_v49  ;;  %v4547_v14 = vld [vmem:[%s9035_s11] sm:$0xff] }
 0xab9   : > { %v6469_v29 = vpop.eup %6468  ;;  %6131 = vmatpush3.msra.mxu1 %v8782_v8 }
 0xaba   : > { %6039 = vmatprep.mubr.msk.f32.mxu1 %vm462_vm0, %v4315_v48  ;;  %v4295_v15 = vmul.f32 %v8854_v34, %v4273_v11  ;;  %v4276_v59 = vmul.f32 %v6469_v29, %v8703_v19  ;;  %6116 = vmatprep.subr.mxu1 %v8789_v16  ;;  %v4318_v19 = vadd.f32 %v8862_v57, %v4296_v12 }
 0xabb   : > { %v6471_v56 = vpop.eup %6470  ;;  %6132 = vmatpush3.msra.mxu1 %v8789_v16 }
 0xabc   : > { %6040 = vmatmul.mubr.msk.f32.gmra.mxu1 %vm462_vm0, %v4316_v21  ;;  %v4317_v6 = vadd.f32 %v8862_v57, %v4295_v15  ;;  %v4275_v3 = vmul.f32 %v6471_v56, %v8709_v60  ;;  %6117 = vmatprep.subr.mxu1 %v8796_v52  ;;  %v4298_v26 = vmul.f32 %v8854_v34, %v4276_v59 }
 0xabd   : > { %v6473_v8 = vpop.eup %6472  ;;  %6133 = vmatpush3.msra.mxu1 %v8796_v52 }
 0xabe   : > { %6042 = vmatprep.mubr.msk.f32.mxu1 %vm462_vm0, %v4317_v6  ;;  %v4297_v24 = vmul.f32 %v8854_v34, %v4275_v3  ;;  %v4278_v16 = vmul.f32 %v6473_v8, %v8715_v33  ;;  %6118 = vmatprep.subr.mxu1 %v8803_v37  ;;  %v4320_v28 = vadd.f32 %v8862_v57, %v4298_v26 }
 0xabf   : > { %v6475_v55 = vpop.eup %6474  ;;  %6134 = vmatpush3.msra.mxu1 %v8803_v37 }
 0xac0   : > { %6043 = vmatmul.mubr.msk.f32.gmra.mxu1 %vm462_vm0, %v4318_v19  ;;  %v4319_v60 = vadd.f32 %v8862_v57, %v4297_v24  ;;  %v4277_v31 = vmul.f32 %v6475_v55, %v8721_v47  ;;  %6119 = vmatprep.subr.mxu1 %v8810_v51  ;;  %v4300_v53 = vmul.f32 %v8854_v34, %v4278_v16 }
 0xac1   : > { %v6477_v52 = vpop.eup %6476  ;;  %6135 = vmatpush3.msra.mxu1 %v8810_v51 }
 0xac2   : > { %6045 = vmatprep.mubr.msk.f32.mxu1 %vm462_vm0, %v4319_v60  ;;  %v4299_v33 = vmul.f32 %v8854_v34, %v4277_v31  ;;  %v4280_v37 = vmul.f32 %v6477_v52, %v8727_v27  ;;  %6120 = vmatprep.subr.mxu1 %v8817_v13  ;;  %v4322_v51 = vadd.f32 %v8862_v57, %v4300_v53 }
 0xac3   : > { %v6479_v38 = vpop.eup %6478  ;;  %6136 = vmatpush3.msra.mxu1 %v8817_v13 }
 0xac4   : > { %6046 = vmatmul.mubr.msk.f32.gmra.mxu1 %vm462_vm0, %v4320_v28  ;;  %v4321_v47 = vadd.f32 %v8862_v57, %v4299_v33  ;;  %v4279_v25 = vmul.f32 %v6479_v38, %v8733_v63  ;;  %6121 = vmatprep.subr.mxu1 %v8824_v36  ;;  %v4302_v18 = vmul.f32 %v8854_v34, %v4280_v37 }
 0xac5   : > { %6137 = vmatpush3.msra.mxu1 %v8824_v36 }
 0xac6   : > { %6048 = vmatprep.mubr.msk.f32.mxu1 %vm462_vm0, %v4321_v47  ;;  %v4301_v27 = vmul.f32 %v8854_v34, %v4279_v25  ;;  %6122 = vmatprep.subr.mxu1 %v8831_v7  ;;  %v4324_v13 = vadd.f32 %v8862_v57, %v4302_v18 }
 0xac7   : > { %6138 = vmatpush3.msra.mxu1 %v8831_v7 }
 0xac8   : > { %6049 = vmatmul.mubr.msk.f32.gmra.mxu1 %vm462_vm0, %v4322_v51  ;;  %v4323_v63 = vadd.f32 %v8862_v57, %v4301_v27  ;;  %6123 = vmatprep.subr.mxu1 %v8838_v43 }
 0xac9   : > { %6139 = vmatpush3.msra.mxu1 %v8838_v43  ;;  %v4550_v43 = vld [vmem:[%s9035_s11 + $0x18] sm:$0xff] }
 0xaca   : > { %6051 = vmatprep.mubr.msk.f32.mxu1 %vm462_vm0, %v4323_v63  ;;  %6124 = vmatprep.subr.mxu1 %v8845_v44 }
 0xacb   : > { %6140 = vmatpush3.msra.mxu1 %v8845_v44  ;;  %6081 = vmatprep.subr.mxu0 %v4550_v43  ;;  %v4549_v44 = vld [vmem:[%s9035_s11 + $0x10] sm:$0xff] }
 0xacc   : > { %6052 = vmatmul.mubr.msk.f32.gmra.mxu1 %vm462_vm0, %v4324_v13  ;;  %6125 = vmatprep.subr.mxu1 %v4550_v43 }
 0xacd   : > { %6082 = vmatpush3.msra.mxu0 %v4550_v43  ;;  %6141 = vmatpush3.msra.mxu1 %v4550_v43 }
 0xace   : > { %6083 = vmatprep.subr.mxu0 %v4549_v44  ;;  %6126 = vmatprep.subr.mxu1 %v4549_v44 }
 0xacf   : > { %6084 = vmatpush3.msra.mxu0 %v4549_v44  ;;  %6142 = vmatpush3.msra.mxu1 %v4549_v44 }
 0xad0   : > { %6085 = vmatprep.subr.mxu0 %v4548_v0  ;;  %6127 = vmatprep.subr.mxu1 %v4548_v0 }
 0xad1   : > { %6086 = vmatpush3.msra.mxu0 %v4548_v0  ;;  %6143 = vmatpush3.msra.mxu1 %v4548_v0 }
 0xad2   : > { %6087 = vmatprep.subr.mxu0 %v4547_v14  ;;  %6128 = vmatprep.subr.mxu1 %v4547_v14 }
 0xad3   : > { %6088 = vmatpush3.msra.mxu0 %v4547_v14  ;;  %6144 = vmatpush3.msra.mxu1 %v4547_v14 }
 0xaea   : > { %v4218_v36 = vpop.xlane.xlu1 %4217 }
 0xaeb   : > { %v4234_v7 = vmul.f32 0.03125, %v4218_v36 }
 0xaec   : > { %v4215_v2 = vpop.xlane.xlu0 %4214 }
 0xaed   : > { %v4250_v46 = vadd.f32 1e-05, %v4234_v7  ;;  %v4233_v61 = vmul.f32 0.03125, %v4215_v2 }
 0xaef   : > { %6480 = vrsqrt.f32 %v4250_v46  ;;  %v4249_v35 = vadd.f32 1e-05, %v4233_v61 }
 0xaf1   : > { %6482 = vrsqrt.f32 %v4249_v35 }
 0xafc   : > { %v6481_v41 = vpop.eup %6480 }
 0xafd   : > { %v4282_v49 = vmul.f32 %v6481_v41, %v8755_v54  ;;  %v5025_v54 = vld [vmem:[%s9034_s10] ss:$0 sm:$0xff] }
 0xafe   : > { %v6483_v39 = vpop.eup %6482 }
 0xaff   : > { %v4281_v48 = vmul.f32 %v6483_v39, %v8758_v10  ;;  %v4304_v11 = vmul.f32 %v8854_v34, %v4282_v49 }
 0xb01   : > { %v4303_v29 = vmul.f32 %v8854_v34, %v4281_v48  ;;  %v4326_v15 = vadd.f32 %v8862_v57, %v4304_v11 }
 0xb03   : > { %v4325_v21 = vadd.f32 %v8862_v57, %v4303_v29 }
 0xb05   : > { %6054 = vmatprep.mubr.msk.f32.mxu1 %vm462_vm0, %v4325_v21 }
 0xb06   : > { %6055 = vmatmul.mubr.msk.f32.gmra.mxu1 %vm462_vm0, %v4326_v15 }
 0xb74   : > { %v6035_v12 = vpop.f32.mrf.mxu1 }
 0xb75   : > { %v4458_v59 = vadd.f32 %v6035_v12, %v5025_v54 }
 0xb76   : > { %v4452_v56 = vpop.f32.mrf.mxu1 }
 0xb77   : > { %v4453_v10 = vadd.f32 %v5025_v54, %v4452_v56  ;;  %v4532_v8 = vmax.f32 %v4458_v59, 0.0  ;;  %v5042_v59 = vld [vmem:[%s9036_s12] ss:$0 sm:$0xff] }
 0xb78   : > { %v6038_v6 = vpop.f32.mrf.mxu1 }
 0xb79   : > { %v4531_v3 = vmax.f32 %v4453_v10, 0.0  ;;  %v4468_v34 = vadd.f32 %v6038_v6, %v5025_v54 }
 0xb7a   : > { %v4462_v26 = vpop.f32.mrf.mxu1 }
 0xb7b   : > { %v4463_v19 = vadd.f32 %v5025_v54, %v4462_v26  ;;  %6089 = vmatprep.mubr.f32.mxu0 %v4531_v3  ;;  %v4534_v16 = vmax.f32 %v4468_v34, 0.0 }
 0xb7c   : > { %v6041_v57 = vpop.f32.mrf.mxu1  ;;  %6090 = vmatmul.mubr.f32.vlgmr.msra.gmra.mxu0 %v4532_v8 }
 0xb7d   : > { %v4533_v24 = vmax.f32 %v4463_v19, 0.0  ;;  %v4478_v55 = vadd.f32 %v6041_v57, %v5025_v54 }
 0xb7e   : > { %v4472_v60 = vpop.f32.mrf.mxu1 }
 0xb7f   : > { %v4473_v31 = vadd.f32 %v5025_v54, %v4472_v60  ;;  %6092 = vmatprep.mubr.f32.mxu0 %v4533_v24  ;;  %v4536_v33 = vmax.f32 %v4478_v55, 0.0 }
 0xb80   : > { %v6044_v52 = vpop.f32.mrf.mxu1  ;;  %6093 = vmatmul.mubr.f32.gmra.mxu0 %v4534_v16 }
 0xb81   : > { %v4535_v28 = vmax.f32 %v4473_v31, 0.0  ;;  %v4488_v53 = vadd.f32 %v6044_v52, %v5025_v54 }
 0xb82   : > { %v4482_v37 = vpop.f32.mrf.mxu1 }
 0xb83   : > { %v4483_v38 = vadd.f32 %v5025_v54, %v4482_v37  ;;  %6095 = vmatprep.mubr.f32.mxu0 %v4535_v28  ;;  %v4538_v51 = vmax.f32 %v4488_v53, 0.0 }
 0xb84   : > { %v6047_v47 = vpop.f32.mrf.mxu1  ;;  %6096 = vmatmul.mubr.f32.gmra.mxu0 %v4536_v33 }
 0xb85   : > { %v4537_v25 = vmax.f32 %v4483_v38, 0.0  ;;  %v4498_v27 = vadd.f32 %v6047_v47, %v5025_v54 }
 0xb86   : > { %v4492_v18 = vpop.f32.mrf.mxu1 }
 0xb87   : > { %v4493_v63 = vadd.f32 %v5025_v54, %v4492_v18  ;;  %6098 = vmatprep.mubr.f32.mxu0 %v4537_v25  ;;  %v4540_v7 = vmax.f32 %v4498_v27, 0.0 }
 0xb88   : > { %v6050_v13 = vpop.f32.mrf.mxu1  ;;  %6099 = vmatmul.mubr.f32.gmra.mxu0 %v4538_v51 }
 0xb89   : > { %v4539_v36 = vmax.f32 %v4493_v63, 0.0  ;;  %v4508_v2 = vadd.f32 %v6050_v13, %v5025_v54 }
 0xb8a   : > { %v4502_v46 = vpop.f32.mrf.mxu1 }
 0xb8b   : > { %v4503_v61 = vadd.f32 %v5025_v54, %v4502_v46  ;;  %6101 = vmatprep.mubr.f32.mxu0 %v4539_v36  ;;  %v4542_v44 = vmax.f32 %v4508_v2, 0.0 }
 0xb8c   : > { %v6053_v35 = vpop.f32.mrf.mxu1  ;;  %6102 = vmatmul.mubr.f32.gmra.mxu0 %v4540_v7 }
 0xb8d   : > { %v4541_v43 = vmax.f32 %v4503_v61, 0.0  ;;  %v4518_v0 = vadd.f32 %v6053_v35, %v5025_v54 }
 0xb8e   : > { %v4512_v14 = vpop.f32.mrf.mxu1 }
 0xb8f   : > { %v4513_v41 = vadd.f32 %v5025_v54, %v4512_v14  ;;  %6104 = vmatprep.mubr.f32.mxu0 %v4541_v43  ;;  %v4544_v39 = vmax.f32 %v4518_v0, 0.0 }
 0xb90   : > { %6105 = vmatmul.mubr.f32.gmra.mxu0 %v4542_v44 }
 0xb91   : > { %v4543_v49 = vmax.f32 %v4513_v41, 0.0 }
 0xb93   : > { %6107 = vmatprep.mubr.f32.mxu0 %v4543_v49 }
 0xb94   : > { %6108 = vmatmul.mubr.f32.gmra.mxu0 %v4544_v39 }
 0xbc6   : > { %v6056_v48 = vpop.f32.mrf.mxu1 }
 0xbc7   : > { %v4528_v11 = vadd.f32 %v6056_v48, %v5025_v54 }
 0xbc8   : > { %v4522_v29 = vpop.f32.mrf.mxu1 }
 0xbc9   : > { %v4523_v21 = vadd.f32 %v5025_v54, %v4522_v29  ;;  %v4546_v12 = vmax.f32 %v4528_v11, 0.0 }
 0xbcb   : > { %v4545_v15 = vmax.f32 %v4523_v21, 0.0 }
 0xbcd   : > { %6110 = vmatprep.mubr.f32.mxu1 %v4545_v15 }
 0xbce   : > { %6111 = vmatmul.mubr.f32.vlgmr.msra.gmra.mxu1 %v4546_v12 }
 0xc3c   : > { %v6091_v56 = vpop.f32.mrf.mxu0 }
 0xc3d   : > { %v4642_v10 = vadd.f32 %v6091_v56, %v5042_v59 }
 0xc3e   : > { %v4636_v54 = vpop.f32.mrf.mxu0 }
 0xc3f   : > { %v4716_v6 = vadd.f32 %v4642_v10, %v8550_v23  ;;  %v4637_v3 = vadd.f32 %v5042_v59, %v4636_v54 }
 0xc40   : > { %v6094_v8 = vpop.f32.mrf.mxu0 }
 0xc41   : > { %4732 = vst.msk [vmem:[%s8971_s19 + $0x8] sm:$0xff] %vm462_vm0, %v4716_v6  ;;  %v4715_v34 = vadd.f32 %v4637_v3, %v8555_v50  ;;  %v4652_v26 = vadd.f32 %v6094_v8, %v5042_v59 }
 0xc42   : > { %v4646_v19 = vpop.f32.mrf.mxu0 }
 0xc43   : > { %4731 = vst.msk [vmem:[%s8971_s19] sm:$0xff] %vm462_vm0, %v4715_v34  ;;  %v4718_v57 = vadd.f32 %v4652_v26, %v8562_v20  ;;  %v4647_v24 = vadd.f32 %v5042_v59, %v4646_v19 }
 0xc44   : > { %v6097_v16 = vpop.f32.mrf.mxu0 }
 0xc45   : > { %4734 = vst.msk [vmem:[%s8971_s19 + $0x18] sm:$0xff] %vm462_vm0, %v4718_v57  ;;  %v4717_v23 = vadd.f32 %v4647_v24, %v8569_v9  ;;  %v4662_v55 = vadd.f32 %v6097_v16, %v5042_v59 }
 0xc46   : > { %v4656_v60 = vpop.f32.mrf.mxu0 }
 0xc47   : > { %4733 = vst.msk [vmem:[%s8971_s19 + $0x10] sm:$0xff] %vm462_vm0, %v4717_v23  ;;  %v4720_v50 = vadd.f32 %v4662_v55, %v8576_v42  ;;  %v4657_v31 = vadd.f32 %v5042_v59, %v4656_v60 }
 0xc48   : > { %v6100_v52 = vpop.f32.mrf.mxu0 }
 0xc49   : > { %4736 = vst.msk [vmem:[%s8971_s19 + $0x28] sm:$0xff] %vm462_vm0, %v4720_v50  ;;  %v4719_v20 = vadd.f32 %v4657_v31, %v8583_v5  ;;  %v4672_v28 = vadd.f32 %v6100_v52, %v5042_v59 }
 0xc4a   : > { %v4666_v33 = vpop.f32.mrf.mxu0 }
 0xc4b   : > { %4735 = vst.msk [vmem:[%s8971_s19 + $0x20] sm:$0xff] %vm462_vm0, %v4719_v20  ;;  %v4722_v9 = vadd.f32 %v4672_v28, %v8590_v40  ;;  %v4667_v53 = vadd.f32 %v5042_v59, %v4666_v33 }
 0xc4c   : > { %v6103_v37 = vpop.f32.mrf.mxu0 }
 0xc4d   : > { %4738 = vst.msk [vmem:[%s8971_s19 + $0x38] sm:$0xff] %vm462_vm0, %v4722_v9  ;;  %v4721_v42 = vadd.f32 %v4667_v53, %v8597_v62  ;;  %v4682_v38 = vadd.f32 %v6103_v37, %v5042_v59 }
 0xc4e   : > { %v4676_v47 = vpop.f32.mrf.mxu0 }
 0xc4f   : > { %4737 = vst.msk [vmem:[%s8971_s19 + $0x30] sm:$0xff] %vm462_vm0, %v4721_v42  ;;  %v4724_v5 = vadd.f32 %v4682_v38, %v8604_v58  ;;  %v4677_v25 = vadd.f32 %v5042_v59, %v4676_v47 }
 0xc50   : > { %v6106_v51 = vpop.f32.mrf.mxu0 }
 0xc51   : > { %4740 = vst.msk [vmem:[%s8971_s19 + $0x48] sm:$0xff] %vm462_vm0, %v4724_v5  ;;  %v4723_v40 = vadd.f32 %v4677_v25, %v8611_v4  ;;  %v4692_v27 = vadd.f32 %v6106_v51, %v5042_v59 }
 0xc52   : > { %v4686_v18 = vpop.f32.mrf.mxu0 }
 0xc53   : > { %4739 = vst.msk [vmem:[%s8971_s19 + $0x40] sm:$0xff] %vm462_vm0, %v4723_v40  ;;  %v4726_v62 = vadd.f32 %v4692_v27, %v8618_v17  ;;  %v4687_v63 = vadd.f32 %v5042_v59, %v4686_v18 }
 0xc54   : > { %v6109_v13 = vpop.f32.mrf.mxu0 }
 0xc55   : > { %4742 = vst.msk [vmem:[%s8971_s19 + $0x58] sm:$0xff] %vm462_vm0, %v4726_v62  ;;  %v4725_v58 = vadd.f32 %v4687_v63, %v8625_v45  ;;  %v4702_v36 = vadd.f32 %v6109_v13, %v5042_v59 }
 0xc56   : > { %v4696_v7 = vpop.f32.mrf.mxu0 }
 0xc57   : > { %4741 = vst.msk [vmem:[%s8971_s19 + $0x50] sm:$0xff] %vm462_vm0, %v4725_v58  ;;  %v4728_v4 = vadd.f32 %v4702_v36, %v8632_v1  ;;  %v4697_v2 = vadd.f32 %v5042_v59, %v4696_v7 }
 0xc59   : > { %4744 = vst.msk [vmem:[%s8971_s19 + $0x68] sm:$0xff] %vm462_vm0, %v4728_v4  ;;  %v4727_v46 = vadd.f32 %v4697_v2, %v8638_v22 }
 0xc5b   : > { %4743 = vst.msk [vmem:[%s8971_s19 + $0x60] sm:$0xff] %vm462_vm0, %v4727_v46 }
 0xc8e   : > { %v6112_v17 = vpop.f32.mrf.mxu1 }
 0xc8f   : > { %v4712_v61 = vadd.f32 %v6112_v17, %v5042_v59 }
 0xc90   : > { %v4706_v35 = vpop.f32.mrf.mxu1 }
 0xc91   : > { %v4730_v43 = vadd.f32 %v4712_v61, %v8648_v30  ;;  %v4707_v45 = vadd.f32 %v5042_v59, %v4706_v35 }
 0xc93   : > { %4746 = vst.msk [vmem:[%s8971_s19 + $0x78] sm:$0xff] %vm462_vm0, %v4730_v43  ;;  %v4729_v44 = vadd.f32 %v4707_v45, %v8652_v32 }
 0xc95   : > { %4745 = vst.msk [vmem:[%s8971_s19 + $0x70] sm:$0xff] %vm462_vm0, %v4729_v44 }
 0xc96 PF: > { %s23_s25 = sadd.s32 1, %s6522_s25  }
 0xc97   : > { %p20_p4 = scmp.ge.s32.totalorder %s23_s25, 4  }
 0xc99   :  { %22 = sbr.rel (!%p20_p4) target bundleno = 1 (0x1), region = 102 }

</bundles_post_ra>
